<compile_context>
chip_gen: v6e
topology: v6e:2x2x1
jax: 0.10.0
libtpu: 0.0.40
codegen_flags: <defaults>
</compile_context>

<pallas_src>
import functools

import jax
import jax.numpy as jnp
import numpy as np
from jax import lax
from jax.experimental import pallas as pl
from jax.experimental.pallas import tpu as pltpu


def _round_up(v, m):
    return (v + m - 1) // m * m


# ----------------------------------------------------------------------------
# Fused Pallas kernel: whole Spatial chain for B images folded into the lanes.
# Activations are (C, B*H*W): channels on sublanes, pixels on lanes.
# ----------------------------------------------------------------------------
def _spatial_kernel(x_ref, masks_ref,
                    w11, b11, w12, b12,
                    s12, t12, w13, b13,
                    s13, t13, w14, b14,
                    s14, t14, w15, b15,
                    o_ref, *, H, W, B):
    BHW = B * H * W

    # Static lane-roll amounts for the 9 taps (dy, dx).  Per-pixel border
    # masks (host-precomputed) zero out-of-image neighbours, which also kills
    # any cross-image wrap-around from the folded batch.
    offsets = [dy * W + dx for dy in (-1, 0, 1) for dx in (-1, 0, 1)]
    shifts = [(-o) % BHW for o in offsets]
    masks = [masks_ref[t] for t in range(9)]          # each (1, BHW)

    def conv3x3(act, w_ref, b_ref):
        # act: (Cin, BHW) f32, already pre-activated.  9 accumulated short-K
        # MXU matmuls instead of a materialized (9*Cin, BHW) im2col concat:
        # taps never touch VMEM.  Bias folded into the first (center-tap)
        # accumulation.  Rolls run on the XLU (separate VLIW slot).
        acc = b_ref[...] + jnp.dot(w_ref[4], act,
                                   preferred_element_type=jnp.float32)
        for t in (0, 1, 2, 3, 5, 6, 7, 8):
            tap = pltpu.roll(act, shifts[t], axis=1) * masks[t]
            acc = acc + jnp.dot(w_ref[t], tap,
                                preferred_element_type=jnp.float32)
        return acc                                     # (Cout, BHW)

    x = x_ref[...]                                     # (Lp, BHW)

    # x11 = conv11(x)
    x11 = conv3x3(x, w11, b11)
    # batch_norm11(x11) result is discarded by the original forward -> omitted.

    # x12 = conv12(x11)              (raw x11, no BN/ReLU, as in the module)
    x12 = conv3x3(x11, w12, b12)

    # x13 = conv13(relu(bn12(cat(x11, x12))))
    a = jnp.concatenate([x11, x12], axis=0)
    a = jnp.maximum(a * s12[...] + t12[...], 0.0)
    x13 = conv3x3(a, w13, b13)

    # x14 = conv14(relu(bn13(cat(x11, x12, x13))))
    a = jnp.concatenate([x11, x12, x13], axis=0)
    a = jnp.maximum(a * s13[...] + t13[...], 0.0)
    x14 = conv3x3(a, w14, b14)

    # x16 = conv15(relu(bn14(cat(x11, x12, x13, x14))))
    a = jnp.concatenate([x11, x12, x13, x14], axis=0)
    a = jnp.maximum(a * s14[...] + t14[...], 0.0)
    o_ref[...] = conv3x3(a, w15, b15)


def _border_masks(H, W, B):
    """(9, 1, B*H*W) f32: 1 where the (dy,dx) neighbour lies inside the image."""
    HW = H * W
    yy = np.arange(HW) // W
    xx = np.arange(HW) % W
    rows = []
    for dy in (-1, 0, 1):
        for dx in (-1, 0, 1):
            ok = ((yy + dy >= 0) & (yy + dy < H) &
                  (xx + dx >= 0) & (xx + dx < W))
            rows.append(ok.astype(np.float32))
    m = np.stack(rows, 0)[:, None, :]                  # (9, 1, HW)
    return jnp.asarray(np.tile(m, (1, 1, B)))          # (9, 1, B*HW)


def _pick_images_per_block(N):
    # Fold several images into the lane axis per grid step (amortizes grid
    # overhead, widens the matmul lane dim) but keep >= 2 grid steps when the
    # batch allows so both v7x TensorCores are used, and cap the fold factor
    # to keep vreg pressure reasonable.
    cap = 4
    target = N // 2 if (N >= 4 and N % 2 == 0) else N
    b = max(1, min(target, cap))
    while N % b:
        b -= 1
    return b


def spatial_forward(x_nchw, p, images_per_block=None):
    """x_nchw: (N, L, H, W) float32 -> (N, 32, H, W) float32."""
    N, L, H, W = x_nchw.shape
    HW = H * W
    Lp = _round_up(L, 8)                      # pad input channels to 8-align
    if images_per_block is None:
        images_per_block = _pick_images_per_block(N)
    assert N % images_per_block == 0
    num_blocks = N // images_per_block
    BHW = images_per_block * HW

    # NCHW -> (L, N*H*W): channels on sublanes, batch folded into lanes.
    x = jnp.transpose(x_nchw.astype(jnp.float32), (1, 0, 2, 3)).reshape(L, N * HW)
    if Lp != L:
        x = jnp.pad(x, ((0, Lp - L), (0, 0)))

    masks = _border_masks(H, W, images_per_block)

    const_args = (
        masks,
        p["conv11"]["w_taps"], p["conv11"]["b_col"],
        p["conv12"]["w_taps"], p["conv12"]["b_col"],
        p["bn12"]["scale"], p["bn12"]["shift"],
        p["conv13"]["w_taps"], p["conv13"]["b_col"],
        p["bn13"]["scale"], p["bn13"]["shift"],
        p["conv14"]["w_taps"], p["conv14"]["b_col"],
        p["bn14"]["scale"], p["bn14"]["shift"],
        p["conv15"]["w_taps"], p["conv15"]["b_col"],
    )

    def _const_spec(a):
        zeros = (0,) * a.ndim
        return pl.BlockSpec(a.shape, lambda g, _z=zeros: _z)

    kernel = functools.partial(_spatial_kernel, H=H, W=W, B=images_per_block)
    out = pl.pallas_call(
        kernel,
        out_shape=jax.ShapeDtypeStruct((32, N * HW), jnp.float32),
        grid=(num_blocks,),
        in_specs=[pl.BlockSpec((Lp, BHW), lambda g: (0, g))]
                 + [_const_spec(a) for a in const_args],
        out_specs=pl.BlockSpec((32, BHW), lambda g: (0, g)),
        compiler_params=pltpu.CompilerParams(
            dimension_semantics=("parallel",)),
        # VMEM use is tiny (<1 MiB incl. weights) -> no retiling needed even
        # for v7x's 64 MiB VMEM; lane-dense output (multiple of 128).
    )(x, *const_args)

    # (32, N*HW) -> (N, 32, H, W)
    return jnp.transpose(out.reshape(32, N, H, W), (1, 0, 2, 3))


# ----------------------------------------------------------------------------
# Parameter construction (deterministic, synthetic)
# ----------------------------------------------------------------------------
def _conv_params(key, cin, cout, cin_pad=None):
    if cin_pad is None:
        cin_pad = cin
    kw, kb = jax.random.split(key)
    bound = 1.0 / np.sqrt(cin * 9)
    w_oihw = jax.random.uniform(kw, (cout, cin, 3, 3), jnp.float32,
                                -bound, bound)
    b = jax.random.uniform(kb, (cout,), jnp.float32, -bound, bound)
    # Zero-pad input channels, then (Cout,Cin_pad,3,3) -> (3,3,Cout,Cin_pad)
    # -> (9, Cout, Cin_pad); tap index t = ky*3 + kx = (dy+1)*3 + (dx+1).
    w_pad = jnp.pad(w_oihw, ((0, 0), (0, cin_pad - cin), (0, 0), (0, 0)))
    w_taps = jnp.transpose(w_pad, (2, 3, 0, 1)).reshape(9, cout, cin_pad)
    return {"w_oihw": w_oihw, "w_taps": w_taps, "b": b,
            "b_col": b.reshape(cout, 1)}


def _bn_params(key, c, eps=1e-5):
    kg, kb, km, kv = jax.random.split(key, 4)
    gamma = jax.random.uniform(kg, (c,), jnp.float32, 0.5, 1.5)
    beta = 0.1 * jax.random.normal(kb, (c,), jnp.float32)
    mean = 0.1 * jax.random.normal(km, (c,), jnp.float32)
    var = jax.random.uniform(kv, (c,), jnp.float32, 0.5, 1.5)
    scale = gamma / jnp.sqrt(var + eps)
    shift = beta - mean * scale
    return {"gamma": gamma, "beta": beta, "mean": mean, "var": var, "eps": eps,
            "scale": scale.reshape(c, 1), "shift": shift.reshape(c, 1)}


def make_params(L, key):
    keys = jax.random.split(key, 8)
    return {
        "conv11": _conv_params(keys[0], L, 8, cin_pad=_round_up(L, 8)),
        "conv12": _conv_params(keys[1], 8, 8),
        "conv13": _conv_params(keys[2], 16, 8),
        "conv14": _conv_params(keys[3], 24, 8),
        "conv15": _conv_params(keys[4], 32, 32),
        "bn12": _bn_params(keys[5], 16),
        "bn13": _bn_params(keys[6], 24),
        "bn14": _bn_params(keys[7], 32),
    }


# ----------------------------------------------------------------------------
# Pure-JAX reference (lax.conv) for correctness checking
# ----------------------------------------------------------------------------
def _ref_conv(x_nhwc, cp):
    w_hwio = jnp.transpose(cp["w_oihw"], (2, 3, 1, 0))
    y = lax.conv_general_dilated(
        x_nhwc, w_hwio, window_strides=(1, 1), padding="SAME",
        dimension_numbers=("NHWC", "HWIO", "NHWC"))
    return y + cp["b"]


def _ref_bn_relu(x_nhwc, bn):
    y = (x_nhwc - bn["mean"]) / jnp.sqrt(bn["var"] + bn["eps"])
    y = y * bn["gamma"] + bn["beta"]
    return jnp.maximum(y, 0.0)


def spatial_forward_ref(x_nchw, p):
    x = jnp.transpose(x_nchw, (0, 2, 3, 1)).astype(jnp.float32)
    x11 = _ref_conv(x, p["conv11"])
    x12 = _ref_conv(x11, p["conv12"])
    x13 = _ref_conv(_ref_bn_relu(jnp.concatenate([x11, x12], -1), p["bn12"]),
                    p["conv13"])
    x14 = _ref_conv(_ref_bn_relu(jnp.concatenate([x11, x12, x13], -1),
                                 p["bn13"]), p["conv14"])
    x16 = _ref_conv(_ref_bn_relu(jnp.concatenate([x11, x12, x13, x14], -1),
                                 p["bn14"]), p["conv15"])
    return jnp.transpose(x16, (0, 3, 1, 2))


# ----------------------------------------------------------------------------
if __name__ == "__main__":
    key = jax.random.PRNGKey(0)
    k_x, k_p = jax.random.split(key)

    N, L, H, W = 2, 4, 16, 16                    # x: [2, 4, 16, 16] (NCHW)
    x = jax.random.normal(k_x, (N, L, H, W), jnp.float32)
    params = make_params(L, k_p)

    fwd = jax.jit(spatial_forward)
    out = jax.block_until_ready(fwd(x, params))
    assert out.shape == (N, 32, H, W), out.shape

    ref = jax.block_until_ready(spatial_forward_ref(x, params))
    np.testing.assert_allclose(np.asarray(out), np.asarray(ref),
                               rtol=2e-4, atol=2e-4)

    print("KERNEL_OK")
</pallas_src>

<mosaic_0001>
module attributes {stable_mosaic.version = 11 : i64} {
  func.func @_spatial_kernel(%arg0: i32, %arg1: memref<8x512xf32, #tpu.memory_space<vmem>>, %arg2: memref<9x1x512xf32, #tpu.memory_space<vmem>>, %arg3: memref<9x8x8xf32, #tpu.memory_space<vmem>>, %arg4: memref<8x1xf32, #tpu.memory_space<vmem>>, %arg5: memref<9x8x8xf32, #tpu.memory_space<vmem>>, %arg6: memref<8x1xf32, #tpu.memory_space<vmem>>, %arg7: memref<16x1xf32, #tpu.memory_space<vmem>>, %arg8: memref<16x1xf32, #tpu.memory_space<vmem>>, %arg9: memref<9x8x16xf32, #tpu.memory_space<vmem>>, %arg10: memref<8x1xf32, #tpu.memory_space<vmem>>, %arg11: memref<24x1xf32, #tpu.memory_space<vmem>>, %arg12: memref<24x1xf32, #tpu.memory_space<vmem>>, %arg13: memref<9x8x24xf32, #tpu.memory_space<vmem>>, %arg14: memref<8x1xf32, #tpu.memory_space<vmem>>, %arg15: memref<32x1xf32, #tpu.memory_space<vmem>>, %arg16: memref<32x1xf32, #tpu.memory_space<vmem>>, %arg17: memref<9x32x32xf32, #tpu.memory_space<vmem>>, %arg18: memref<32x1xf32, #tpu.memory_space<vmem>>, %arg19: memref<32x512xf32, #tpu.memory_space<vmem>>) attributes {dimension_semantics = [#tpu.dimension_semantics<parallel>], iteration_bounds = array<i64: 1>, scalar_prefetch = 0 : i64, scratch_operands = 0 : i64, tpu.core_type = #tpu.core_type<tc>, window_params = [{transform_indices = @transform_0, window_bounds = array<i64: 8, 512>}, {pipeline_mode = #tpu.pipeline_mode<synchronous>, transform_indices = @transform_1, window_bounds = array<i64: 9, 1, 512>}, {pipeline_mode = #tpu.pipeline_mode<synchronous>, transform_indices = @transform_2, window_bounds = array<i64: 9, 8, 8>}, {pipeline_mode = #tpu.pipeline_mode<synchronous>, transform_indices = @transform_3, window_bounds = array<i64: 8, 1>}, {pipeline_mode = #tpu.pipeline_mode<synchronous>, transform_indices = @transform_4, window_bounds = array<i64: 9, 8, 8>}, {pipeline_mode = #tpu.pipeline_mode<synchronous>, transform_indices = @transform_5, window_bounds = array<i64: 8, 1>}, {pipeline_mode = #tpu.pipeline_mode<synchronous>, transform_indices = @transform_6, window_bounds = array<i64: 16, 1>}, {pipeline_mode = #tpu.pipeline_mode<synchronous>, transform_indices = @transform_7, window_bounds = array<i64: 16, 1>}, {pipeline_mode = #tpu.pipeline_mode<synchronous>, transform_indices = @transform_8, window_bounds = array<i64: 9, 8, 16>}, {pipeline_mode = #tpu.pipeline_mode<synchronous>, transform_indices = @transform_9, window_bounds = array<i64: 8, 1>}, {pipeline_mode = #tpu.pipeline_mode<synchronous>, transform_indices = @transform_10, window_bounds = array<i64: 24, 1>}, {pipeline_mode = #tpu.pipeline_mode<synchronous>, transform_indices = @transform_11, window_bounds = array<i64: 24, 1>}, {pipeline_mode = #tpu.pipeline_mode<synchronous>, transform_indices = @transform_12, window_bounds = array<i64: 9, 8, 24>}, {pipeline_mode = #tpu.pipeline_mode<synchronous>, transform_indices = @transform_13, window_bounds = array<i64: 8, 1>}, {pipeline_mode = #tpu.pipeline_mode<synchronous>, transform_indices = @transform_14, window_bounds = array<i64: 32, 1>}, {pipeline_mode = #tpu.pipeline_mode<synchronous>, transform_indices = @transform_15, window_bounds = array<i64: 32, 1>}, {pipeline_mode = #tpu.pipeline_mode<synchronous>, transform_indices = @transform_16, window_bounds = array<i64: 9, 32, 32>}, {pipeline_mode = #tpu.pipeline_mode<synchronous>, transform_indices = @transform_17, window_bounds = array<i64: 32, 1>}, {transform_indices = @transform_18, window_bounds = array<i64: 32, 512>}]} {
    %c0 = arith.constant 0 : index
    %c0_0 = arith.constant 0 : index
    %c0_1 = arith.constant 0 : index
    %0 = vector.load %arg2[%c0, %c0_0, %c0_1] : memref<9x1x512xf32, #tpu.memory_space<vmem>>, vector<1x1x512xf32>
    %1 = vector.shape_cast %0 : vector<1x1x512xf32> to vector<1x512xf32>
    %c1 = arith.constant 1 : index
    %c0_2 = arith.constant 0 : index
    %c0_3 = arith.constant 0 : index
    %2 = vector.load %arg2[%c1, %c0_2, %c0_3] : memref<9x1x512xf32, #tpu.memory_space<vmem>>, vector<1x1x512xf32>
    %3 = vector.shape_cast %2 : vector<1x1x512xf32> to vector<1x512xf32>
    %c2 = arith.constant 2 : index
    %c0_4 = arith.constant 0 : index
    %c0_5 = arith.constant 0 : index
    %4 = vector.load %arg2[%c2, %c0_4, %c0_5] : memref<9x1x512xf32, #tpu.memory_space<vmem>>, vector<1x1x512xf32>
    %5 = vector.shape_cast %4 : vector<1x1x512xf32> to vector<1x512xf32>
    %c3 = arith.constant 3 : index
    %c0_6 = arith.constant 0 : index
    %c0_7 = arith.constant 0 : index
    %6 = vector.load %arg2[%c3, %c0_6, %c0_7] : memref<9x1x512xf32, #tpu.memory_space<vmem>>, vector<1x1x512xf32>
    %7 = vector.shape_cast %6 : vector<1x1x512xf32> to vector<1x512xf32>
    %c5 = arith.constant 5 : index
    %c0_8 = arith.constant 0 : index
    %c0_9 = arith.constant 0 : index
    %8 = vector.load %arg2[%c5, %c0_8, %c0_9] : memref<9x1x512xf32, #tpu.memory_space<vmem>>, vector<1x1x512xf32>
    %9 = vector.shape_cast %8 : vector<1x1x512xf32> to vector<1x512xf32>
    %c6 = arith.constant 6 : index
    %c0_10 = arith.constant 0 : index
    %c0_11 = arith.constant 0 : index
    %10 = vector.load %arg2[%c6, %c0_10, %c0_11] : memref<9x1x512xf32, #tpu.memory_space<vmem>>, vector<1x1x512xf32>
    %11 = vector.shape_cast %10 : vector<1x1x512xf32> to vector<1x512xf32>
    %c7 = arith.constant 7 : index
    %c0_12 = arith.constant 0 : index
    %c0_13 = arith.constant 0 : index
    %12 = vector.load %arg2[%c7, %c0_12, %c0_13] : memref<9x1x512xf32, #tpu.memory_space<vmem>>, vector<1x1x512xf32>
    %13 = vector.shape_cast %12 : vector<1x1x512xf32> to vector<1x512xf32>
    %c8 = arith.constant 8 : index
    %c0_14 = arith.constant 0 : index
    %c0_15 = arith.constant 0 : index
    %14 = vector.load %arg2[%c8, %c0_14, %c0_15] : memref<9x1x512xf32, #tpu.memory_space<vmem>>, vector<1x1x512xf32>
    %15 = vector.shape_cast %14 : vector<1x1x512xf32> to vector<1x512xf32>
    %c0_16 = arith.constant 0 : index
    %c0_17 = arith.constant 0 : index
    %16 = vector.load %arg1[%c0_16, %c0_17] : memref<8x512xf32, #tpu.memory_space<vmem>>, vector<8x512xf32>
    %c0_18 = arith.constant 0 : index
    %c0_19 = arith.constant 0 : index
    %17 = vector.load %arg4[%c0_18, %c0_19] : memref<8x1xf32, #tpu.memory_space<vmem>>, vector<8x1xf32>
    %c4 = arith.constant 4 : index
    %c0_20 = arith.constant 0 : index
    %c0_21 = arith.constant 0 : index
    %18 = vector.load %arg3[%c4, %c0_20, %c0_21] : memref<9x8x8xf32, #tpu.memory_space<vmem>>, vector<1x8x8xf32>
    %19 = vector.shape_cast %18 : vector<1x8x8xf32> to vector<8x8xf32>
    %cst = arith.constant dense<0.000000e+00> : vector<8x512xf32>
    %20 = tpu.matmul %19, %16, %cst {dimension_numbers = #tpu.dot_dimension_numbers<[1], [0], [0], [1], [0, 0, 1, 1], [], []>} : vector<8x8xf32>, vector<8x512xf32>, vector<8x512xf32> -> vector<8x512xf32>
    %21 = vector.broadcast %17 : vector<8x1xf32> to vector<8x512xf32>
    %22 = arith.addf %21, %20 : vector<8x512xf32>
    %c17_i32 = arith.constant 17 : i32
    %23 = tpu.dynamic_rotate %16 by %c17_i32 dim 1 : vector<8x512xf32>, i32 -> vector<8x512xf32>
    %24 = vector.broadcast %1 : vector<1x512xf32> to vector<8x512xf32>
    %25 = arith.mulf %23, %24 : vector<8x512xf32>
    %c0_22 = arith.constant 0 : index
    %c0_23 = arith.constant 0 : index
    %c0_24 = arith.constant 0 : index
    %26 = vector.load %arg3[%c0_22, %c0_23, %c0_24] : memref<9x8x8xf32, #tpu.memory_space<vmem>>, vector<1x8x8xf32>
    %27 = vector.shape_cast %26 : vector<1x8x8xf32> to vector<8x8xf32>
    %cst_25 = arith.constant dense<0.000000e+00> : vector<8x512xf32>
    %28 = tpu.matmul %27, %25, %cst_25 {dimension_numbers = #tpu.dot_dimension_numbers<[1], [0], [0], [1], [0, 0, 1, 1], [], []>} : vector<8x8xf32>, vector<8x512xf32>, vector<8x512xf32> -> vector<8x512xf32>
    %29 = arith.addf %22, %28 : vector<8x512xf32>
    %c16_i32 = arith.constant 16 : i32
    %30 = tpu.dynamic_rotate %16 by %c16_i32 dim 1 : vector<8x512xf32>, i32 -> vector<8x512xf32>
    %31 = vector.broadcast %3 : vector<1x512xf32> to vector<8x512xf32>
    %32 = arith.mulf %30, %31 : vector<8x512xf32>
    %c1_26 = arith.constant 1 : index
    %c0_27 = arith.constant 0 : index
    %c0_28 = arith.constant 0 : index
    %33 = vector.load %arg3[%c1_26, %c0_27, %c0_28] : memref<9x8x8xf32, #tpu.memory_space<vmem>>, vector<1x8x8xf32>
    %34 = vector.shape_cast %33 : vector<1x8x8xf32> to vector<8x8xf32>
    %cst_29 = arith.constant dense<0.000000e+00> : vector<8x512xf32>
    %35 = tpu.matmul %34, %32, %cst_29 {dimension_numbers = #tpu.dot_dimension_numbers<[1], [0], [0], [1], [0, 0, 1, 1], [], []>} : vector<8x8xf32>, vector<8x512xf32>, vector<8x512xf32> -> vector<8x512xf32>
    %36 = arith.addf %29, %35 : vector<8x512xf32>
    %c15_i32 = arith.constant 15 : i32
    %37 = tpu.dynamic_rotate %16 by %c15_i32 dim 1 : vector<8x512xf32>, i32 -> vector<8x512xf32>
    %38 = vector.broadcast %5 : vector<1x512xf32> to vector<8x512xf32>
    %39 = arith.mulf %37, %38 : vector<8x512xf32>
    %c2_30 = arith.constant 2 : index
    %c0_31 = arith.constant 0 : index
    %c0_32 = arith.constant 0 : index
    %40 = vector.load %arg3[%c2_30, %c0_31, %c0_32] : memref<9x8x8xf32, #tpu.memory_space<vmem>>, vector<1x8x8xf32>
    %41 = vector.shape_cast %40 : vector<1x8x8xf32> to vector<8x8xf32>
    %cst_33 = arith.constant dense<0.000000e+00> : vector<8x512xf32>
    %42 = tpu.matmul %41, %39, %cst_33 {dimension_numbers = #tpu.dot_dimension_numbers<[1], [0], [0], [1], [0, 0, 1, 1], [], []>} : vector<8x8xf32>, vector<8x512xf32>, vector<8x512xf32> -> vector<8x512xf32>
    %43 = arith.addf %36, %42 : vector<8x512xf32>
    %c1_i32 = arith.constant 1 : i32
    %44 = tpu.dynamic_rotate %16 by %c1_i32 dim 1 : vector<8x512xf32>, i32 -> vector<8x512xf32>
    %45 = vector.broadcast %7 : vector<1x512xf32> to vector<8x512xf32>
    %46 = arith.mulf %44, %45 : vector<8x512xf32>
    %c3_34 = arith.constant 3 : index
    %c0_35 = arith.constant 0 : index
    %c0_36 = arith.constant 0 : index
    %47 = vector.load %arg3[%c3_34, %c0_35, %c0_36] : memref<9x8x8xf32, #tpu.memory_space<vmem>>, vector<1x8x8xf32>
    %48 = vector.shape_cast %47 : vector<1x8x8xf32> to vector<8x8xf32>
    %cst_37 = arith.constant dense<0.000000e+00> : vector<8x512xf32>
    %49 = tpu.matmul %48, %46, %cst_37 {dimension_numbers = #tpu.dot_dimension_numbers<[1], [0], [0], [1], [0, 0, 1, 1], [], []>} : vector<8x8xf32>, vector<8x512xf32>, vector<8x512xf32> -> vector<8x512xf32>
    %50 = arith.addf %43, %49 : vector<8x512xf32>
    %c511_i32 = arith.constant 511 : i32
    %51 = tpu.dynamic_rotate %16 by %c511_i32 dim 1 : vector<8x512xf32>, i32 -> vector<8x512xf32>
    %52 = vector.broadcast %9 : vector<1x512xf32> to vector<8x512xf32>
    %53 = arith.mulf %51, %52 : vector<8x512xf32>
    %c5_38 = arith.constant 5 : index
    %c0_39 = arith.constant 0 : index
    %c0_40 = arith.constant 0 : index
    %54 = vector.load %arg3[%c5_38, %c0_39, %c0_40] : memref<9x8x8xf32, #tpu.memory_space<vmem>>, vector<1x8x8xf32>
    %55 = vector.shape_cast %54 : vector<1x8x8xf32> to vector<8x8xf32>
    %cst_41 = arith.constant dense<0.000000e+00> : vector<8x512xf32>
    %56 = tpu.matmul %55, %53, %cst_41 {dimension_numbers = #tpu.dot_dimension_numbers<[1], [0], [0], [1], [0, 0, 1, 1], [], []>} : vector<8x8xf32>, vector<8x512xf32>, vector<8x512xf32> -> vector<8x512xf32>
    %57 = arith.addf %50, %56 : vector<8x512xf32>
    %c497_i32 = arith.constant 497 : i32
    %58 = tpu.dynamic_rotate %16 by %c497_i32 dim 1 : vector<8x512xf32>, i32 -> vector<8x512xf32>
    %59 = vector.broadcast %11 : vector<1x512xf32> to vector<8x512xf32>
    %60 = arith.mulf %58, %59 : vector<8x512xf32>
    %c6_42 = arith.constant 6 : index
    %c0_43 = arith.constant 0 : index
    %c0_44 = arith.constant 0 : index
    %61 = vector.load %arg3[%c6_42, %c0_43, %c0_44] : memref<9x8x8xf32, #tpu.memory_space<vmem>>, vector<1x8x8xf32>
    %62 = vector.shape_cast %61 : vector<1x8x8xf32> to vector<8x8xf32>
    %cst_45 = arith.constant dense<0.000000e+00> : vector<8x512xf32>
    %63 = tpu.matmul %62, %60, %cst_45 {dimension_numbers = #tpu.dot_dimension_numbers<[1], [0], [0], [1], [0, 0, 1, 1], [], []>} : vector<8x8xf32>, vector<8x512xf32>, vector<8x512xf32> -> vector<8x512xf32>
    %64 = arith.addf %57, %63 : vector<8x512xf32>
    %c496_i32 = arith.constant 496 : i32
    %65 = tpu.dynamic_rotate %16 by %c496_i32 dim 1 : vector<8x512xf32>, i32 -> vector<8x512xf32>
    %66 = vector.broadcast %13 : vector<1x512xf32> to vector<8x512xf32>
    %67 = arith.mulf %65, %66 : vector<8x512xf32>
    %c7_46 = arith.constant 7 : index
    %c0_47 = arith.constant 0 : index
    %c0_48 = arith.constant 0 : index
    %68 = vector.load %arg3[%c7_46, %c0_47, %c0_48] : memref<9x8x8xf32, #tpu.memory_space<vmem>>, vector<1x8x8xf32>
    %69 = vector.shape_cast %68 : vector<1x8x8xf32> to vector<8x8xf32>
    %cst_49 = arith.constant dense<0.000000e+00> : vector<8x512xf32>
    %70 = tpu.matmul %69, %67, %cst_49 {dimension_numbers = #tpu.dot_dimension_numbers<[1], [0], [0], [1], [0, 0, 1, 1], [], []>} : vector<8x8xf32>, vector<8x512xf32>, vector<8x512xf32> -> vector<8x512xf32>
    %71 = arith.addf %64, %70 : vector<8x512xf32>
    %c495_i32 = arith.constant 495 : i32
    %72 = tpu.dynamic_rotate %16 by %c495_i32 dim 1 : vector<8x512xf32>, i32 -> vector<8x512xf32>
    %73 = vector.broadcast %15 : vector<1x512xf32> to vector<8x512xf32>
    %74 = arith.mulf %72, %73 : vector<8x512xf32>
    %c8_50 = arith.constant 8 : index
    %c0_51 = arith.constant 0 : index
    %c0_52 = arith.constant 0 : index
    %75 = vector.load %arg3[%c8_50, %c0_51, %c0_52] : memref<9x8x8xf32, #tpu.memory_space<vmem>>, vector<1x8x8xf32>
    %76 = vector.shape_cast %75 : vector<1x8x8xf32> to vector<8x8xf32>
    %cst_53 = arith.constant dense<0.000000e+00> : vector<8x512xf32>
    %77 = tpu.matmul %76, %74, %cst_53 {dimension_numbers = #tpu.dot_dimension_numbers<[1], [0], [0], [1], [0, 0, 1, 1], [], []>} : vector<8x8xf32>, vector<8x512xf32>, vector<8x512xf32> -> vector<8x512xf32>
    %78 = arith.addf %71, %77 : vector<8x512xf32>
    %c0_54 = arith.constant 0 : index
    %c0_55 = arith.constant 0 : index
    %79 = vector.load %arg6[%c0_54, %c0_55] : memref<8x1xf32, #tpu.memory_space<vmem>>, vector<8x1xf32>
    %c4_56 = arith.constant 4 : index
    %c0_57 = arith.constant 0 : index
    %c0_58 = arith.constant 0 : index
    %80 = vector.load %arg5[%c4_56, %c0_57, %c0_58] : memref<9x8x8xf32, #tpu.memory_space<vmem>>, vector<1x8x8xf32>
    %81 = vector.shape_cast %80 : vector<1x8x8xf32> to vector<8x8xf32>
    %cst_59 = arith.constant dense<0.000000e+00> : vector<8x512xf32>
    %82 = tpu.matmul %81, %78, %cst_59 {dimension_numbers = #tpu.dot_dimension_numbers<[1], [0], [0], [1], [0, 0, 1, 1], [], []>} : vector<8x8xf32>, vector<8x512xf32>, vector<8x512xf32> -> vector<8x512xf32>
    %83 = vector.broadcast %79 : vector<8x1xf32> to vector<8x512xf32>
    %84 = arith.addf %83, %82 : vector<8x512xf32>
    %c17_i32_60 = arith.constant 17 : i32
    %85 = tpu.dynamic_rotate %78 by %c17_i32_60 dim 1 : vector<8x512xf32>, i32 -> vector<8x512xf32>
    %86 = vector.broadcast %1 : vector<1x512xf32> to vector<8x512xf32>
    %87 = arith.mulf %85, %86 : vector<8x512xf32>
    %c0_61 = arith.constant 0 : index
    %c0_62 = arith.constant 0 : index
    %c0_63 = arith.constant 0 : index
    %88 = vector.load %arg5[%c0_61, %c0_62, %c0_63] : memref<9x8x8xf32, #tpu.memory_space<vmem>>, vector<1x8x8xf32>
    %89 = vector.shape_cast %88 : vector<1x8x8xf32> to vector<8x8xf32>
    %cst_64 = arith.constant dense<0.000000e+00> : vector<8x512xf32>
    %90 = tpu.matmul %89, %87, %cst_64 {dimension_numbers = #tpu.dot_dimension_numbers<[1], [0], [0], [1], [0, 0, 1, 1], [], []>} : vector<8x8xf32>, vector<8x512xf32>, vector<8x512xf32> -> vector<8x512xf32>
    %91 = arith.addf %84, %90 : vector<8x512xf32>
    %c16_i32_65 = arith.constant 16 : i32
    %92 = tpu.dynamic_rotate %78 by %c16_i32_65 dim 1 : vector<8x512xf32>, i32 -> vector<8x512xf32>
    %93 = vector.broadcast %3 : vector<1x512xf32> to vector<8x512xf32>
    %94 = arith.mulf %92, %93 : vector<8x512xf32>
    %c1_66 = arith.constant 1 : index
    %c0_67 = arith.constant 0 : index
    %c0_68 = arith.constant 0 : index
    %95 = vector.load %arg5[%c1_66, %c0_67, %c0_68] : memref<9x8x8xf32, #tpu.memory_space<vmem>>, vector<1x8x8xf32>
    %96 = vector.shape_cast %95 : vector<1x8x8xf32> to vector<8x8xf32>
    %cst_69 = arith.constant dense<0.000000e+00> : vector<8x512xf32>
    %97 = tpu.matmul %96, %94, %cst_69 {dimension_numbers = #tpu.dot_dimension_numbers<[1], [0], [0], [1], [0, 0, 1, 1], [], []>} : vector<8x8xf32>, vector<8x512xf32>, vector<8x512xf32> -> vector<8x512xf32>
    %98 = arith.addf %91, %97 : vector<8x512xf32>
    %c15_i32_70 = arith.constant 15 : i32
    %99 = tpu.dynamic_rotate %78 by %c15_i32_70 dim 1 : vector<8x512xf32>, i32 -> vector<8x512xf32>
    %100 = vector.broadcast %5 : vector<1x512xf32> to vector<8x512xf32>
    %101 = arith.mulf %99, %100 : vector<8x512xf32>
    %c2_71 = arith.constant 2 : index
    %c0_72 = arith.constant 0 : index
    %c0_73 = arith.constant 0 : index
    %102 = vector.load %arg5[%c2_71, %c0_72, %c0_73] : memref<9x8x8xf32, #tpu.memory_space<vmem>>, vector<1x8x8xf32>
    %103 = vector.shape_cast %102 : vector<1x8x8xf32> to vector<8x8xf32>
    %cst_74 = arith.constant dense<0.000000e+00> : vector<8x512xf32>
    %104 = tpu.matmul %103, %101, %cst_74 {dimension_numbers = #tpu.dot_dimension_numbers<[1], [0], [0], [1], [0, 0, 1, 1], [], []>} : vector<8x8xf32>, vector<8x512xf32>, vector<8x512xf32> -> vector<8x512xf32>
    %105 = arith.addf %98, %104 : vector<8x512xf32>
    %c1_i32_75 = arith.constant 1 : i32
    %106 = tpu.dynamic_rotate %78 by %c1_i32_75 dim 1 : vector<8x512xf32>, i32 -> vector<8x512xf32>
    %107 = vector.broadcast %7 : vector<1x512xf32> to vector<8x512xf32>
    %108 = arith.mulf %106, %107 : vector<8x512xf32>
    %c3_76 = arith.constant 3 : index
    %c0_77 = arith.constant 0 : index
    %c0_78 = arith.constant 0 : index
    %109 = vector.load %arg5[%c3_76, %c0_77, %c0_78] : memref<9x8x8xf32, #tpu.memory_space<vmem>>, vector<1x8x8xf32>
    %110 = vector.shape_cast %109 : vector<1x8x8xf32> to vector<8x8xf32>
    %cst_79 = arith.constant dense<0.000000e+00> : vector<8x512xf32>
    %111 = tpu.matmul %110, %108, %cst_79 {dimension_numbers = #tpu.dot_dimension_numbers<[1], [0], [0], [1], [0, 0, 1, 1], [], []>} : vector<8x8xf32>, vector<8x512xf32>, vector<8x512xf32> -> vector<8x512xf32>
    %112 = arith.addf %105, %111 : vector<8x512xf32>
    %c511_i32_80 = arith.constant 511 : i32
    %113 = tpu.dynamic_rotate %78 by %c511_i32_80 dim 1 : vector<8x512xf32>, i32 -> vector<8x512xf32>
    %114 = vector.broadcast %9 : vector<1x512xf32> to vector<8x512xf32>
    %115 = arith.mulf %113, %114 : vector<8x512xf32>
    %c5_81 = arith.constant 5 : index
    %c0_82 = arith.constant 0 : index
    %c0_83 = arith.constant 0 : index
    %116 = vector.load %arg5[%c5_81, %c0_82, %c0_83] : memref<9x8x8xf32, #tpu.memory_space<vmem>>, vector<1x8x8xf32>
    %117 = vector.shape_cast %116 : vector<1x8x8xf32> to vector<8x8xf32>
    %cst_84 = arith.constant dense<0.000000e+00> : vector<8x512xf32>
    %118 = tpu.matmul %117, %115, %cst_84 {dimension_numbers = #tpu.dot_dimension_numbers<[1], [0], [0], [1], [0, 0, 1, 1], [], []>} : vector<8x8xf32>, vector<8x512xf32>, vector<8x512xf32> -> vector<8x512xf32>
    %119 = arith.addf %112, %118 : vector<8x512xf32>
    %c497_i32_85 = arith.constant 497 : i32
    %120 = tpu.dynamic_rotate %78 by %c497_i32_85 dim 1 : vector<8x512xf32>, i32 -> vector<8x512xf32>
    %121 = vector.broadcast %11 : vector<1x512xf32> to vector<8x512xf32>
    %122 = arith.mulf %120, %121 : vector<8x512xf32>
    %c6_86 = arith.constant 6 : index
    %c0_87 = arith.constant 0 : index
    %c0_88 = arith.constant 0 : index
    %123 = vector.load %arg5[%c6_86, %c0_87, %c0_88] : memref<9x8x8xf32, #tpu.memory_space<vmem>>, vector<1x8x8xf32>
    %124 = vector.shape_cast %123 : vector<1x8x8xf32> to vector<8x8xf32>
    %cst_89 = arith.constant dense<0.000000e+00> : vector<8x512xf32>
    %125 = tpu.matmul %124, %122, %cst_89 {dimension_numbers = #tpu.dot_dimension_numbers<[1], [0], [0], [1], [0, 0, 1, 1], [], []>} : vector<8x8xf32>, vector<8x512xf32>, vector<8x512xf32> -> vector<8x512xf32>
    %126 = arith.addf %119, %125 : vector<8x512xf32>
    %c496_i32_90 = arith.constant 496 : i32
    %127 = tpu.dynamic_rotate %78 by %c496_i32_90 dim 1 : vector<8x512xf32>, i32 -> vector<8x512xf32>
    %128 = vector.broadcast %13 : vector<1x512xf32> to vector<8x512xf32>
    %129 = arith.mulf %127, %128 : vector<8x512xf32>
    %c7_91 = arith.constant 7 : index
    %c0_92 = arith.constant 0 : index
    %c0_93 = arith.constant 0 : index
    %130 = vector.load %arg5[%c7_91, %c0_92, %c0_93] : memref<9x8x8xf32, #tpu.memory_space<vmem>>, vector<1x8x8xf32>
    %131 = vector.shape_cast %130 : vector<1x8x8xf32> to vector<8x8xf32>
    %cst_94 = arith.constant dense<0.000000e+00> : vector<8x512xf32>
    %132 = tpu.matmul %131, %129, %cst_94 {dimension_numbers = #tpu.dot_dimension_numbers<[1], [0], [0], [1], [0, 0, 1, 1], [], []>} : vector<8x8xf32>, vector<8x512xf32>, vector<8x512xf32> -> vector<8x512xf32>
    %133 = arith.addf %126, %132 : vector<8x512xf32>
    %c495_i32_95 = arith.constant 495 : i32
    %134 = tpu.dynamic_rotate %78 by %c495_i32_95 dim 1 : vector<8x512xf32>, i32 -> vector<8x512xf32>
    %135 = vector.broadcast %15 : vector<1x512xf32> to vector<8x512xf32>
    %136 = arith.mulf %134, %135 : vector<8x512xf32>
    %c8_96 = arith.constant 8 : index
    %c0_97 = arith.constant 0 : index
    %c0_98 = arith.constant 0 : index
    %137 = vector.load %arg5[%c8_96, %c0_97, %c0_98] : memref<9x8x8xf32, #tpu.memory_space<vmem>>, vector<1x8x8xf32>
    %138 = vector.shape_cast %137 : vector<1x8x8xf32> to vector<8x8xf32>
    %cst_99 = arith.constant dense<0.000000e+00> : vector<8x512xf32>
    %139 = tpu.matmul %138, %136, %cst_99 {dimension_numbers = #tpu.dot_dimension_numbers<[1], [0], [0], [1], [0, 0, 1, 1], [], []>} : vector<8x8xf32>, vector<8x512xf32>, vector<8x512xf32> -> vector<8x512xf32>
    %140 = arith.addf %133, %139 : vector<8x512xf32>
    %141 = tpu.concatenate %78, %140 in 0 : vector<8x512xf32>, vector<8x512xf32> -> vector<16x512xf32>
    %c0_100 = arith.constant 0 : index
    %c0_101 = arith.constant 0 : index
    %142 = vector.load %arg7[%c0_100, %c0_101] : memref<16x1xf32, #tpu.memory_space<vmem>>, vector<16x1xf32>
    %143 = vector.broadcast %142 : vector<16x1xf32> to vector<16x512xf32>
    %144 = arith.mulf %141, %143 : vector<16x512xf32>
    %c0_102 = arith.constant 0 : index
    %c0_103 = arith.constant 0 : index
    %145 = vector.load %arg8[%c0_102, %c0_103] : memref<16x1xf32, #tpu.memory_space<vmem>>, vector<16x1xf32>
    %146 = vector.broadcast %145 : vector<16x1xf32> to vector<16x512xf32>
    %147 = arith.addf %144, %146 : vector<16x512xf32>
    %cst_104 = arith.constant 0.000000e+00 : f32
    %148 = vector.broadcast %cst_104 : f32 to vector<16x512xf32>
    %149 = arith.maximumf %147, %148 : vector<16x512xf32>
    %c0_105 = arith.constant 0 : index
    %c0_106 = arith.constant 0 : index
    %150 = vector.load %arg10[%c0_105, %c0_106] : memref<8x1xf32, #tpu.memory_space<vmem>>, vector<8x1xf32>
    %c4_107 = arith.constant 4 : index
    %c0_108 = arith.constant 0 : index
    %c0_109 = arith.constant 0 : index
    %151 = vector.load %arg9[%c4_107, %c0_108, %c0_109] : memref<9x8x16xf32, #tpu.memory_space<vmem>>, vector<1x8x16xf32>
    %152 = vector.shape_cast %151 : vector<1x8x16xf32> to vector<8x16xf32>
    %cst_110 = arith.constant dense<0.000000e+00> : vector<8x512xf32>
    %153 = tpu.matmul %152, %149, %cst_110 {dimension_numbers = #tpu.dot_dimension_numbers<[1], [0], [0], [1], [0, 0, 1, 1], [], []>} : vector<8x16xf32>, vector<16x512xf32>, vector<8x512xf32> -> vector<8x512xf32>
    %154 = vector.broadcast %150 : vector<8x1xf32> to vector<8x512xf32>
    %155 = arith.addf %154, %153 : vector<8x512xf32>
    %c17_i32_111 = arith.constant 17 : i32
    %156 = tpu.dynamic_rotate %149 by %c17_i32_111 dim 1 : vector<16x512xf32>, i32 -> vector<16x512xf32>
    %157 = vector.broadcast %1 : vector<1x512xf32> to vector<16x512xf32>
    %158 = arith.mulf %156, %157 : vector<16x512xf32>
    %c0_112 = arith.constant 0 : index
    %c0_113 = arith.constant 0 : index
    %c0_114 = arith.constant 0 : index
    %159 = vector.load %arg9[%c0_112, %c0_113, %c0_114] : memref<9x8x16xf32, #tpu.memory_space<vmem>>, vector<1x8x16xf32>
    %160 = vector.shape_cast %159 : vector<1x8x16xf32> to vector<8x16xf32>
    %cst_115 = arith.constant dense<0.000000e+00> : vector<8x512xf32>
    %161 = tpu.matmul %160, %158, %cst_115 {dimension_numbers = #tpu.dot_dimension_numbers<[1], [0], [0], [1], [0, 0, 1, 1], [], []>} : vector<8x16xf32>, vector<16x512xf32>, vector<8x512xf32> -> vector<8x512xf32>
    %162 = arith.addf %155, %161 : vector<8x512xf32>
    %c16_i32_116 = arith.constant 16 : i32
    %163 = tpu.dynamic_rotate %149 by %c16_i32_116 dim 1 : vector<16x512xf32>, i32 -> vector<16x512xf32>
    %164 = vector.broadcast %3 : vector<1x512xf32> to vector<16x512xf32>
    %165 = arith.mulf %163, %164 : vector<16x512xf32>
    %c1_117 = arith.constant 1 : index
    %c0_118 = arith.constant 0 : index
    %c0_119 = arith.constant 0 : index
    %166 = vector.load %arg9[%c1_117, %c0_118, %c0_119] : memref<9x8x16xf32, #tpu.memory_space<vmem>>, vector<1x8x16xf32>
    %167 = vector.shape_cast %166 : vector<1x8x16xf32> to vector<8x16xf32>
    %cst_120 = arith.constant dense<0.000000e+00> : vector<8x512xf32>
    %168 = tpu.matmul %167, %165, %cst_120 {dimension_numbers = #tpu.dot_dimension_numbers<[1], [0], [0], [1], [0, 0, 1, 1], [], []>} : vector<8x16xf32>, vector<16x512xf32>, vector<8x512xf32> -> vector<8x512xf32>
    %169 = arith.addf %162, %168 : vector<8x512xf32>
    %c15_i32_121 = arith.constant 15 : i32
    %170 = tpu.dynamic_rotate %149 by %c15_i32_121 dim 1 : vector<16x512xf32>, i32 -> vector<16x512xf32>
    %171 = vector.broadcast %5 : vector<1x512xf32> to vector<16x512xf32>
    %172 = arith.mulf %170, %171 : vector<16x512xf32>
    %c2_122 = arith.constant 2 : index
    %c0_123 = arith.constant 0 : index
    %c0_124 = arith.constant 0 : index
    %173 = vector.load %arg9[%c2_122, %c0_123, %c0_124] : memref<9x8x16xf32, #tpu.memory_space<vmem>>, vector<1x8x16xf32>
    %174 = vector.shape_cast %173 : vector<1x8x16xf32> to vector<8x16xf32>
    %cst_125 = arith.constant dense<0.000000e+00> : vector<8x512xf32>
    %175 = tpu.matmul %174, %172, %cst_125 {dimension_numbers = #tpu.dot_dimension_numbers<[1], [0], [0], [1], [0, 0, 1, 1], [], []>} : vector<8x16xf32>, vector<16x512xf32>, vector<8x512xf32> -> vector<8x512xf32>
    %176 = arith.addf %169, %175 : vector<8x512xf32>
    %c1_i32_126 = arith.constant 1 : i32
    %177 = tpu.dynamic_rotate %149 by %c1_i32_126 dim 1 : vector<16x512xf32>, i32 -> vector<16x512xf32>
    %178 = vector.broadcast %7 : vector<1x512xf32> to vector<16x512xf32>
    %179 = arith.mulf %177, %178 : vector<16x512xf32>
    %c3_127 = arith.constant 3 : index
    %c0_128 = arith.constant 0 : index
    %c0_129 = arith.constant 0 : index
    %180 = vector.load %arg9[%c3_127, %c0_128, %c0_129] : memref<9x8x16xf32, #tpu.memory_space<vmem>>, vector<1x8x16xf32>
    %181 = vector.shape_cast %180 : vector<1x8x16xf32> to vector<8x16xf32>
    %cst_130 = arith.constant dense<0.000000e+00> : vector<8x512xf32>
    %182 = tpu.matmul %181, %179, %cst_130 {dimension_numbers = #tpu.dot_dimension_numbers<[1], [0], [0], [1], [0, 0, 1, 1], [], []>} : vector<8x16xf32>, vector<16x512xf32>, vector<8x512xf32> -> vector<8x512xf32>
    %183 = arith.addf %176, %182 : vector<8x512xf32>
    %c511_i32_131 = arith.constant 511 : i32
    %184 = tpu.dynamic_rotate %149 by %c511_i32_131 dim 1 : vector<16x512xf32>, i32 -> vector<16x512xf32>
    %185 = vector.broadcast %9 : vector<1x512xf32> to vector<16x512xf32>
    %186 = arith.mulf %184, %185 : vector<16x512xf32>
    %c5_132 = arith.constant 5 : index
    %c0_133 = arith.constant 0 : index
    %c0_134 = arith.constant 0 : index
    %187 = vector.load %arg9[%c5_132, %c0_133, %c0_134] : memref<9x8x16xf32, #tpu.memory_space<vmem>>, vector<1x8x16xf32>
    %188 = vector.shape_cast %187 : vector<1x8x16xf32> to vector<8x16xf32>
    %cst_135 = arith.constant dense<0.000000e+00> : vector<8x512xf32>
    %189 = tpu.matmul %188, %186, %cst_135 {dimension_numbers = #tpu.dot_dimension_numbers<[1], [0], [0], [1], [0, 0, 1, 1], [], []>} : vector<8x16xf32>, vector<16x512xf32>, vector<8x512xf32> -> vector<8x512xf32>
    %190 = arith.addf %183, %189 : vector<8x512xf32>
    %c497_i32_136 = arith.constant 497 : i32
    %191 = tpu.dynamic_rotate %149 by %c497_i32_136 dim 1 : vector<16x512xf32>, i32 -> vector<16x512xf32>
    %192 = vector.broadcast %11 : vector<1x512xf32> to vector<16x512xf32>
    %193 = arith.mulf %191, %192 : vector<16x512xf32>
    %c6_137 = arith.constant 6 : index
    %c0_138 = arith.constant 0 : index
    %c0_139 = arith.constant 0 : index
    %194 = vector.load %arg9[%c6_137, %c0_138, %c0_139] : memref<9x8x16xf32, #tpu.memory_space<vmem>>, vector<1x8x16xf32>
    %195 = vector.shape_cast %194 : vector<1x8x16xf32> to vector<8x16xf32>
    %cst_140 = arith.constant dense<0.000000e+00> : vector<8x512xf32>
    %196 = tpu.matmul %195, %193, %cst_140 {dimension_numbers = #tpu.dot_dimension_numbers<[1], [0], [0], [1], [0, 0, 1, 1], [], []>} : vector<8x16xf32>, vector<16x512xf32>, vector<8x512xf32> -> vector<8x512xf32>
    %197 = arith.addf %190, %196 : vector<8x512xf32>
    %c496_i32_141 = arith.constant 496 : i32
    %198 = tpu.dynamic_rotate %149 by %c496_i32_141 dim 1 : vector<16x512xf32>, i32 -> vector<16x512xf32>
    %199 = vector.broadcast %13 : vector<1x512xf32> to vector<16x512xf32>
    %200 = arith.mulf %198, %199 : vector<16x512xf32>
    %c7_142 = arith.constant 7 : index
    %c0_143 = arith.constant 0 : index
    %c0_144 = arith.constant 0 : index
    %201 = vector.load %arg9[%c7_142, %c0_143, %c0_144] : memref<9x8x16xf32, #tpu.memory_space<vmem>>, vector<1x8x16xf32>
    %202 = vector.shape_cast %201 : vector<1x8x16xf32> to vector<8x16xf32>
    %cst_145 = arith.constant dense<0.000000e+00> : vector<8x512xf32>
    %203 = tpu.matmul %202, %200, %cst_145 {dimension_numbers = #tpu.dot_dimension_numbers<[1], [0], [0], [1], [0, 0, 1, 1], [], []>} : vector<8x16xf32>, vector<16x512xf32>, vector<8x512xf32> -> vector<8x512xf32>
    %204 = arith.addf %197, %203 : vector<8x512xf32>
    %c495_i32_146 = arith.constant 495 : i32
    %205 = tpu.dynamic_rotate %149 by %c495_i32_146 dim 1 : vector<16x512xf32>, i32 -> vector<16x512xf32>
    %206 = vector.broadcast %15 : vector<1x512xf32> to vector<16x512xf32>
    %207 = arith.mulf %205, %206 : vector<16x512xf32>
    %c8_147 = arith.constant 8 : index
    %c0_148 = arith.constant 0 : index
    %c0_149 = arith.constant 0 : index
    %208 = vector.load %arg9[%c8_147, %c0_148, %c0_149] : memref<9x8x16xf32, #tpu.memory_space<vmem>>, vector<1x8x16xf32>
    %209 = vector.shape_cast %208 : vector<1x8x16xf32> to vector<8x16xf32>
    %cst_150 = arith.constant dense<0.000000e+00> : vector<8x512xf32>
    %210 = tpu.matmul %209, %207, %cst_150 {dimension_numbers = #tpu.dot_dimension_numbers<[1], [0], [0], [1], [0, 0, 1, 1], [], []>} : vector<8x16xf32>, vector<16x512xf32>, vector<8x512xf32> -> vector<8x512xf32>
    %211 = arith.addf %204, %210 : vector<8x512xf32>
    %212 = tpu.concatenate %78, %140, %211 in 0 : vector<8x512xf32>, vector<8x512xf32>, vector<8x512xf32> -> vector<24x512xf32>
    %c0_151 = arith.constant 0 : index
    %c0_152 = arith.constant 0 : index
    %213 = vector.load %arg11[%c0_151, %c0_152] : memref<24x1xf32, #tpu.memory_space<vmem>>, vector<24x1xf32>
    %214 = vector.broadcast %213 : vector<24x1xf32> to vector<24x512xf32>
    %215 = arith.mulf %212, %214 : vector<24x512xf32>
    %c0_153 = arith.constant 0 : index
    %c0_154 = arith.constant 0 : index
    %216 = vector.load %arg12[%c0_153, %c0_154] : memref<24x1xf32, #tpu.memory_space<vmem>>, vector<24x1xf32>
    %217 = vector.broadcast %216 : vector<24x1xf32> to vector<24x512xf32>
    %218 = arith.addf %215, %217 : vector<24x512xf32>
    %cst_155 = arith.constant 0.000000e+00 : f32
    %219 = vector.broadcast %cst_155 : f32 to vector<24x512xf32>
    %220 = arith.maximumf %218, %219 : vector<24x512xf32>
    %c0_156 = arith.constant 0 : index
    %c0_157 = arith.constant 0 : index
    %221 = vector.load %arg14[%c0_156, %c0_157] : memref<8x1xf32, #tpu.memory_space<vmem>>, vector<8x1xf32>
    %c4_158 = arith.constant 4 : index
    %c0_159 = arith.constant 0 : index
    %c0_160 = arith.constant 0 : index
    %222 = vector.load %arg13[%c4_158, %c0_159, %c0_160] : memref<9x8x24xf32, #tpu.memory_space<vmem>>, vector<1x8x24xf32>
    %223 = vector.shape_cast %222 : vector<1x8x24xf32> to vector<8x24xf32>
    %cst_161 = arith.constant dense<0.000000e+00> : vector<8x512xf32>
    %224 = tpu.matmul %223, %220, %cst_161 {dimension_numbers = #tpu.dot_dimension_numbers<[1], [0], [0], [1], [0, 0, 1, 1], [], []>} : vector<8x24xf32>, vector<24x512xf32>, vector<8x512xf32> -> vector<8x512xf32>
    %225 = vector.broadcast %221 : vector<8x1xf32> to vector<8x512xf32>
    %226 = arith.addf %225, %224 : vector<8x512xf32>
    %c17_i32_162 = arith.constant 17 : i32
    %227 = tpu.dynamic_rotate %220 by %c17_i32_162 dim 1 : vector<24x512xf32>, i32 -> vector<24x512xf32>
    %228 = vector.broadcast %1 : vector<1x512xf32> to vector<24x512xf32>
    %229 = arith.mulf %227, %228 : vector<24x512xf32>
    %c0_163 = arith.constant 0 : index
    %c0_164 = arith.constant 0 : index
    %c0_165 = arith.constant 0 : index
    %230 = vector.load %arg13[%c0_163, %c0_164, %c0_165] : memref<9x8x24xf32, #tpu.memory_space<vmem>>, vector<1x8x24xf32>
    %231 = vector.shape_cast %230 : vector<1x8x24xf32> to vector<8x24xf32>
    %cst_166 = arith.constant dense<0.000000e+00> : vector<8x512xf32>
    %232 = tpu.matmul %231, %229, %cst_166 {dimension_numbers = #tpu.dot_dimension_numbers<[1], [0], [0], [1], [0, 0, 1, 1], [], []>} : vector<8x24xf32>, vector<24x512xf32>, vector<8x512xf32> -> vector<8x512xf32>
    %233 = arith.addf %226, %232 : vector<8x512xf32>
    %c16_i32_167 = arith.constant 16 : i32
    %234 = tpu.dynamic_rotate %220 by %c16_i32_167 dim 1 : vector<24x512xf32>, i32 -> vector<24x512xf32>
    %235 = vector.broadcast %3 : vector<1x512xf32> to vector<24x512xf32>
    %236 = arith.mulf %234, %235 : vector<24x512xf32>
    %c1_168 = arith.constant 1 : index
    %c0_169 = arith.constant 0 : index
    %c0_170 = arith.constant 0 : index
    %237 = vector.load %arg13[%c1_168, %c0_169, %c0_170] : memref<9x8x24xf32, #tpu.memory_space<vmem>>, vector<1x8x24xf32>
    %238 = vector.shape_cast %237 : vector<1x8x24xf32> to vector<8x24xf32>
    %cst_171 = arith.constant dense<0.000000e+00> : vector<8x512xf32>
    %239 = tpu.matmul %238, %236, %cst_171 {dimension_numbers = #tpu.dot_dimension_numbers<[1], [0], [0], [1], [0, 0, 1, 1], [], []>} : vector<8x24xf32>, vector<24x512xf32>, vector<8x512xf32> -> vector<8x512xf32>
    %240 = arith.addf %233, %239 : vector<8x512xf32>
    %c15_i32_172 = arith.constant 15 : i32
    %241 = tpu.dynamic_rotate %220 by %c15_i32_172 dim 1 : vector<24x512xf32>, i32 -> vector<24x512xf32>
    %242 = vector.broadcast %5 : vector<1x512xf32> to vector<24x512xf32>
    %243 = arith.mulf %241, %242 : vector<24x512xf32>
    %c2_173 = arith.constant 2 : index
    %c0_174 = arith.constant 0 : index
    %c0_175 = arith.constant 0 : index
    %244 = vector.load %arg13[%c2_173, %c0_174, %c0_175] : memref<9x8x24xf32, #tpu.memory_space<vmem>>, vector<1x8x24xf32>
    %245 = vector.shape_cast %244 : vector<1x8x24xf32> to vector<8x24xf32>
    %cst_176 = arith.constant dense<0.000000e+00> : vector<8x512xf32>
    %246 = tpu.matmul %245, %243, %cst_176 {dimension_numbers = #tpu.dot_dimension_numbers<[1], [0], [0], [1], [0, 0, 1, 1], [], []>} : vector<8x24xf32>, vector<24x512xf32>, vector<8x512xf32> -> vector<8x512xf32>
    %247 = arith.addf %240, %246 : vector<8x512xf32>
    %c1_i32_177 = arith.constant 1 : i32
    %248 = tpu.dynamic_rotate %220 by %c1_i32_177 dim 1 : vector<24x512xf32>, i32 -> vector<24x512xf32>
    %249 = vector.broadcast %7 : vector<1x512xf32> to vector<24x512xf32>
    %250 = arith.mulf %248, %249 : vector<24x512xf32>
    %c3_178 = arith.constant 3 : index
    %c0_179 = arith.constant 0 : index
    %c0_180 = arith.constant 0 : index
    %251 = vector.load %arg13[%c3_178, %c0_179, %c0_180] : memref<9x8x24xf32, #tpu.memory_space<vmem>>, vector<1x8x24xf32>
    %252 = vector.shape_cast %251 : vector<1x8x24xf32> to vector<8x24xf32>
    %cst_181 = arith.constant dense<0.000000e+00> : vector<8x512xf32>
    %253 = tpu.matmul %252, %250, %cst_181 {dimension_numbers = #tpu.dot_dimension_numbers<[1], [0], [0], [1], [0, 0, 1, 1], [], []>} : vector<8x24xf32>, vector<24x512xf32>, vector<8x512xf32> -> vector<8x512xf32>
    %254 = arith.addf %247, %253 : vector<8x512xf32>
    %c511_i32_182 = arith.constant 511 : i32
    %255 = tpu.dynamic_rotate %220 by %c511_i32_182 dim 1 : vector<24x512xf32>, i32 -> vector<24x512xf32>
    %256 = vector.broadcast %9 : vector<1x512xf32> to vector<24x512xf32>
    %257 = arith.mulf %255, %256 : vector<24x512xf32>
    %c5_183 = arith.constant 5 : index
    %c0_184 = arith.constant 0 : index
    %c0_185 = arith.constant 0 : index
    %258 = vector.load %arg13[%c5_183, %c0_184, %c0_185] : memref<9x8x24xf32, #tpu.memory_space<vmem>>, vector<1x8x24xf32>
    %259 = vector.shape_cast %258 : vector<1x8x24xf32> to vector<8x24xf32>
    %cst_186 = arith.constant dense<0.000000e+00> : vector<8x512xf32>
    %260 = tpu.matmul %259, %257, %cst_186 {dimension_numbers = #tpu.dot_dimension_numbers<[1], [0], [0], [1], [0, 0, 1, 1], [], []>} : vector<8x24xf32>, vector<24x512xf32>, vector<8x512xf32> -> vector<8x512xf32>
    %261 = arith.addf %254, %260 : vector<8x512xf32>
    %c497_i32_187 = arith.constant 497 : i32
    %262 = tpu.dynamic_rotate %220 by %c497_i32_187 dim 1 : vector<24x512xf32>, i32 -> vector<24x512xf32>
    %263 = vector.broadcast %11 : vector<1x512xf32> to vector<24x512xf32>
    %264 = arith.mulf %262, %263 : vector<24x512xf32>
    %c6_188 = arith.constant 6 : index
    %c0_189 = arith.constant 0 : index
    %c0_190 = arith.constant 0 : index
    %265 = vector.load %arg13[%c6_188, %c0_189, %c0_190] : memref<9x8x24xf32, #tpu.memory_space<vmem>>, vector<1x8x24xf32>
    %266 = vector.shape_cast %265 : vector<1x8x24xf32> to vector<8x24xf32>
    %cst_191 = arith.constant dense<0.000000e+00> : vector<8x512xf32>
    %267 = tpu.matmul %266, %264, %cst_191 {dimension_numbers = #tpu.dot_dimension_numbers<[1], [0], [0], [1], [0, 0, 1, 1], [], []>} : vector<8x24xf32>, vector<24x512xf32>, vector<8x512xf32> -> vector<8x512xf32>
    %268 = arith.addf %261, %267 : vector<8x512xf32>
    %c496_i32_192 = arith.constant 496 : i32
    %269 = tpu.dynamic_rotate %220 by %c496_i32_192 dim 1 : vector<24x512xf32>, i32 -> vector<24x512xf32>
    %270 = vector.broadcast %13 : vector<1x512xf32> to vector<24x512xf32>
    %271 = arith.mulf %269, %270 : vector<24x512xf32>
    %c7_193 = arith.constant 7 : index
    %c0_194 = arith.constant 0 : index
    %c0_195 = arith.constant 0 : index
    %272 = vector.load %arg13[%c7_193, %c0_194, %c0_195] : memref<9x8x24xf32, #tpu.memory_space<vmem>>, vector<1x8x24xf32>
    %273 = vector.shape_cast %272 : vector<1x8x24xf32> to vector<8x24xf32>
    %cst_196 = arith.constant dense<0.000000e+00> : vector<8x512xf32>
    %274 = tpu.matmul %273, %271, %cst_196 {dimension_numbers = #tpu.dot_dimension_numbers<[1], [0], [0], [1], [0, 0, 1, 1], [], []>} : vector<8x24xf32>, vector<24x512xf32>, vector<8x512xf32> -> vector<8x512xf32>
    %275 = arith.addf %268, %274 : vector<8x512xf32>
    %c495_i32_197 = arith.constant 495 : i32
    %276 = tpu.dynamic_rotate %220 by %c495_i32_197 dim 1 : vector<24x512xf32>, i32 -> vector<24x512xf32>
    %277 = vector.broadcast %15 : vector<1x512xf32> to vector<24x512xf32>
    %278 = arith.mulf %276, %277 : vector<24x512xf32>
    %c8_198 = arith.constant 8 : index
    %c0_199 = arith.constant 0 : index
    %c0_200 = arith.constant 0 : index
    %279 = vector.load %arg13[%c8_198, %c0_199, %c0_200] : memref<9x8x24xf32, #tpu.memory_space<vmem>>, vector<1x8x24xf32>
    %280 = vector.shape_cast %279 : vector<1x8x24xf32> to vector<8x24xf32>
    %cst_201 = arith.constant dense<0.000000e+00> : vector<8x512xf32>
    %281 = tpu.matmul %280, %278, %cst_201 {dimension_numbers = #tpu.dot_dimension_numbers<[1], [0], [0], [1], [0, 0, 1, 1], [], []>} : vector<8x24xf32>, vector<24x512xf32>, vector<8x512xf32> -> vector<8x512xf32>
    %282 = arith.addf %275, %281 : vector<8x512xf32>
    %283 = tpu.concatenate %78, %140, %211, %282 in 0 : vector<8x512xf32>, vector<8x512xf32>, vector<8x512xf32>, vector<8x512xf32> -> vector<32x512xf32>
    %c0_202 = arith.constant 0 : index
    %c0_203 = arith.constant 0 : index
    %284 = vector.load %arg15[%c0_202, %c0_203] : memref<32x1xf32, #tpu.memory_space<vmem>>, vector<32x1xf32>
    %285 = vector.broadcast %284 : vector<32x1xf32> to vector<32x512xf32>
    %286 = arith.mulf %283, %285 : vector<32x512xf32>
    %c0_204 = arith.constant 0 : index
    %c0_205 = arith.constant 0 : index
    %287 = vector.load %arg16[%c0_204, %c0_205] : memref<32x1xf32, #tpu.memory_space<vmem>>, vector<32x1xf32>
    %288 = vector.broadcast %287 : vector<32x1xf32> to vector<32x512xf32>
    %289 = arith.addf %286, %288 : vector<32x512xf32>
    %cst_206 = arith.constant 0.000000e+00 : f32
    %290 = vector.broadcast %cst_206 : f32 to vector<32x512xf32>
    %291 = arith.maximumf %289, %290 : vector<32x512xf32>
    %c0_207 = arith.constant 0 : index
    %c0_208 = arith.constant 0 : index
    %292 = vector.load %arg18[%c0_207, %c0_208] : memref<32x1xf32, #tpu.memory_space<vmem>>, vector<32x1xf32>
    %c4_209 = arith.constant 4 : index
    %c0_210 = arith.constant 0 : index
    %c0_211 = arith.constant 0 : index
    %293 = vector.load %arg17[%c4_209, %c0_210, %c0_211] : memref<9x32x32xf32, #tpu.memory_space<vmem>>, vector<1x32x32xf32>
    %294 = vector.shape_cast %293 : vector<1x32x32xf32> to vector<32x32xf32>
    %cst_212 = arith.constant dense<0.000000e+00> : vector<32x512xf32>
    %295 = tpu.matmul %294, %291, %cst_212 {dimension_numbers = #tpu.dot_dimension_numbers<[1], [0], [0], [1], [0, 0, 1, 1], [], []>} : vector<32x32xf32>, vector<32x512xf32>, vector<32x512xf32> -> vector<32x512xf32>
    %296 = vector.broadcast %292 : vector<32x1xf32> to vector<32x512xf32>
    %297 = arith.addf %296, %295 : vector<32x512xf32>
    %c17_i32_213 = arith.constant 17 : i32
    %298 = tpu.dynamic_rotate %291 by %c17_i32_213 dim 1 : vector<32x512xf32>, i32 -> vector<32x512xf32>
    %299 = vector.broadcast %1 : vector<1x512xf32> to vector<32x512xf32>
    %300 = arith.mulf %298, %299 : vector<32x512xf32>
    %c0_214 = arith.constant 0 : index
    %c0_215 = arith.constant 0 : index
    %c0_216 = arith.constant 0 : index
    %301 = vector.load %arg17[%c0_214, %c0_215, %c0_216] : memref<9x32x32xf32, #tpu.memory_space<vmem>>, vector<1x32x32xf32>
    %302 = vector.shape_cast %301 : vector<1x32x32xf32> to vector<32x32xf32>
    %cst_217 = arith.constant dense<0.000000e+00> : vector<32x512xf32>
    %303 = tpu.matmul %302, %300, %cst_217 {dimension_numbers = #tpu.dot_dimension_numbers<[1], [0], [0], [1], [0, 0, 1, 1], [], []>} : vector<32x32xf32>, vector<32x512xf32>, vector<32x512xf32> -> vector<32x512xf32>
    %304 = arith.addf %297, %303 : vector<32x512xf32>
    %c16_i32_218 = arith.constant 16 : i32
    %305 = tpu.dynamic_rotate %291 by %c16_i32_218 dim 1 : vector<32x512xf32>, i32 -> vector<32x512xf32>
    %306 = vector.broadcast %3 : vector<1x512xf32> to vector<32x512xf32>
    %307 = arith.mulf %305, %306 : vector<32x512xf32>
    %c1_219 = arith.constant 1 : index
    %c0_220 = arith.constant 0 : index
    %c0_221 = arith.constant 0 : index
    %308 = vector.load %arg17[%c1_219, %c0_220, %c0_221] : memref<9x32x32xf32, #tpu.memory_space<vmem>>, vector<1x32x32xf32>
    %309 = vector.shape_cast %308 : vector<1x32x32xf32> to vector<32x32xf32>
    %cst_222 = arith.constant dense<0.000000e+00> : vector<32x512xf32>
    %310 = tpu.matmul %309, %307, %cst_222 {dimension_numbers = #tpu.dot_dimension_numbers<[1], [0], [0], [1], [0, 0, 1, 1], [], []>} : vector<32x32xf32>, vector<32x512xf32>, vector<32x512xf32> -> vector<32x512xf32>
    %311 = arith.addf %304, %310 : vector<32x512xf32>
    %c15_i32_223 = arith.constant 15 : i32
    %312 = tpu.dynamic_rotate %291 by %c15_i32_223 dim 1 : vector<32x512xf32>, i32 -> vector<32x512xf32>
    %313 = vector.broadcast %5 : vector<1x512xf32> to vector<32x512xf32>
    %314 = arith.mulf %312, %313 : vector<32x512xf32>
    %c2_224 = arith.constant 2 : index
    %c0_225 = arith.constant 0 : index
    %c0_226 = arith.constant 0 : index
    %315 = vector.load %arg17[%c2_224, %c0_225, %c0_226] : memref<9x32x32xf32, #tpu.memory_space<vmem>>, vector<1x32x32xf32>
    %316 = vector.shape_cast %315 : vector<1x32x32xf32> to vector<32x32xf32>
    %cst_227 = arith.constant dense<0.000000e+00> : vector<32x512xf32>
    %317 = tpu.matmul %316, %314, %cst_227 {dimension_numbers = #tpu.dot_dimension_numbers<[1], [0], [0], [1], [0, 0, 1, 1], [], []>} : vector<32x32xf32>, vector<32x512xf32>, vector<32x512xf32> -> vector<32x512xf32>
    %318 = arith.addf %311, %317 : vector<32x512xf32>
    %c1_i32_228 = arith.constant 1 : i32
    %319 = tpu.dynamic_rotate %291 by %c1_i32_228 dim 1 : vector<32x512xf32>, i32 -> vector<32x512xf32>
    %320 = vector.broadcast %7 : vector<1x512xf32> to vector<32x512xf32>
    %321 = arith.mulf %319, %320 : vector<32x512xf32>
    %c3_229 = arith.constant 3 : index
    %c0_230 = arith.constant 0 : index
    %c0_231 = arith.constant 0 : index
    %322 = vector.load %arg17[%c3_229, %c0_230, %c0_231] : memref<9x32x32xf32, #tpu.memory_space<vmem>>, vector<1x32x32xf32>
    %323 = vector.shape_cast %322 : vector<1x32x32xf32> to vector<32x32xf32>
    %cst_232 = arith.constant dense<0.000000e+00> : vector<32x512xf32>
    %324 = tpu.matmul %323, %321, %cst_232 {dimension_numbers = #tpu.dot_dimension_numbers<[1], [0], [0], [1], [0, 0, 1, 1], [], []>} : vector<32x32xf32>, vector<32x512xf32>, vector<32x512xf32> -> vector<32x512xf32>
    %325 = arith.addf %318, %324 : vector<32x512xf32>
    %c511_i32_233 = arith.constant 511 : i32
    %326 = tpu.dynamic_rotate %291 by %c511_i32_233 dim 1 : vector<32x512xf32>, i32 -> vector<32x512xf32>
    %327 = vector.broadcast %9 : vector<1x512xf32> to vector<32x512xf32>
    %328 = arith.mulf %326, %327 : vector<32x512xf32>
    %c5_234 = arith.constant 5 : index
    %c0_235 = arith.constant 0 : index
    %c0_236 = arith.constant 0 : index
    %329 = vector.load %arg17[%c5_234, %c0_235, %c0_236] : memref<9x32x32xf32, #tpu.memory_space<vmem>>, vector<1x32x32xf32>
    %330 = vector.shape_cast %329 : vector<1x32x32xf32> to vector<32x32xf32>
    %cst_237 = arith.constant dense<0.000000e+00> : vector<32x512xf32>
    %331 = tpu.matmul %330, %328, %cst_237 {dimension_numbers = #tpu.dot_dimension_numbers<[1], [0], [0], [1], [0, 0, 1, 1], [], []>} : vector<32x32xf32>, vector<32x512xf32>, vector<32x512xf32> -> vector<32x512xf32>
    %332 = arith.addf %325, %331 : vector<32x512xf32>
    %c497_i32_238 = arith.constant 497 : i32
    %333 = tpu.dynamic_rotate %291 by %c497_i32_238 dim 1 : vector<32x512xf32>, i32 -> vector<32x512xf32>
    %334 = vector.broadcast %11 : vector<1x512xf32> to vector<32x512xf32>
    %335 = arith.mulf %333, %334 : vector<32x512xf32>
    %c6_239 = arith.constant 6 : index
    %c0_240 = arith.constant 0 : index
    %c0_241 = arith.constant 0 : index
    %336 = vector.load %arg17[%c6_239, %c0_240, %c0_241] : memref<9x32x32xf32, #tpu.memory_space<vmem>>, vector<1x32x32xf32>
    %337 = vector.shape_cast %336 : vector<1x32x32xf32> to vector<32x32xf32>
    %cst_242 = arith.constant dense<0.000000e+00> : vector<32x512xf32>
    %338 = tpu.matmul %337, %335, %cst_242 {dimension_numbers = #tpu.dot_dimension_numbers<[1], [0], [0], [1], [0, 0, 1, 1], [], []>} : vector<32x32xf32>, vector<32x512xf32>, vector<32x512xf32> -> vector<32x512xf32>
    %339 = arith.addf %332, %338 : vector<32x512xf32>
    %c496_i32_243 = arith.constant 496 : i32
    %340 = tpu.dynamic_rotate %291 by %c496_i32_243 dim 1 : vector<32x512xf32>, i32 -> vector<32x512xf32>
    %341 = vector.broadcast %13 : vector<1x512xf32> to vector<32x512xf32>
    %342 = arith.mulf %340, %341 : vector<32x512xf32>
    %c7_244 = arith.constant 7 : index
    %c0_245 = arith.constant 0 : index
    %c0_246 = arith.constant 0 : index
    %343 = vector.load %arg17[%c7_244, %c0_245, %c0_246] : memref<9x32x32xf32, #tpu.memory_space<vmem>>, vector<1x32x32xf32>
    %344 = vector.shape_cast %343 : vector<1x32x32xf32> to vector<32x32xf32>
    %cst_247 = arith.constant dense<0.000000e+00> : vector<32x512xf32>
    %345 = tpu.matmul %344, %342, %cst_247 {dimension_numbers = #tpu.dot_dimension_numbers<[1], [0], [0], [1], [0, 0, 1, 1], [], []>} : vector<32x32xf32>, vector<32x512xf32>, vector<32x512xf32> -> vector<32x512xf32>
    %346 = arith.addf %339, %345 : vector<32x512xf32>
    %c495_i32_248 = arith.constant 495 : i32
    %347 = tpu.dynamic_rotate %291 by %c495_i32_248 dim 1 : vector<32x512xf32>, i32 -> vector<32x512xf32>
    %348 = vector.broadcast %15 : vector<1x512xf32> to vector<32x512xf32>
    %349 = arith.mulf %347, %348 : vector<32x512xf32>
    %c8_249 = arith.constant 8 : index
    %c0_250 = arith.constant 0 : index
    %c0_251 = arith.constant 0 : index
    %350 = vector.load %arg17[%c8_249, %c0_250, %c0_251] : memref<9x32x32xf32, #tpu.memory_space<vmem>>, vector<1x32x32xf32>
    %351 = vector.shape_cast %350 : vector<1x32x32xf32> to vector<32x32xf32>
    %cst_252 = arith.constant dense<0.000000e+00> : vector<32x512xf32>
    %352 = tpu.matmul %351, %349, %cst_252 {dimension_numbers = #tpu.dot_dimension_numbers<[1], [0], [0], [1], [0, 0, 1, 1], [], []>} : vector<32x32xf32>, vector<32x512xf32>, vector<32x512xf32> -> vector<32x512xf32>
    %353 = arith.addf %346, %352 : vector<32x512xf32>
    %c0_253 = arith.constant 0 : index
    %c0_254 = arith.constant 0 : index
    %354 = vector.load %arg19[%c0_253, %c0_254] : memref<32x512xf32, #tpu.memory_space<vmem>>, vector<32x512xf32>
    tpu.vector_store %arg19[%c0_253, %c0_254], %353 {strides = array<i32>} : memref<32x512xf32, #tpu.memory_space<vmem>>, vector<32x512xf32>,
    return
  }
  func.func @transform_0(%arg0: i32) -> (i32, i32) {
    %c0_i32 = arith.constant 0 : i32
    %c0_i32_0 = arith.constant 0 : i32
    return %c0_i32, %arg0 : i32, i32
  }
  func.func @transform_1(%arg0: i32) -> (i32, i32, i32) {
    %c0_i32 = arith.constant 0 : i32
    %c0_i32_0 = arith.constant 0 : i32
    %c0_i32_1 = arith.constant 0 : i32
    %c0_i32_2 = arith.constant 0 : i32
    return %c0_i32, %c0_i32_0, %c0_i32_1 : i32, i32, i32
  }
  func.func @transform_2(%arg0: i32) -> (i32, i32, i32) {
    %c0_i32 = arith.constant 0 : i32
    %c0_i32_0 = arith.constant 0 : i32
    %c0_i32_1 = arith.constant 0 : i32
    %c0_i32_2 = arith.constant 0 : i32
    return %c0_i32, %c0_i32_0, %c0_i32_1 : i32, i32, i32
  }
  func.func @transform_3(%arg0: i32) -> (i32, i32) {
    %c0_i32 = arith.constant 0 : i32
    %c0_i32_0 = arith.constant 0 : i32
    %c0_i32_1 = arith.constant 0 : i32
    return %c0_i32, %c0_i32_0 : i32, i32
  }
  func.func @transform_4(%arg0: i32) -> (i32, i32, i32) {
    %c0_i32 = arith.constant 0 : i32
    %c0_i32_0 = arith.constant 0 : i32
    %c0_i32_1 = arith.constant 0 : i32
    %c0_i32_2 = arith.constant 0 : i32
    return %c0_i32, %c0_i32_0, %c0_i32_1 : i32, i32, i32
  }
  func.func @transform_5(%arg0: i32) -> (i32, i32) {
    %c0_i32 = arith.constant 0 : i32
    %c0_i32_0 = arith.constant 0 : i32
    %c0_i32_1 = arith.constant 0 : i32
    return %c0_i32, %c0_i32_0 : i32, i32
  }
  func.func @transform_6(%arg0: i32) -> (i32, i32) {
    %c0_i32 = arith.constant 0 : i32
    %c0_i32_0 = arith.constant 0 : i32
    %c0_i32_1 = arith.constant 0 : i32
    return %c0_i32, %c0_i32_0 : i32, i32
  }
  func.func @transform_7(%arg0: i32) -> (i32, i32) {
    %c0_i32 = arith.constant 0 : i32
    %c0_i32_0 = arith.constant 0 : i32
    %c0_i32_1 = arith.constant 0 : i32
    return %c0_i32, %c0_i32_0 : i32, i32
  }
  func.func @transform_8(%arg0: i32) -> (i32, i32, i32) {
    %c0_i32 = arith.constant 0 : i32
    %c0_i32_0 = arith.constant 0 : i32
    %c0_i32_1 = arith.constant 0 : i32
    %c0_i32_2 = arith.constant 0 : i32
    return %c0_i32, %c0_i32_0, %c0_i32_1 : i32, i32, i32
  }
  func.func @transform_9(%arg0: i32) -> (i32, i32) {
    %c0_i32 = arith.constant 0 : i32
    %c0_i32_0 = arith.constant 0 : i32
    %c0_i32_1 = arith.constant 0 : i32
    return %c0_i32, %c0_i32_0 : i32, i32
  }
  func.func @transform_10(%arg0: i32) -> (i32, i32) {
    %c0_i32 = arith.constant 0 : i32
    %c0_i32_0 = arith.constant 0 : i32
    %c0_i32_1 = arith.constant 0 : i32
    return %c0_i32, %c0_i32_0 : i32, i32
  }
  func.func @transform_11(%arg0: i32) -> (i32, i32) {
    %c0_i32 = arith.constant 0 : i32
    %c0_i32_0 = arith.constant 0 : i32
    %c0_i32_1 = arith.constant 0 : i32
    return %c0_i32, %c0_i32_0 : i32, i32
  }
  func.func @transform_12(%arg0: i32) -> (i32, i32, i32) {
    %c0_i32 = arith.constant 0 : i32
    %c0_i32_0 = arith.constant 0 : i32
    %c0_i32_1 = arith.constant 0 : i32
    %c0_i32_2 = arith.constant 0 : i32
    return %c0_i32, %c0_i32_0, %c0_i32_1 : i32, i32, i32
  }
  func.func @transform_13(%arg0: i32) -> (i32, i32) {
    %c0_i32 = arith.constant 0 : i32
    %c0_i32_0 = arith.constant 0 : i32
    %c0_i32_1 = arith.constant 0 : i32
    return %c0_i32, %c0_i32_0 : i32, i32
  }
  func.func @transform_14(%arg0: i32) -> (i32, i32) {
    %c0_i32 = arith.constant 0 : i32
    %c0_i32_0 = arith.constant 0 : i32
    %c0_i32_1 = arith.constant 0 : i32
    return %c0_i32, %c0_i32_0 : i32, i32
  }
  func.func @transform_15(%arg0: i32) -> (i32, i32) {
    %c0_i32 = arith.constant 0 : i32
    %c0_i32_0 = arith.constant 0 : i32
    %c0_i32_1 = arith.constant 0 : i32
    return %c0_i32, %c0_i32_0 : i32, i32
  }
  func.func @transform_16(%arg0: i32) -> (i32, i32, i32) {
    %c0_i32 = arith.constant 0 : i32
    %c0_i32_0 = arith.constant 0 : i32
    %c0_i32_1 = arith.constant 0 : i32
    %c0_i32_2 = arith.constant 0 : i32
    return %c0_i32, %c0_i32_0, %c0_i32_1 : i32, i32, i32
  }
  func.func @transform_17(%arg0: i32) -> (i32, i32) {
    %c0_i32 = arith.constant 0 : i32
    %c0_i32_0 = arith.constant 0 : i32
    %c0_i32_1 = arith.constant 0 : i32
    return %c0_i32, %c0_i32_0 : i32, i32
  }
  func.func @transform_18(%arg0: i32) -> (i32, i32) {
    %c0_i32 = arith.constant 0 : i32
    %c0_i32_0 = arith.constant 0 : i32
    return %c0_i32, %arg0 : i32, i32
  }
}

</mosaic_0001>

<bundles_post_ra>
// kernel: spatial_forward.1
= control target key start
LH: loop header
LB: loop body
LE: loop exit
PB: predicated region body
PF: predicated region fallthrough
CT: control target
= control target key end

     0   :  { %v13278_v2 = vmov 0.0   ;;  %s9510_s19 = smov 17   ;;  %vm81_vm0 = vcmask 64512   ;;  %s9511_s25 = smov 16   ;;  %v9517_v6 = vmov 0   ;;  %v244_v8 = vlaneseq  ;;  %s13257_s0 = inlined_call_operand.vmem [shape: f32[8,512], index: 0, kind: input, shape index: {}]   ;;  %s13258_s2 = inlined_call_operand.vmem [shape: f32[9,8,8], index: 2, kind: input, shape index: {}]   ;;  %s13259_s3 = inlined_call_operand.vmem [shape: f32[8,1], index: 3, kind: input, shape index: {}]   ;;  %s13260_s1 = inlined_call_operand.vmem [shape: f32[9,1,512], index: 1, kind: input, shape index: {}]   ;;  %s13261_s4 = inlined_call_operand.vmem [shape: f32[9,8,8], index: 4, kind: input, shape index: {}]   ;;  %s13262_s5 = inlined_call_operand.vmem [shape: f32[8,1], index: 5, kind: input, shape index: {}]   ;;  %s13263_s6 = inlined_call_operand.vmem [shape: f32[16,1], index: 6, kind: input, shape index: {}]   ;;  %s13264_s7 = inlined_call_operand.vmem [shape: f32[16,1], index: 7, kind: input, shape index: {}]   ;;  %s13265_s8 = inlined_call_operand.vmem [shape: f32[9,8,16], index: 8, kind: input, shape index: {}]   ;;  %s13266_s9 = inlined_call_operand.vmem [shape: f32[8,1], index: 9, kind: input, shape index: {}]   ;;  %s13267_s10 = inlined_call_operand.vmem [shape: f32[24,1], index: 10, kind: input, shape index: {}]   ;;  %s13268_s11 = inlined_call_operand.vmem [shape: f32[24,1], index: 11, kind: input, shape index: {}]   ;;  %s13269_s12 = inlined_call_operand.vmem [shape: f32[9,8,24], index: 12, kind: input, shape index: {}]   ;;  %s13270_s13 = inlined_call_operand.vmem [shape: f32[8,1], index: 13, kind: input, shape index: {}]   ;;  %s13271_s14 = inlined_call_operand.vmem [shape: f32[32,1], index: 14, kind: input, shape index: {}]   ;;  %s13272_s15 = inlined_call_operand.vmem [shape: f32[32,1], index: 15, kind: input, shape index: {}]   ;;  %s13273_s16 = inlined_call_operand.vmem [shape: f32[9,32,32], index: 16, kind: input, shape index: {}]   ;;  %s13274_s17 = inlined_call_operand.vmem [shape: f32[32,1], index: 17, kind: input, shape index: {}]   ;;  %s13275_s18 = inlined_call_operand.vmem [shape: f32[32,512], index: 18, kind: output, shape index: {}]  }
   0x1   :  { %13444 = sst [smem:[#allocation66_spill]] %s13257_s0  ;;  %149 = vmatprep.mubr.f32.mxu0 %v13278_v2  ;;  %220 = vmatprep.mubr.f32.mxu1 %v13278_v2  ;;  %s9512_s26 = smov 15   ;;  %v59_v15 = vld [vmem:[%s13260_s1] sm:$0xf]  ;;  %v9282_v18 = vld [vmem:[%s13260_s1 + $0x4] sm:$0xf] }
   0x2   :  { %13445 = sst [smem:[#allocation67_spill]] %s13258_s2  ;;  %s9513_s27 = smov 1   ;;  %9507 = vset.pattern.permute.xlu0 %v9517_v6  ;;  %9508 = vset.pattern.permute.xlu1 %v9517_v6  ;;  %v253_v9 = vshrl.u32 %v244_v8, 7  ;;  %v9670_v10 = vand.u32 127, %v244_v8  ;;  %v9283_v42 = vld [vmem:[%s13260_s1 + $0x8] sm:$0xf] }
   0x3   :  { %13446 = sst [smem:[#allocation68_spill]] %s13259_s3  ;;  %s9514_s28 = smov 127   ;;  %v9284_v60 = vld [vmem:[%s13260_s1 + $0xc] sm:$0xf]  ;;  %vm3292_vm9 = vcmask 130048   ;;  %vm4985_vm10 = vcmask 195584  }
   0x4   :  { %s13447_s29 = sld [smem:[#allocation66_spill]]  ;;  %s9516_s30 = smov 112   ;;  %v9672_v11 = vsub.s32 0, %v253_v9  ;;  %v9674_v12 = vsub.s32 2, %v253_v9  ;;  %v9676_v13 = vsub.s32 3, %v253_v9  ;;  %v9678_v14 = vsub.s32 1, %v253_v9 }
   0x5   :  { %s13448_s24 = sld [smem:[#allocation67_spill]]  ;;  %s9518_s0 = smov 111   ;;  %vm246_vm1 = vcmp.lt.s32.totalorder %v9670_v10, 17  ;;  %vm434_vm2 = vcmp.lt.s32.totalorder %v9670_v10, 16  ;;  %vm623_vm3 = vcmp.lt.s32.totalorder %v9670_v10, 15  ;;  %vm812_vm4 = vcmp.lt.s32.totalorder %v9670_v10, 1 }
   0x6   :  { %s13449_s21 = sld [smem:[#allocation68_spill]]  ;;  %v9688_v19 = vrot.slane %v59_v15, %v9672_v11  ;;  %v9691_v20 = vrot.slane %v59_v15, %v9674_v12  ;;  %v9694_v21 = vrot.slane %v59_v15, %v9676_v13  ;;  %v9697_v22 = vrot.slane %v59_v15, %v9678_v14 }
   0x7   :  { %v9701_v25 = vrot.slane %v9282_v18, %v9678_v14  ;;  %v9721_v38 = vrot.slane %v9282_v18, %v9672_v11  ;;  %v9724_v39 = vrot.slane %v9282_v18, %v9674_v12  ;;  %v9728_v41 = vrot.slane %v9282_v18, %v9676_v13 }
   0x8   :  { %13450 = vst [vmem:[#allocation2_spill] sm:$0xff] %v9691_v20  ;;  %13451 = vst [vmem:[#allocation3_spill] sm:$0xff] %v9694_v21  ;;  %v9748_v51 = vrot.slane %v9283_v42, %v9678_v14  ;;  %v9756_v56 = vrot.slane %v9283_v42, %v9672_v11  ;;  %v9760_v57 = vrot.slane %v9283_v42, %v9674_v12  ;;  %vm1001_vm5 = vcmp.lt.s32.totalorder %v9670_v10, 127 }
   0x9   :  { %13452 = vst [vmem:[#allocation4_spill] sm:$0xff] %v9697_v22  ;;  %13453 = vst [vmem:[#allocation5_spill] sm:$0xff] %v9701_v25  ;;  %v9764_v59 = vrot.slane %v9283_v42, %v9676_v13  ;;  %v9783_v6 = vrot.slane %v9284_v60, %v9678_v14  ;;  %vm1190_vm6 = vcmp.lt.s32.totalorder %v9670_v10, 113  ;;  %vm1379_vm7 = vcmp.lt.s32.totalorder %v9670_v10, 112 }
   0xa   :  { %v76_v0 = vld [vmem:[%s13447_s29 + $0x10] sm:$0xff]  ;;  %v74_v1 = vld [vmem:[%s13447_s29] sm:$0xff]  ;;  %v77_v3 = vld [vmem:[%s13447_s29 + $0x18] sm:$0xff]  ;;  %13454 = vst [vmem:[#allocation6_spill] sm:$0xff] %v9721_v38  ;;  %vm1568_vm8 = vcmp.lt.s32.totalorder %v9670_v10, 111  ;;  %vm6836_vm11 = vcmask 261120  }
   0xb   :  { %240 = vrot.lane.b32.xlu1 %v76_v0, %s9510_s19  ;;  %236 = vrot.lane.b32.xlu0 %v74_v1, %s9510_s19  ;;  %v75_v4 = vld [vmem:[%s13447_s29 + $0x8] sm:$0xff]  ;;  %v9289_v5 = vld [vmem:[%s13448_s24 + $0x20] sm:$0xff]  ;;  %s9515_s29 = smov 113   ;;  %13455 = vst [vmem:[#allocation7_spill] sm:$0xff] %v9724_v39  ;;  %13456 = vst [vmem:[#allocation8_spill] sm:$0xff] %v9728_v41 }
   0xc   :  { %115 = vmatprep.subr.mxu0 %v75_v4  ;;  %186 = vmatprep.subr.mxu1 %v77_v3  ;;  %v78_v7 = vld [vmem:[%s13449_s21] sm:$0xff]  ;;  %13457 = vst [vmem:[#allocation9_spill] sm:$0xff] %v9748_v51  ;;  %v9294_v52 = vld [vmem:[%s13448_s24 + $0x8] sm:$0xff]  ;;  %13458 = vst [vmem:[#allocation10_spill] sm:$0xff] %v9756_v56 }
   0xd   :  { %116 = vmatpush1.msra.mxu0 %v74_v1  ;;  %187 = vmatpush1.msra.mxu1 %v76_v0  ;;  %v276_v34 = vld [vmem:[%s13448_s24] sm:$0xff]  ;;  %13459 = vst [vmem:[#allocation11_spill] sm:$0xff] %v9760_v57  ;;  %13460 = vst [vmem:[#allocation12_spill] sm:$0xff] %v9764_v59 }
   0xe   :  { %9290 = vmatmul.mubr.msk.f32.vlgmr.msra.gmra.mxu0 %vm81_vm0, %v9289_v5  ;;  %9291 = vmatmul.mubr.msk.f32.vlgmr.msra.gmra.mxu1 %vm81_vm0, %v9289_v5  ;;  %13461 = vst [vmem:[#allocation13_spill] sm:$0xff] %v9783_v6 }
   0xf   :  { %242 = vrot.lane.b32.xlu1 %v77_v3, %s9510_s19  ;;  %238 = vrot.lane.b32.xlu0 %v75_v4, %s9510_s19 }
  0x10   :  { %344 = vmatprep.mubr.f32.mxu0 %v13278_v2  ;;  %415 = vmatprep.mubr.f32.mxu1 %v13278_v2 }
  0x13   :  { %428 = vrot.lane.b32.xlu1 %v75_v4, %s9511_s25  ;;  %426 = vrot.lane.b32.xlu0 %v74_v1, %s9511_s25 }
  0x17   :  { %432 = vrot.lane.b32.xlu1 %v77_v3, %s9511_s25  ;;  %430 = vrot.lane.b32.xlu0 %v76_v0, %s9511_s25 }
  0x1b   :  { %617 = vrot.lane.b32.xlu1 %v75_v4, %s9512_s26  ;;  %615 = vrot.lane.b32.xlu0 %v74_v1, %s9512_s26 }
  0x1f   :  { %621 = vrot.lane.b32.xlu1 %v77_v3, %s9512_s26  ;;  %619 = vrot.lane.b32.xlu0 %v76_v0, %s9512_s26 }
  0x23   :  { %806 = vrot.lane.b32.xlu1 %v75_v4, %s9513_s27  ;;  %804 = vrot.lane.b32.xlu0 %v74_v1, %s9513_s27 }
  0x27   :  { %810 = vrot.lane.b32.xlu1 %v77_v3, %s9513_s27  ;;  %808 = vrot.lane.b32.xlu0 %v76_v0, %s9513_s27 }
  0x2b   :  { %995 = vrot.lane.b32.xlu1 %v75_v4, %s9514_s28  ;;  %993 = vrot.lane.b32.xlu0 %v74_v1, %s9514_s28 }
  0x2f   :  { %999 = vrot.lane.b32.xlu1 %v77_v3, %s9514_s28  ;;  %997 = vrot.lane.b32.xlu0 %v76_v0, %s9514_s28 }
  0x33   :  { %1184 = vrot.lane.b32.xlu1 %v75_v4, %s9515_s29  ;;  %1182 = vrot.lane.b32.xlu0 %v74_v1, %s9515_s29 }
  0x37   :  { %1188 = vrot.lane.b32.xlu1 %v77_v3, %s9515_s29  ;;  %1186 = vrot.lane.b32.xlu0 %v76_v0, %s9515_s29 }
  0x3b   :  { %1373 = vrot.lane.b32.xlu1 %v75_v4, %s9516_s30  ;;  %1371 = vrot.lane.b32.xlu0 %v74_v1, %s9516_s30 }
  0x3f   :  { %1377 = vrot.lane.b32.xlu1 %v77_v3, %s9516_s30  ;;  %1375 = vrot.lane.b32.xlu0 %v76_v0, %s9516_s30 }
  0x43   :  { %1562 = vrot.lane.b32.xlu1 %v75_v4, %s9518_s0  ;;  %1560 = vrot.lane.b32.xlu0 %v74_v1, %s9518_s0 }
  0x47   :  { %1566 = vrot.lane.b32.xlu1 %v77_v3, %s9518_s0  ;;  %1564 = vrot.lane.b32.xlu0 %v76_v0, %s9518_s0 }
  0x4b   :  { %229 = vperm.xlu0 %9507, %v78_v7   ;;  %v9297_v7 = vld [vmem:[%s13448_s24 + $0x10] sm:$0xff] }
  0x7d   :  { %v241_v16 = vpop.permute.xlu1 %240  ;;  %v237_v17 = vpop.permute.xlu0 %236 }
  0x81   :  { %v243_v23 = vpop.permute.xlu1 %242  ;;  %v239_v24 = vpop.permute.xlu0 %238 }
  0x82   :  { %v247_v26 = vsel %vm246_vm1, %v241_v16, %v243_v23  ;;  %v250_v27 = vsel %vm246_vm1, %v243_v23, %v237_v17  ;;  %v248_v28 = vsel %vm246_vm1, %v239_v24, %v241_v16  ;;  %v249_v29 = vsel %vm246_vm1, %v237_v17, %v239_v24 }
  0x83   :  { %v272_v30 = vmul.f32 %v9688_v19, %v250_v27  ;;  %v274_v31 = vmul.f32 %v9691_v20, %v248_v28  ;;  %v275_v32 = vmul.f32 %v9694_v21, %v247_v26  ;;  %v273_v33 = vmul.f32 %v9697_v22, %v249_v29 }
  0x84   :  { %v9791_v16 = vrot.slane %v9284_v60, %v9672_v11  ;;  %v9795_v17 = vrot.slane %v9284_v60, %v9674_v12  ;;  %v9799_v23 = vrot.slane %v9284_v60, %v9676_v13  ;;  %v9286_v60 = vld [vmem:[%s13260_s1 + $0x18] sm:$0xf] }
  0x85   :  { %381 = vmatprep.subr.mxu1 %v275_v32  ;;  %v429_v35 = vpop.permute.xlu1 %428  ;;  %v427_v36 = vpop.permute.xlu0 %426  ;;  %310 = vmatprep.subr.mxu0 %v273_v33  ;;  %v9300_v33 = vld [vmem:[%s13448_s24 + $0x18] sm:$0xff] }
  0x86   :  { %v437_v37 = vsel %vm434_vm2, %v427_v36, %v429_v35  ;;  %311 = vmatpush1.msra.mxu0 %v272_v30  ;;  %382 = vmatpush1.msra.mxu1 %v274_v31  ;;  %13462 = vst [vmem:[#allocation14_spill] sm:$0xff] %v9791_v16  ;;  %13463 = vst [vmem:[#allocation15_spill] sm:$0xff] %v9795_v17 }
  0x87   :  { %v461_v40 = vmul.f32 %v9701_v25, %v437_v37  ;;  %9292 = vmatmul.mubr.msk.f32.vlgmr.msra.gmra.mxu0 %vm81_vm0, %v276_v34  ;;  %9293 = vmatmul.mubr.msk.f32.vlgmr.msra.gmra.mxu1 %vm81_vm0, %v276_v34  ;;  %13464 = vst [vmem:[#allocation16_spill] sm:$0xff] %v9799_v23 }
  0x88   :  { %533 = vmatprep.mubr.f32.mxu0 %v13278_v2  ;;  %604 = vmatprep.mubr.f32.mxu1 %v13278_v2 }
  0x89   :  { %v433_v43 = vpop.permute.xlu1 %432  ;;  %v431_v44 = vpop.permute.xlu0 %430  ;;  %499 = vmatprep.subr.mxu0 %v461_v40 }
  0x8a   :  { %v438_v45 = vsel %vm434_vm2, %v433_v43, %v427_v36  ;;  %v435_v46 = vsel %vm434_vm2, %v431_v44, %v433_v43  ;;  %v436_v47 = vsel %vm434_vm2, %v429_v35, %v431_v44  ;;  %v9285_v35 = vld [vmem:[%s13260_s1 + $0x14] sm:$0xf] }
  0x8b   :  { %v460_v48 = vmul.f32 %v9721_v38, %v438_v45  ;;  %v462_v49 = vmul.f32 %v9724_v39, %v436_v47  ;;  %v463_v50 = vmul.f32 %v9728_v41, %v435_v46  ;;  %v9822_v37 = vrot.slane %v9285_v35, %v9674_v12 }
  0x8c   :  { %v9825_v40 = vrot.slane %v9285_v35, %v9676_v13  ;;  %v9828_v42 = vrot.slane %v9285_v35, %v9678_v14  ;;  %v9833_v43 = vrot.slane %v9285_v35, %v9672_v11 }
  0x8d   :  { %v618_v53 = vpop.permute.xlu1 %617  ;;  %570 = vmatprep.subr.mxu1 %v463_v50  ;;  %v616_v54 = vpop.permute.xlu0 %615  ;;  %500 = vmatpush1.msra.mxu0 %v460_v48  ;;  %13465 = vst [vmem:[#allocation17_spill] sm:$0xff] %v9822_v37 }
  0x8e   :  { %v626_v55 = vsel %vm623_vm3, %v616_v54, %v618_v53  ;;  %571 = vmatpush1.msra.mxu1 %v462_v49  ;;  %9295 = vmatmul.mubr.msk.f32.vlgmr.msra.gmra.mxu0 %vm81_vm0, %v9294_v52  ;;  %13466 = vst [vmem:[#allocation18_spill] sm:$0xff] %v9825_v40  ;;  %13467 = vst [vmem:[#allocation19_spill] sm:$0xff] %v9828_v42 }
  0x8f   :  { %v650_v58 = vmul.f32 %v9748_v51, %v626_v55  ;;  %9296 = vmatmul.mubr.msk.f32.vlgmr.msra.gmra.mxu1 %vm81_vm0, %v9294_v52  ;;  %722 = vmatprep.mubr.f32.mxu0 %v13278_v2  ;;  %13468 = vst [vmem:[#allocation20_spill] sm:$0xff] %v9833_v43  ;;  %v9303_v55 = vld [vmem:[%s13448_s24 + $0x28] sm:$0xff] }
  0x90   :  { %793 = vmatprep.mubr.f32.mxu1 %v13278_v2 }
  0x91   :  { %v622_v61 = vpop.permute.xlu1 %621  ;;  %v620_v62 = vpop.permute.xlu0 %619  ;;  %688 = vmatprep.subr.mxu0 %v650_v58 }
  0x92   :  { %v627_v63 = vsel %vm623_vm3, %v622_v61, %v616_v54  ;;  %v624_v0 = vsel %vm623_vm3, %v620_v62, %v622_v61  ;;  %v625_v1 = vsel %vm623_vm3, %v618_v53, %v620_v62  ;;  %v9857_v62 = vrot.slane %v9286_v60, %v9674_v12 }
  0x93   :  { %v649_v3 = vmul.f32 %v9756_v56, %v627_v63  ;;  %v651_v4 = vmul.f32 %v9760_v57, %v625_v1  ;;  %v652_v5 = vmul.f32 %v9764_v59, %v624_v0  ;;  %v9861_v63 = vrot.slane %v9286_v60, %v9676_v13 }
  0x94   :  { %13469 = vst [vmem:[#allocation21_spill] sm:$0xff] %v9857_v62  ;;  %v9864_v0 = vrot.slane %v9286_v60, %v9678_v14  ;;  %v9867_v1 = vrot.slane %v9286_v60, %v9672_v11 }
  0x95   :  { %v807_v8 = vpop.permute.xlu1 %806  ;;  %759 = vmatprep.subr.mxu1 %v652_v5  ;;  %v805_v9 = vpop.permute.xlu0 %804  ;;  %689 = vmatpush1.msra.mxu0 %v649_v3  ;;  %13470 = vst [vmem:[#allocation22_spill] sm:$0xff] %v9861_v63 }
  0x96   :  { %v815_v15 = vsel %vm812_vm4, %v805_v9, %v807_v8  ;;  %760 = vmatpush1.msra.mxu1 %v651_v4  ;;  %9298 = vmatmul.mubr.msk.f32.vlgmr.msra.gmra.mxu0 %vm81_vm0, %v9297_v7  ;;  %13471 = vst [vmem:[#allocation23_spill] sm:$0xff] %v9864_v0  ;;  %13472 = vst [vmem:[#allocation24_spill] sm:$0xff] %v9867_v1 }
  0x97   :  { %v839_v18 = vmul.f32 %v9783_v6, %v815_v15  ;;  %9299 = vmatmul.mubr.msk.f32.vlgmr.msra.gmra.mxu1 %vm81_vm0, %v9297_v7  ;;  %911 = vmatprep.mubr.f32.mxu0 %v13278_v2 }
  0x98   :  { %982 = vmatprep.mubr.f32.mxu1 %v13278_v2 }
  0x99   :  { %v811_v24 = vpop.permute.xlu1 %810  ;;  %v809_v26 = vpop.permute.xlu0 %808  ;;  %877 = vmatprep.subr.mxu0 %v839_v18 }
  0x9a   :  { %v816_v27 = vsel %vm812_vm4, %v811_v24, %v805_v9  ;;  %v813_v28 = vsel %vm812_vm4, %v809_v26, %v811_v24  ;;  %v814_v29 = vsel %vm812_vm4, %v807_v8, %v809_v26 }
  0x9b   :  { %v838_v30 = vmul.f32 %v9791_v16, %v816_v27  ;;  %v840_v31 = vmul.f32 %v9795_v17, %v814_v29  ;;  %v841_v32 = vmul.f32 %v9799_v23, %v813_v28  ;;  %v9306_v27 = vld [vmem:[%s13448_s24 + $0x30] sm:$0xff]  ;;  %v9287_v29 = vld [vmem:[%s13260_s1 + $0x1c] sm:$0xf] }
  0x9d   :  { %v996_v34 = vpop.permute.xlu1 %995  ;;  %948 = vmatprep.subr.mxu1 %v841_v32  ;;  %v994_v36 = vpop.permute.xlu0 %993  ;;  %878 = vmatpush1.msra.mxu0 %v838_v30  ;;  %v9896_v32 = vrot.slane %v9287_v29, %v9676_v13 }
  0x9e   :  { %949 = vmatpush1.msra.mxu1 %v840_v31  ;;  %9301 = vmatmul.mubr.msk.f32.vlgmr.msra.gmra.mxu0 %vm81_vm0, %v9300_v33  ;;  %v1004_v44 = vsel %vm1001_vm5, %v994_v36, %v996_v34  ;;  %v9893_v31 = vrot.slane %v9287_v29, %v9674_v12 }
  0x9f   :  { %9302 = vmatmul.mubr.msk.f32.vlgmr.msra.gmra.mxu1 %vm81_vm0, %v9300_v33  ;;  %1100 = vmatprep.mubr.f32.mxu0 %v13278_v2  ;;  %v1027_v54 = vmul.f32 %v9833_v43, %v1004_v44  ;;  %13474 = vst [vmem:[#allocation26_spill] sm:$0xff] %v9896_v32  ;;  %v9899_v33 = vrot.slane %v9287_v29, %v9678_v14 }
  0xa0   :  { %1171 = vmatprep.mubr.f32.mxu1 %v13278_v2  ;;  %13473 = vst [vmem:[#allocation25_spill] sm:$0xff] %v9893_v31 }
  0xa1   :  { %v1000_v45 = vpop.permute.xlu1 %999  ;;  %v998_v46 = vpop.permute.xlu0 %997  ;;  %13475 = vst [vmem:[#allocation27_spill] sm:$0xff] %v9899_v33 }
  0xa2   :  { %v1005_v47 = vsel %vm1001_vm5, %v1000_v45, %v994_v36  ;;  %v1002_v48 = vsel %vm1001_vm5, %v998_v46, %v1000_v45  ;;  %v1003_v49 = vsel %vm1001_vm5, %v996_v34, %v998_v46  ;;  %v9902_v34 = vrot.slane %v9287_v29, %v9672_v11 }
  0xa3   :  { %v1029_v50 = vmul.f32 %v9822_v37, %v1002_v48  ;;  %v1030_v52 = vmul.f32 %v9825_v40, %v1005_v47  ;;  %v1028_v53 = vmul.f32 %v9828_v42, %v1003_v49 }
  0xa4   :  { %13476 = vst [vmem:[#allocation28_spill] sm:$0xff] %v9902_v34 }
  0xa5   :  { %v1185_v58 = vpop.permute.xlu1 %1184  ;;  %1137 = vmatprep.subr.mxu1 %v1030_v52  ;;  %v1183_v61 = vpop.permute.xlu0 %1182  ;;  %1066 = vmatprep.subr.mxu0 %v1028_v53  ;;  %v9309_v53 = vld [vmem:[%s13448_s24 + $0x38] sm:$0xff] }
  0xa6   :  { %1067 = vmatpush1.msra.mxu0 %v1027_v54  ;;  %1138 = vmatpush1.msra.mxu1 %v1029_v50  ;;  %v1193_v3 = vsel %vm1190_vm6, %v1183_v61, %v1185_v58 }
  0xa7   :  { %9304 = vmatmul.mubr.msk.f32.vlgmr.msra.gmra.mxu0 %vm81_vm0, %v9303_v55  ;;  %9305 = vmatmul.mubr.msk.f32.vlgmr.msra.gmra.mxu1 %vm81_vm0, %v9303_v55  ;;  %v1216_v26 = vmul.f32 %v9867_v1, %v1193_v3  ;;  %v9288_v55 = vld [vmem:[%s13260_s1 + $0x20] sm:$0xf] }
  0xa8   :  { %1289 = vmatprep.mubr.f32.mxu0 %v13278_v2  ;;  %1360 = vmatprep.mubr.f32.mxu1 %v13278_v2  ;;  %v9928_v60 = vrot.slane %v9288_v55, %v9674_v12  ;;  %v9934_v3 = vrot.slane %v9288_v55, %v9676_v13 }
  0xa9   :  { %v1189_v4 = vpop.permute.xlu1 %1188  ;;  %v1187_v5 = vpop.permute.xlu0 %1186 }
  0xaa   :  { %v1194_v7 = vsel %vm1190_vm6, %v1189_v4, %v1183_v61  ;;  %v1191_v8 = vsel %vm1190_vm6, %v1187_v5, %v1189_v4  ;;  %v1192_v9 = vsel %vm1190_vm6, %v1185_v58, %v1187_v5  ;;  %13477 = vst [vmem:[#allocation29_spill] sm:$0xff] %v9928_v60  ;;  %v9931_v61 = vrot.slane %v9288_v55, %v9678_v14 }
  0xab   :  { %v1218_v15 = vmul.f32 %v9857_v62, %v1191_v8  ;;  %v1219_v18 = vmul.f32 %v9861_v63, %v1194_v7  ;;  %v1217_v24 = vmul.f32 %v9864_v0, %v1192_v9  ;;  %13479 = vst [vmem:[#allocation31_spill] sm:$0xff] %v9934_v3  ;;  %v9937_v4 = vrot.slane %v9288_v55, %v9672_v11 }
  0xac   :  { %13478 = vst [vmem:[#allocation30_spill] sm:$0xff] %v9931_v61 }
  0xad   :  { %v1374_v28 = vpop.permute.xlu1 %1373  ;;  %1326 = vmatprep.subr.mxu1 %v1219_v18  ;;  %v1372_v30 = vpop.permute.xlu0 %1371  ;;  %1255 = vmatprep.subr.mxu0 %v1217_v24  ;;  %13480 = vst [vmem:[#allocation32_spill] sm:$0xff] %v9937_v4  ;;  %v9312_v24 = vld [vmem:[%s13448_s24 + $0x40] sm:$0xff] }
  0xae   :  { %1256 = vmatpush1.msra.mxu0 %v1216_v26  ;;  %1327 = vmatpush1.msra.mxu1 %v1218_v15  ;;  %v1382_v35 = vsel %vm1379_vm7, %v1372_v30, %v1374_v28 }
  0xaf   :  { %9307 = vmatmul.mubr.msk.f32.vlgmr.msra.gmra.mxu0 %vm81_vm0, %v9306_v27  ;;  %9308 = vmatmul.mubr.msk.f32.vlgmr.msra.gmra.mxu1 %vm81_vm0, %v9306_v27  ;;  %v1405_v52 = vmul.f32 %v9902_v34, %v1382_v35 }
  0xb0   :  { %1478 = vmatprep.mubr.f32.mxu0 %v13278_v2  ;;  %1549 = vmatprep.mubr.f32.mxu1 %v13278_v2 }
  0xb1   :  { %v1378_v36 = vpop.permute.xlu1 %1377  ;;  %v1376_v44 = vpop.permute.xlu0 %1375 }
  0xb2   :  { %v1383_v45 = vsel %vm1379_vm7, %v1378_v36, %v1372_v30  ;;  %v1380_v46 = vsel %vm1379_vm7, %v1376_v44, %v1378_v36  ;;  %v1381_v47 = vsel %vm1379_vm7, %v1374_v28, %v1376_v44 }
  0xb3   :  { %v1407_v48 = vmul.f32 %v9893_v31, %v1380_v46  ;;  %v1408_v49 = vmul.f32 %v9896_v32, %v1383_v45  ;;  %v1406_v50 = vmul.f32 %v9899_v33, %v1381_v47 }
  0xb5   :  { %v1563_v54 = vpop.permute.xlu1 %1562  ;;  %1515 = vmatprep.subr.mxu1 %v1408_v49  ;;  %v1561_v58 = vpop.permute.xlu0 %1560  ;;  %1444 = vmatprep.subr.mxu0 %v1406_v50 }
  0xb6   :  { %1445 = vmatpush1.msra.mxu0 %v1405_v52  ;;  %1516 = vmatpush1.msra.mxu1 %v1407_v48  ;;  %v1571_v5 = vsel %vm1568_vm8, %v1561_v58, %v1563_v54 }
  0xb7   :  { %9310 = vmatmul.mubr.msk.f32.vlgmr.msra.gmra.mxu0 %vm81_vm0, %v9309_v53  ;;  %9311 = vmatmul.mubr.msk.f32.vlgmr.msra.gmra.mxu1 %vm81_vm0, %v9309_v53  ;;  %v1594_v18 = vmul.f32 %v9937_v4, %v1571_v5 }
  0xb8   :  { %1667 = vmatprep.mubr.f32.mxu0 %v13278_v2  ;;  %1738 = vmatprep.mubr.f32.mxu1 %v13278_v2 }
  0xb9   :  { %v1567_v7 = vpop.permute.xlu1 %1566  ;;  %v1565_v8 = vpop.permute.xlu0 %1564 }
  0xba   :  { %v1572_v12 = vsel %vm1568_vm8, %v1567_v7, %v1561_v58  ;;  %v1569_v14 = vsel %vm1568_vm8, %v1565_v8, %v1567_v7  ;;  %v1570_v13 = vsel %vm1568_vm8, %v1563_v54, %v1565_v8 }
  0xbb   :  { %v1596_v11 = vmul.f32 %v9928_v60, %v1569_v14  ;;  %v1595_v9 = vmul.f32 %v9931_v61, %v1570_v13  ;;  %v1597_v15 = vmul.f32 %v9934_v3, %v1572_v12 }
  0xbd   :  { %1633 = vmatprep.subr.mxu0 %v1595_v9  ;;  %1704 = vmatprep.subr.mxu1 %v1597_v15 }
  0xbe   :  { %1634 = vmatpush1.msra.mxu0 %v1594_v18  ;;  %1705 = vmatpush1.msra.mxu1 %v1596_v11 }
  0xbf   :  { %9313 = vmatmul.mubr.msk.f32.vlgmr.msra.gmra.mxu0 %vm81_vm0, %v9312_v24  ;;  %9314 = vmatmul.mubr.msk.f32.vlgmr.msra.gmra.mxu1 %vm81_vm0, %v9312_v24 }
  0xc0   :  { %1819 = vmatprep.mubr.f32.mxu0 %v13278_v2  ;;  %1890 = vmatprep.mubr.f32.mxu1 %v13278_v2 }
  0xc6   :  { %v230_v54 = vpop.permute.xlu0 %229 }
  0xce   :  { %v222_v26 = vpop.f32.mrf.mxu1  ;;  %v151_v27 = vpop.f32.mrf.mxu0 }
  0xcf   :  { %v234_v58 = vadd.f32 %v230_v54, %v222_v26  ;;  %v232_v7 = vadd.f32 %v230_v54, %v151_v27 }
  0xd0   :  { %v224_v28 = vpop.f32.mrf.mxu1  ;;  %v153_v29 = vpop.f32.mrf.mxu0 }
  0xd1   :  { %v235_v12 = vadd.f32 %v230_v54, %v224_v28  ;;  %v233_v14 = vadd.f32 %v230_v54, %v153_v29 }
 0x147   :  { %v417_v30 = vpop.f32.mrf.mxu1  ;;  %v346_v35 = vpop.f32.mrf.mxu0 }
 0x148   :  { %v424_v13 = vadd.f32 %v417_v30, %v234_v58  ;;  %v422_v9 = vadd.f32 %v346_v35, %v232_v7 }
 0x149   :  { %v419_v36 = vpop.f32.mrf.mxu1  ;;  %v348_v44 = vpop.f32.mrf.mxu0 }
 0x14a   :  { %v425_v18 = vadd.f32 %v419_v36, %v235_v12  ;;  %v423_v24 = vadd.f32 %v348_v44, %v233_v14 }
 0x14e   :  { %v535_v46 = vpop.f32.mrf.mxu0 }
 0x14f   :  { %v606_v45 = vpop.f32.mrf.mxu1  ;;  %v611_v60 = vadd.f32 %v535_v46, %v422_v9  ;;  %v3241_v9 = vld [vmem:[%s13263_s6] sm:$0xff] }
 0x150   :  { %v537_v48 = vpop.f32.mrf.mxu0  ;;  %v613_v2 = vadd.f32 %v606_v45, %v424_v13  ;;  %v13485_v13 = vmov 0.0  }
 0x151   :  { %v608_v47 = vpop.f32.mrf.mxu1  ;;  %v612_v32 = vadd.f32 %v537_v48, %v423_v24  ;;  %v3262_v24 = vld [vmem:[%s13264_s7 + $0x8] sm:$0xff] }
 0x152   :  { %v614_v4 = vadd.f32 %v608_v47, %v425_v18  ;;  %v3242_v18 = vld [vmem:[%s13263_s6 + $0x8] sm:$0xff] }
 0x156   :  { %v724_v50 = vpop.f32.mrf.mxu0 }
 0x157   :  { %v795_v49 = vpop.f32.mrf.mxu1  ;;  %v800_v26 = vadd.f32 %v724_v50, %v611_v60 }
 0x158   :  { %v726_v53 = vpop.f32.mrf.mxu0  ;;  %v802_v31 = vadd.f32 %v795_v49, %v613_v2 }
 0x159   :  { %v797_v52 = vpop.f32.mrf.mxu1  ;;  %v801_v63 = vadd.f32 %v726_v53, %v612_v32 }
 0x15a   :  { %v803_v28 = vadd.f32 %v797_v52, %v614_v4 }
 0x15e   :  { %v913_v5 = vpop.f32.mrf.mxu0 }
 0x15f   :  { %v984_v55 = vpop.f32.mrf.mxu1  ;;  %v989_v30 = vadd.f32 %v913_v5, %v800_v26 }
 0x160   :  { %v915_v11 = vpop.f32.mrf.mxu0  ;;  %v991_v29 = vadd.f32 %v984_v55, %v802_v31 }
 0x161   :  { %v986_v8 = vpop.f32.mrf.mxu1  ;;  %v990_v58 = vadd.f32 %v915_v11, %v801_v63  ;;  %v1749_v11 = vld [vmem:[%s13262_s5] sm:$0xff] }
 0x162   :  { %v992_v36 = vadd.f32 %v986_v8, %v803_v28 }
 0x167   :  { %v1173_v15 = vpop.f32.mrf.mxu1  ;;  %v1102_v3 = vpop.f32.mrf.mxu0 }
 0x168   :  { %v1180_v44 = vadd.f32 %v1173_v15, %v991_v29  ;;  %v1178_v46 = vadd.f32 %v1102_v3, %v989_v30  ;;  %v3261_v15 = vld [vmem:[%s13264_s7] sm:$0xff] }
 0x169   :  { %v1175_v61 = vpop.f32.mrf.mxu1  ;;  %v1104_v33 = vpop.f32.mrf.mxu0 }
 0x16a   :  { %v1179_v12 = vadd.f32 %v1104_v33, %v990_v58  ;;  %v1181_v47 = vadd.f32 %v1175_v61, %v992_v36  ;;  %v9315_v61 = vld [vmem:[%s13261_s4 + $0x20] sm:$0xff] }
 0x16f   :  { %v1291_v34 = vpop.f32.mrf.mxu0  ;;  %v1362_v27 = vpop.f32.mrf.mxu1 }
 0x170   :  { %v1367_v48 = vadd.f32 %v1291_v34, %v1178_v46  ;;  %v1369_v2 = vadd.f32 %v1362_v27, %v1180_v44 }
 0x171   :  { %v1293_v54 = vpop.f32.mrf.mxu0  ;;  %v1364_v35 = vpop.f32.mrf.mxu1 }
 0x172   :  { %v1368_v50 = vadd.f32 %v1293_v54, %v1179_v12  ;;  %v1370_v14 = vadd.f32 %v1364_v35, %v1181_v47  ;;  %v1922_v12 = vld [vmem:[%s13261_s4] sm:$0xff] }
 0x177   :  { %v1480_v45 = vpop.f32.mrf.mxu0  ;;  %v1551_v7 = vpop.f32.mrf.mxu1 }
 0x178   :  { %v1556_v32 = vadd.f32 %v1480_v45, %v1367_v48  ;;  %v1558_v4 = vadd.f32 %v1551_v7, %v1369_v2 }
 0x179   :  { %v1482_v49 = vpop.f32.mrf.mxu0  ;;  %v1553_v60 = vpop.f32.mrf.mxu1 }
 0x17a   :  { %v1557_v53 = vadd.f32 %v1482_v49, %v1368_v50  ;;  %v1559_v55 = vadd.f32 %v1553_v60, %v1370_v14 }
 0x17f   :  { %v1669_v31 = vpop.f32.mrf.mxu0  ;;  %v1740_v52 = vpop.f32.mrf.mxu1 }
 0x180   :  { %v9960_v63 = vadd.f32 %v1669_v31, %v1556_v32  ;;  %v9962_v5 = vadd.f32 %v1740_v52, %v1558_v4 }
 0x181   :  { %v1671_v8 = vpop.f32.mrf.mxu0  ;;  %v1742_v3 = vpop.f32.mrf.mxu1 }
 0x182   :  { %13481 = vst [vmem:[#allocation33_spill] sm:$0xff] %v9960_v63  ;;  %13482 = vst [vmem:[#allocation34_spill] sm:$0xff] %v9962_v5  ;;  %v9964_v33 = vadd.f32 %v1671_v8, %v1557_v53  ;;  %v9966_v34 = vadd.f32 %v1742_v3, %v1559_v55  ;;  %1910 = vrot.lane.b32.xlu0 %v9962_v5, %s9510_s19  ;;  %1906 = vrot.lane.b32.xlu1 %v9960_v63, %s9510_s19  ;;  %v9320_v55 = vld [vmem:[%s13261_s4 + $0x8] sm:$0xff] }
 0x184   :  { %13483 = vst [vmem:[#allocation35_spill] sm:$0xff] %v9964_v33  ;;  %13484 = vst [vmem:[#allocation36_spill] sm:$0xff] %v9966_v34  ;;  %1785 = vmatprep.subr.mxu0 %v9964_v33  ;;  %1856 = vmatprep.subr.mxu1 %v9966_v34 }
 0x185   :  { %1786 = vmatpush1.msra.mxu0 %v9960_v63  ;;  %1857 = vmatpush1.msra.mxu1 %v9962_v5 }
 0x186   :  { %9317 = vmatmul.mubr.msk.f32.vlgmr.msra.gmra.mxu1 %vm81_vm0, %v9315_v61  ;;  %2072 = vrot.lane.b32.xlu0 %v9960_v63, %s9511_s25 }
 0x187   :  { %1908 = vrot.lane.b32.xlu1 %v9964_v33, %s9510_s19  ;;  %9316 = vmatmul.mubr.msk.f32.vlgmr.msra.gmra.mxu0 %vm81_vm0, %v9315_v61 }
 0x188   :  { %1990 = vmatprep.mubr.f32.mxu0 %v13485_v13  ;;  %2061 = vmatprep.mubr.f32.mxu1 %v13485_v13 }
 0x18a   :  { %2076 = vrot.lane.b32.xlu0 %v9962_v5, %s9511_s25 }
 0x18b   :  { %1912 = vrot.lane.b32.xlu1 %v9966_v34, %s9510_s19 }
 0x18e   :  { %2239 = vrot.lane.b32.xlu0 %v9960_v63, %s9512_s26 }
 0x18f   :  { %2074 = vrot.lane.b32.xlu1 %v9964_v33, %s9511_s25 }
 0x192   :  { %2243 = vrot.lane.b32.xlu0 %v9962_v5, %s9512_s26 }
 0x193   :  { %2078 = vrot.lane.b32.xlu1 %v9966_v34, %s9511_s25 }
 0x196   :  { %2406 = vrot.lane.b32.xlu0 %v9960_v63, %s9513_s27 }
 0x197   :  { %2241 = vrot.lane.b32.xlu1 %v9964_v33, %s9512_s26 }
 0x19a   :  { %2410 = vrot.lane.b32.xlu0 %v9962_v5, %s9513_s27 }
 0x19b   :  { %2245 = vrot.lane.b32.xlu1 %v9966_v34, %s9512_s26 }
 0x19e   :  { %2573 = vrot.lane.b32.xlu0 %v9960_v63, %s9514_s28 }
 0x19f   :  { %2408 = vrot.lane.b32.xlu1 %v9964_v33, %s9513_s27 }
 0x1a2   :  { %2577 = vrot.lane.b32.xlu0 %v9962_v5, %s9514_s28 }
 0x1a3   :  { %2412 = vrot.lane.b32.xlu1 %v9966_v34, %s9513_s27 }
 0x1a6   :  { %2740 = vrot.lane.b32.xlu0 %v9960_v63, %s9515_s29 }
 0x1a7   :  { %2575 = vrot.lane.b32.xlu1 %v9964_v33, %s9514_s28 }
 0x1aa   :  { %2744 = vrot.lane.b32.xlu0 %v9962_v5, %s9515_s29 }
 0x1ab   :  { %2579 = vrot.lane.b32.xlu1 %v9966_v34, %s9514_s28 }
 0x1ae   :  { %2907 = vrot.lane.b32.xlu0 %v9960_v63, %s9516_s30 }
 0x1af   :  { %2742 = vrot.lane.b32.xlu1 %v9964_v33, %s9515_s29 }
 0x1b2   :  { %2911 = vrot.lane.b32.xlu0 %v9962_v5, %s9516_s30 }
 0x1b3   :  { %2746 = vrot.lane.b32.xlu1 %v9966_v34, %s9515_s29 }
 0x1b6   :  { %3074 = vrot.lane.b32.xlu0 %v9960_v63, %s9518_s0 }
 0x1b7   :  { %2909 = vrot.lane.b32.xlu1 %v9964_v33, %s9516_s30 }
 0x1ba   :  { %3078 = vrot.lane.b32.xlu0 %v9962_v5, %s9518_s0 }
 0x1bb   :  { %2913 = vrot.lane.b32.xlu1 %v9966_v34, %s9516_s30 }
 0x1be   :  { %1899 = vperm.xlu0 %9507, %v1749_v11  }
 0x1bf   :  { %3076 = vrot.lane.b32.xlu1 %v9964_v33, %s9518_s0 }
 0x1c2   :  { %3245 = vperm.xlu0 %9507, %v3241_v9  }
 0x1c3   :  { %3080 = vrot.lane.b32.xlu1 %v9966_v34, %s9518_s0 }
 0x1c6   :  { %3265 = vperm.xlu0 %9507, %v3261_v15  }
 0x1c7   :  { %3250 = vperm.xlu1 %9508, %v3242_v18  }
 0x1cb   :  { %3270 = vperm.xlu1 %9508, %v3262_v24  }
 0x1f4   :  { %v1911_v26 = vpop.permute.xlu0 %1910  ;;  %v1907_v27 = vpop.permute.xlu1 %1906 }
 0x1f8   :  { %v2073_v28 = vpop.permute.xlu0 %2072 }
 0x1f9   :  { %v1909_v29 = vpop.permute.xlu1 %1908 }
 0x1fa   :  { %v1916_v30 = vsel %vm246_vm1, %v1907_v27, %v1909_v29  ;;  %v1915_v58 = vsel %vm246_vm1, %v1909_v29, %v1911_v26 }
 0x1fb   :  { %v1919_v54 = vmul.f32 %v1916_v30, %v9697_v22  ;;  %v1920_v47 = vmul.f32 %v1915_v58, %v9691_v20  ;;  %v9323_v30 = vld [vmem:[%s13261_s4 + $0x10] sm:$0xff] }
 0x1fc   :  { %v2077_v35 = vpop.permute.xlu0 %2076 }
 0x1fd   :  { %v1913_v36 = vpop.permute.xlu1 %1912  ;;  %1956 = vmatprep.subr.mxu0 %v1919_v54 }
 0x1fe   :  { %v1914_v44 = vsel %vm246_vm1, %v1911_v26, %v1913_v36  ;;  %v1917_v45 = vsel %vm246_vm1, %v1913_v36, %v1907_v27 }
 0x1ff   :  { %v1918_v7 = vmul.f32 %v1917_v45, %v9688_v19  ;;  %v1921_v46 = vmul.f32 %v1914_v44, %v9694_v21 }
 0x200   :  { %v2240_v48 = vpop.permute.xlu0 %2239 }
 0x201   :  { %2027 = vmatprep.subr.mxu1 %v1921_v46  ;;  %v2075_v2 = vpop.permute.xlu1 %2074  ;;  %1957 = vmatpush1.msra.mxu0 %v1918_v7 }
 0x202   :  { %v2082_v49 = vsel %vm434_vm2, %v2073_v28, %v2075_v2  ;;  %9318 = vmatmul.mubr.msk.f32.vlgmr.msra.gmra.mxu0 %vm81_vm0, %v1922_v12  ;;  %2028 = vmatpush1.msra.mxu1 %v1920_v47  ;;  %v2081_v14 = vsel %vm434_vm2, %v2075_v2, %v2077_v35 }
 0x203   :  { %9319 = vmatmul.mubr.msk.f32.vlgmr.msra.gmra.mxu1 %vm81_vm0, %v1922_v12  ;;  %v2085_v60 = vmul.f32 %v2082_v49, %v9701_v25  ;;  %2157 = vmatprep.mubr.f32.mxu0 %v13485_v13  ;;  %v2086_v8 = vmul.f32 %v2081_v14, %v9724_v39  ;;  %v9326_v49 = vld [vmem:[%s13261_s4 + $0x18] sm:$0xff] }
 0x204   :  { %v2244_v50 = vpop.permute.xlu0 %2243  ;;  %2228 = vmatprep.mubr.f32.mxu1 %v13485_v13 }
 0x205   :  { %v2079_v32 = vpop.permute.xlu1 %2078  ;;  %2123 = vmatprep.subr.mxu0 %v2085_v60 }
 0x206   :  { %v2080_v4 = vsel %vm434_vm2, %v2077_v35, %v2079_v32  ;;  %v2083_v31 = vsel %vm434_vm2, %v2079_v32, %v2073_v28 }
 0x207   :  { %v2084_v52 = vmul.f32 %v2083_v31, %v9721_v38  ;;  %v2087_v53 = vmul.f32 %v2080_v4, %v9728_v41 }
 0x208   :  { %v2407_v3 = vpop.permute.xlu0 %2406 }
 0x209   :  { %2194 = vmatprep.subr.mxu1 %v2087_v53  ;;  %v2242_v61 = vpop.permute.xlu1 %2241  ;;  %2124 = vmatpush1.msra.mxu0 %v2084_v52 }
 0x20a   :  { %v2249_v11 = vsel %vm623_vm3, %v2240_v48, %v2242_v61  ;;  %9321 = vmatmul.mubr.msk.f32.vlgmr.msra.gmra.mxu0 %vm81_vm0, %v9320_v55  ;;  %2195 = vmatpush1.msra.mxu1 %v2086_v8  ;;  %v2248_v18 = vsel %vm623_vm3, %v2242_v61, %v2244_v50 }
 0x20b   :  { %9322 = vmatmul.mubr.msk.f32.vlgmr.msra.gmra.mxu1 %vm81_vm0, %v9320_v55  ;;  %v2252_v9 = vmul.f32 %v2249_v11, %v9748_v51  ;;  %2324 = vmatprep.mubr.f32.mxu0 %v13485_v13  ;;  %v2253_v54 = vmul.f32 %v2248_v18, %v9760_v57  ;;  %v9329_v55 = vld [vmem:[%s13261_s4 + $0x28] sm:$0xff] }
 0x20c   :  { %v2411_v15 = vpop.permute.xlu0 %2410  ;;  %2395 = vmatprep.mubr.f32.mxu1 %v13485_v13 }
 0x20d   :  { %v2246_v24 = vpop.permute.xlu1 %2245  ;;  %2290 = vmatprep.subr.mxu0 %v2252_v9 }
 0x20e   :  { %v2247_v26 = vsel %vm623_vm3, %v2244_v50, %v2246_v24  ;;  %v2250_v27 = vsel %vm623_vm3, %v2246_v24, %v2240_v48 }
 0x20f   :  { %v2251_v28 = vmul.f32 %v2250_v27, %v9756_v56  ;;  %v2254_v29 = vmul.f32 %v2247_v26, %v9764_v59 }
 0x210   :  { %v2574_v35 = vpop.permute.xlu0 %2573 }
 0x211   :  { %2361 = vmatprep.subr.mxu1 %v2254_v29  ;;  %v2409_v58 = vpop.permute.xlu1 %2408  ;;  %2291 = vmatpush1.msra.mxu0 %v2251_v28  ;;  %v9332_v29 = vld [vmem:[%s13261_s4 + $0x30] sm:$0xff] }
 0x212   :  { %v2416_v36 = vsel %vm812_vm4, %v2407_v3, %v2409_v58  ;;  %9324 = vmatmul.mubr.msk.f32.vlgmr.msra.gmra.mxu0 %vm81_vm0, %v9323_v30  ;;  %2362 = vmatpush1.msra.mxu1 %v2253_v54  ;;  %v2415_v7 = vsel %vm812_vm4, %v2409_v58, %v2411_v15 }
 0x213   :  { %9325 = vmatmul.mubr.msk.f32.vlgmr.msra.gmra.mxu1 %vm81_vm0, %v9323_v30  ;;  %v2419_v44 = vmul.f32 %v2416_v36, %v9783_v6  ;;  %2491 = vmatprep.mubr.f32.mxu0 %v13485_v13  ;;  %v2420_v60 = vmul.f32 %v2415_v7, %v9795_v17 }
 0x214   :  { %v2578_v45 = vpop.permute.xlu0 %2577  ;;  %2562 = vmatprep.mubr.f32.mxu1 %v13485_v13 }
 0x215   :  { %v2413_v46 = vpop.permute.xlu1 %2412  ;;  %2457 = vmatprep.subr.mxu0 %v2419_v44  ;;  %v13486_v44 = vld [vmem:[#allocation22_spill] sm:$0xff] }
 0x216   :  { %v2414_v12 = vsel %vm812_vm4, %v2411_v15, %v2413_v46  ;;  %v2417_v47 = vsel %vm812_vm4, %v2413_v46, %v2407_v3 }
 0x217   :  { %v2418_v48 = vmul.f32 %v2417_v47, %v9791_v16  ;;  %v2421_v2 = vmul.f32 %v2414_v12, %v9799_v23 }
 0x218   :  { %v2741_v50 = vpop.permute.xlu0 %2740 }
 0x219   :  { %2528 = vmatprep.subr.mxu1 %v2421_v2  ;;  %v2576_v14 = vpop.permute.xlu1 %2575  ;;  %2458 = vmatpush1.msra.mxu0 %v2418_v48  ;;  %v13487_v48 = vld [vmem:[#allocation28_spill] sm:$0xff] }
 0x21a   :  { %v2582_v32 = vsel %vm1001_vm5, %v2576_v14, %v2578_v45  ;;  %v2583_v4 = vsel %vm1001_vm5, %v2574_v35, %v2576_v14  ;;  %9327 = vmatmul.mubr.msk.f32.vlgmr.msra.gmra.mxu0 %vm81_vm0, %v9326_v49  ;;  %2529 = vmatpush1.msra.mxu1 %v2420_v60 }
 0x21b   :  { %v2585_v31 = vmul.f32 %v2583_v4, %v9833_v43  ;;  %9328 = vmatmul.mubr.msk.f32.vlgmr.msra.gmra.mxu1 %vm81_vm0, %v9326_v49  ;;  %v2586_v52 = vmul.f32 %v2582_v32, %v9828_v42  ;;  %2658 = vmatprep.mubr.f32.mxu0 %v13485_v13  ;;  %v13488_v49 = vld [vmem:[#allocation27_spill] sm:$0xff] }
 0x21c   :  { %v2745_v53 = vpop.permute.xlu0 %2744  ;;  %2729 = vmatprep.mubr.f32.mxu1 %v13485_v13 }
 0x21d   :  { %v2580_v8 = vpop.permute.xlu1 %2579  ;;  %2624 = vmatprep.subr.mxu0 %v2586_v52 }
 0x21e   :  { %v2581_v3 = vsel %vm1001_vm5, %v2578_v45, %v2580_v8  ;;  %v2584_v61 = vsel %vm1001_vm5, %v2580_v8, %v2574_v35  ;;  %2625 = vmatpush1.msra.mxu0 %v2585_v31  ;;  %v13489_v31 = vld [vmem:[#allocation25_spill] sm:$0xff] }
 0x21f   :  { %v2587_v11 = vmul.f32 %v2581_v3, %v9822_v37  ;;  %9330 = vmatmul.mubr.msk.f32.vlgmr.msra.gmra.mxu0 %vm81_vm0, %v9329_v55  ;;  %v2588_v9 = vmul.f32 %v2584_v61, %v9825_v40 }
 0x220   :  { %v2908_v15 = vpop.permute.xlu0 %2907  ;;  %2825 = vmatprep.mubr.f32.mxu0 %v13485_v13 }
 0x221   :  { %2695 = vmatprep.subr.mxu1 %v2588_v9  ;;  %v2743_v18 = vpop.permute.xlu1 %2742  ;;  %v13491_v9 = vld [vmem:[#allocation32_spill] sm:$0xff] }
 0x222   :  { %v2749_v24 = vsel %vm1190_vm6, %v2743_v18, %v2745_v53  ;;  %v2750_v26 = vsel %vm1190_vm6, %v2741_v50, %v2743_v18  ;;  %2696 = vmatpush1.msra.mxu1 %v2587_v11  ;;  %v13492_v18 = vld [vmem:[#allocation30_spill] sm:$0xff] }
 0x223   :  { %v2752_v27 = vmul.f32 %v2750_v26, %v9867_v1  ;;  %9331 = vmatmul.mubr.msk.f32.vlgmr.msra.gmra.mxu1 %vm81_vm0, %v9329_v55  ;;  %v2753_v28 = vmul.f32 %v2749_v24, %v9864_v0  ;;  %v9338_v26 = vld [vmem:[%s13261_s4 + $0x40] sm:$0xff] }
 0x224   :  { %2896 = vmatprep.mubr.f32.mxu1 %v13485_v13  ;;  %v2912_v30 = vpop.permute.xlu0 %2911 }
 0x225   :  { %v2747_v54 = vpop.permute.xlu1 %2746  ;;  %2791 = vmatprep.subr.mxu0 %v2753_v28 }
 0x226   :  { %v2748_v35 = vsel %vm1190_vm6, %v2745_v53, %v2747_v54  ;;  %v2751_v58 = vsel %vm1190_vm6, %v2747_v54, %v2741_v50  ;;  %2792 = vmatpush1.msra.mxu0 %v2752_v27  ;;  %v9335_v50 = vld [vmem:[%s13261_s4 + $0x38] sm:$0xff]  ;;  %v13490_v53 = vld [vmem:[#allocation26_spill] sm:$0xff] }
 0x227   :  { %v2754_v36 = vmul.f32 %v2748_v35, %v9857_v62  ;;  %9333 = vmatmul.mubr.msk.f32.vlgmr.msra.gmra.mxu0 %vm81_vm0, %v9332_v29  ;;  %v2755_v45 = vmul.f32 %v2751_v58, %v13486_v44  ;;  %v13494_v35 = vld [vmem:[#allocation31_spill] sm:$0xff] }
 0x228   :  { %2992 = vmatprep.mubr.f32.mxu0 %v13485_v13  ;;  %v3075_v47 = vpop.permute.xlu0 %3074 }
 0x229   :  { %2862 = vmatprep.subr.mxu1 %v2755_v45  ;;  %v2910_v7 = vpop.permute.xlu1 %2909 }
 0x22a   :  { %v2916_v46 = vsel %vm1379_vm7, %v2910_v7, %v2912_v30  ;;  %v2917_v12 = vsel %vm1379_vm7, %v2908_v15, %v2910_v7  ;;  %2863 = vmatpush1.msra.mxu1 %v2754_v36 }
 0x22b   :  { %v2919_v2 = vmul.f32 %v2917_v12, %v13487_v48  ;;  %9334 = vmatmul.mubr.msk.f32.vlgmr.msra.gmra.mxu1 %vm81_vm0, %v9332_v29  ;;  %v2920_v60 = vmul.f32 %v2916_v46, %v13488_v49 }
 0x22c   :  { %3063 = vmatprep.mubr.f32.mxu1 %v13485_v13  ;;  %v3079_v8 = vpop.permute.xlu0 %3078 }
 0x22d   :  { %v2914_v14 = vpop.permute.xlu1 %2913  ;;  %2958 = vmatprep.subr.mxu0 %v2920_v60 }
 0x22e   :  { %v2915_v32 = vsel %vm1379_vm7, %v2912_v30, %v2914_v14  ;;  %v2918_v4 = vsel %vm1379_vm7, %v2914_v14, %v2908_v15  ;;  %2959 = vmatpush1.msra.mxu0 %v2919_v2  ;;  %v13493_v30 = vld [vmem:[#allocation29_spill] sm:$0xff] }
 0x22f   :  { %v2921_v52 = vmul.f32 %v2915_v32, %v13489_v31  ;;  %9336 = vmatmul.mubr.msk.f32.vlgmr.msra.gmra.mxu0 %vm81_vm0, %v9335_v50  ;;  %v2922_v55 = vmul.f32 %v2918_v4, %v13490_v53 }
 0x230   :  { %3159 = vmatprep.mubr.f32.mxu0 %v13485_v13 }
 0x231   :  { %3029 = vmatprep.subr.mxu1 %v2922_v55  ;;  %v3077_v3 = vpop.permute.xlu1 %3076 }
 0x232   :  { %v3083_v61 = vsel %vm1568_vm8, %v3077_v3, %v3079_v8  ;;  %v3084_v11 = vsel %vm1568_vm8, %v3075_v47, %v3077_v3  ;;  %3030 = vmatpush1.msra.mxu1 %v2921_v52 }
 0x233   :  { %v3086_v15 = vmul.f32 %v3084_v11, %v13491_v9  ;;  %9337 = vmatmul.mubr.msk.f32.vlgmr.msra.gmra.mxu1 %vm81_vm0, %v9335_v50  ;;  %v3087_v24 = vmul.f32 %v3083_v61, %v13492_v18 }
 0x234   :  { %3230 = vmatprep.mubr.f32.mxu1 %v13485_v13 }
 0x235   :  { %v3081_v27 = vpop.permute.xlu1 %3080  ;;  %3125 = vmatprep.subr.mxu0 %v3087_v24 }
 0x236   :  { %v3082_v28 = vsel %vm1568_vm8, %v3079_v8, %v3081_v27  ;;  %v3085_v29 = vsel %vm1568_vm8, %v3081_v27, %v3075_v47  ;;  %3126 = vmatpush1.msra.mxu0 %v3086_v15 }
 0x237   :  { %v3088_v54 = vmul.f32 %v3082_v28, %v13493_v30  ;;  %9339 = vmatmul.mubr.msk.f32.vlgmr.msra.gmra.mxu0 %vm81_vm0, %v9338_v26  ;;  %v3089_v58 = vmul.f32 %v3085_v29, %v13494_v35 }
 0x238   :  { %3360 = vmatprep.mubr.f32.mxu0 %v13485_v13 }
 0x239   :  { %3196 = vmatprep.subr.mxu1 %v3089_v58  ;;  %v10208_v36 = vpop.permute.xlu0 %1899 }
 0x23a   :  { %3197 = vmatpush1.msra.mxu1 %v3088_v54 }
 0x23b   :  { %9340 = vmatmul.mubr.msk.f32.vlgmr.msra.gmra.mxu1 %vm81_vm0, %v9338_v26 }
 0x23c   :  { %3431 = vmatprep.mubr.f32.mxu1 %v13485_v13 }
 0x23d   :  { %v3246_v45 = vpop.permute.xlu0 %3245 }
 0x23e   :  { %v3253_v7 = vmul.f32 %v3246_v45, %v9960_v63  ;;  %v3254_v46 = vmul.f32 %v3246_v45, %v9964_v33  ;;  %v3255_v47 = vmul.f32 %v3246_v45, %v9962_v5  ;;  %v3256_v2 = vmul.f32 %v3246_v45, %v9966_v34 }
 0x241   :  { %v3266_v12 = vpop.permute.xlu0 %3265 }
 0x242   :  { %v3273_v60 = vadd.f32 %v3266_v12, %v3253_v7  ;;  %v3274_v50 = vadd.f32 %v3266_v12, %v3254_v46  ;;  %v3275_v14 = vadd.f32 %v3266_v12, %v3255_v47  ;;  %v3276_v32 = vadd.f32 %v3266_v12, %v3256_v2 }
 0x244   :  { %v10216_v4 = vmax.f32 %v3273_v60, 0.0  ;;  %v10218_v52 = vmax.f32 %v3274_v50, 0.0  ;;  %v10224_v55 = vmax.f32 %v3275_v14, 0.0  ;;  %v10226_v8 = vmax.f32 %v3276_v32, 0.0 }
 0x246   :  { %3447 = vrot.lane.b32.xlu1 %v10216_v4, %s9510_s19  ;;  %3451 = vrot.lane.b32.xlu0 %v10218_v52, %s9510_s19  ;;  %v1892_v11 = vpop.f32.mrf.mxu1 }
 0x247   :  { %v1821_v3 = vpop.f32.mrf.mxu0  ;;  %v1904_v9 = vadd.f32 %v10208_v36, %v1892_v11 }
 0x248   :  { %v1894_v24 = vpop.f32.mrf.mxu1  ;;  %v1902_v5 = vadd.f32 %v10208_v36, %v1821_v3 }
 0x249   :  { %v1823_v61 = vpop.f32.mrf.mxu0  ;;  %v1905_v48 = vadd.f32 %v10208_v36, %v1894_v24 }
 0x24a   :  { %3455 = vrot.lane.b32.xlu1 %v10224_v55, %s9510_s19  ;;  %3459 = vrot.lane.b32.xlu0 %v10226_v8, %s9510_s19  ;;  %v1903_v33 = vadd.f32 %v10208_v36, %v1823_v61 }
 0x24e   :  { %3629 = vrot.lane.b32.xlu1 %v10216_v4, %s9511_s25  ;;  %3633 = vrot.lane.b32.xlu0 %v10218_v52, %s9511_s25 }
 0x252   :  { %3637 = vrot.lane.b32.xlu1 %v10224_v55, %s9511_s25  ;;  %3641 = vrot.lane.b32.xlu0 %v10226_v8, %s9511_s25 }
 0x256   :  { %3812 = vrot.lane.b32.xlu1 %v10216_v4, %s9512_s26  ;;  %3816 = vrot.lane.b32.xlu0 %v10218_v52, %s9512_s26 }
 0x25a   :  { %3820 = vrot.lane.b32.xlu1 %v10224_v55, %s9512_s26  ;;  %3824 = vrot.lane.b32.xlu0 %v10226_v8, %s9512_s26 }
 0x25e   :  { %3995 = vrot.lane.b32.xlu1 %v10216_v4, %s9513_s27  ;;  %3999 = vrot.lane.b32.xlu0 %v10218_v52, %s9513_s27 }
 0x262   :  { %4003 = vrot.lane.b32.xlu1 %v10224_v55, %s9513_s27  ;;  %4007 = vrot.lane.b32.xlu0 %v10226_v8, %s9513_s27 }
 0x266   :  { %4178 = vrot.lane.b32.xlu1 %v10216_v4, %s9514_s28  ;;  %4182 = vrot.lane.b32.xlu0 %v10218_v52, %s9514_s28 }
 0x26a   :  { %4186 = vrot.lane.b32.xlu1 %v10224_v55, %s9514_s28  ;;  %4190 = vrot.lane.b32.xlu0 %v10226_v8, %s9514_s28 }
 0x26e   :  { %4361 = vrot.lane.b32.xlu1 %v10216_v4, %s9515_s29  ;;  %4365 = vrot.lane.b32.xlu0 %v10218_v52, %s9515_s29 }
 0x272   :  { %4369 = vrot.lane.b32.xlu1 %v10224_v55, %s9515_s29  ;;  %4373 = vrot.lane.b32.xlu0 %v10226_v8, %s9515_s29 }
 0x276   :  { %4544 = vrot.lane.b32.xlu1 %v10216_v4, %s9516_s30  ;;  %4548 = vrot.lane.b32.xlu0 %v10218_v52, %s9516_s30 }
 0x27a   :  { %4552 = vrot.lane.b32.xlu1 %v10224_v55, %s9516_s30  ;;  %4556 = vrot.lane.b32.xlu0 %v10226_v8, %s9516_s30 }
 0x27e   :  { %4727 = vrot.lane.b32.xlu1 %v10216_v4, %s9518_s0  ;;  %4731 = vrot.lane.b32.xlu0 %v10218_v52, %s9518_s0 }
 0x2c2   :  { %v1992_v15 = vpop.f32.mrf.mxu0 }
 0x2c3   :  { %v2063_v27 = vpop.f32.mrf.mxu1  ;;  %v2068_v35 = vadd.f32 %v1992_v15, %v1902_v5 }
 0x2c4   :  { %v1994_v26 = vpop.f32.mrf.mxu0  ;;  %v2070_v49 = vadd.f32 %v2063_v27, %v1904_v9 }
 0x2c5   :  { %v2065_v29 = vpop.f32.mrf.mxu1  ;;  %v2069_v18 = vadd.f32 %v1994_v26, %v1903_v33  ;;  %v3251_v33 = vpop.permute.xlu1 %3250 }
 0x2c6   :  { %v2071_v40 = vadd.f32 %v2065_v29, %v1905_v48 }
 0x2ca   :  { %v2159_v28 = vpop.f32.mrf.mxu0 }
 0x2cb   :  { %v2230_v58 = vpop.f32.mrf.mxu1  ;;  %v2235_v53 = vadd.f32 %v2159_v28, %v2068_v35 }
 0x2cc   :  { %v2161_v54 = vpop.f32.mrf.mxu0  ;;  %v2237_v3 = vadd.f32 %v2230_v58, %v2070_v49 }
 0x2cd   :  { %v2232_v7 = vpop.f32.mrf.mxu1  ;;  %v2236_v44 = vadd.f32 %v2161_v54, %v2069_v18 }
 0x2ce   :  { %v2238_v61 = vadd.f32 %v2232_v7, %v2071_v40 }
 0x2d2   :  { %v2326_v45 = vpop.f32.mrf.mxu0 }
 0x2d3   :  { %v2397_v12 = vpop.f32.mrf.mxu1  ;;  %v2402_v62 = vadd.f32 %v2326_v45, %v2235_v53 }
 0x2d4   :  { %v2328_v46 = vpop.f32.mrf.mxu0  ;;  %v2404_v5 = vadd.f32 %v2397_v12, %v2237_v3 }
 0x2d5   :  { %v2399_v2 = vpop.f32.mrf.mxu1  ;;  %v2403_v37 = vadd.f32 %v2328_v46, %v2236_v44 }
 0x2d6   :  { %v2405_v35 = vadd.f32 %v2399_v2, %v2238_v61  ;;  %v9341_v61 = vld [vmem:[%s13265_s8 + $0x20] sm:$0xff] }
 0x2da   :  { %v2493_v47 = vpop.f32.mrf.mxu0 }
 0x2db   :  { %v2564_v50 = vpop.f32.mrf.mxu1  ;;  %v2569_v43 = vadd.f32 %v2493_v47, %v2402_v62 }
 0x2dc   :  { %v2495_v60 = vpop.f32.mrf.mxu0  ;;  %v2571_v26 = vadd.f32 %v2564_v50, %v2404_v5 }
 0x2dd   :  { %v2566_v32 = vpop.f32.mrf.mxu1  ;;  %v2570_v15 = vadd.f32 %v2495_v60, %v2403_v37 }
 0x2de   :  { %v2572_v53 = vadd.f32 %v2566_v32, %v2405_v35 }
 0x2df   :  { %v2660_v14 = vpop.f32.mrf.mxu0 }
 0x2e0   :  { %v2736_v17 = vadd.f32 %v2660_v14, %v2569_v43 }
 0x2e1   :  { %v2662_v63 = vpop.f32.mrf.mxu0 }
 0x2e2   :  { %v2737_v28 = vadd.f32 %v2662_v63, %v2570_v15 }
 0x2e3   :  { %v2731_v34 = vpop.f32.mrf.mxu1 }
 0x2e4   :  { %v2738_v24 = vadd.f32 %v2731_v34, %v2571_v26 }
 0x2e5   :  { %v2733_v31 = vpop.f32.mrf.mxu1 }
 0x2e6   :  { %v2739_v44 = vadd.f32 %v2733_v31, %v2572_v53 }
 0x2e7   :  { %v2827_v30 = vpop.f32.mrf.mxu0 }
 0x2e8   :  { %v2903_v36 = vadd.f32 %v2827_v30, %v2736_v17  ;;  %v3271_v17 = vpop.permute.xlu1 %3270 }
 0x2e9   :  { %v2829_v1 = vpop.f32.mrf.mxu0 }
 0x2ea   :  { %v2904_v27 = vadd.f32 %v2829_v1, %v2737_v28 }
 0x2eb   :  { %v2898_v0 = vpop.f32.mrf.mxu1 }
 0x2ec   :  { %v2905_v62 = vadd.f32 %v2898_v0, %v2738_v24 }
 0x2ed   :  { %v2900_v11 = vpop.f32.mrf.mxu1 }
 0x2ee   :  { %v2906_v54 = vadd.f32 %v2900_v11, %v2739_v44  ;;  %v4911_v44 = vld [vmem:[%s13267_s10 + $0x8] sm:$0xff] }
 0x2ef   :  { %v2994_v42 = vpop.f32.mrf.mxu0 }
 0x2f0   :  { %v3070_v48 = vadd.f32 %v2994_v42, %v2903_v36 }
 0x2f1   :  { %v2996_v9 = vpop.f32.mrf.mxu0 }
 0x2f2   :  { %v3071_v29 = vadd.f32 %v2996_v9, %v2904_v27  ;;  %v3289_v27 = vld [vmem:[%s13266_s9] sm:$0xff] }
 0x2f3   :  { %v3065_v18 = vpop.f32.mrf.mxu1 }
 0x2f4   :  { %v3072_v58 = vadd.f32 %v3065_v18, %v2905_v62 }
 0x2f5   :  { %v3067_v37 = vpop.f32.mrf.mxu1 }
 0x2f6   :  { %v3073_v7 = vadd.f32 %v3067_v37, %v2906_v54  ;;  %v4941_v37 = vld [vmem:[%s13268_s11 + $0x8] sm:$0xff]  ;;  %v4940_v54 = vld [vmem:[%s13268_s11] sm:$0xff] }
 0x2f7   :  { %v3161_v49 = vpop.f32.mrf.mxu0 }
 0x2f8   :  { %v10288_v40 = vadd.f32 %v3161_v49, %v3070_v48  ;;  %v4912_v48 = vld [vmem:[%s13267_s10 + $0x10] sm:$0xff] }
 0x2f9   :  { %v3163_v43 = vpop.f32.mrf.mxu0 }
 0x2fa   :  { %13495 = vst [vmem:[#allocation37_spill] sm:$0xff] %v10288_v40  ;;  %v3257_v45 = vmul.f32 %v3251_v33, %v10288_v40  ;;  %v10291_v63 = vadd.f32 %v3163_v43, %v3071_v29 }
 0x2fb   :  { %v3232_v30 = vpop.f32.mrf.mxu1 }
 0x2fc   :  { %13496 = vst [vmem:[#allocation38_spill] sm:$0xff] %v10291_v63  ;;  %v3277_v34 = vadd.f32 %v3271_v17, %v3257_v45  ;;  %v3258_v42 = vmul.f32 %v3251_v33, %v10291_v63  ;;  %v10294_v1 = vadd.f32 %v3232_v30, %v3072_v58 }
 0x2fd   :  { %v3234_v0 = vpop.f32.mrf.mxu1 }
 0x2fe   :  { %13497 = vst [vmem:[#allocation39_spill] sm:$0xff] %v10294_v1  ;;  %v10296_v31 = vmax.f32 %v3277_v34, 0.0  ;;  %v3278_v46 = vadd.f32 %v3271_v17, %v3258_v42  ;;  %v3259_v12 = vmul.f32 %v3251_v33, %v10294_v1  ;;  %v10299_v47 = vadd.f32 %v3234_v0, %v3073_v7 }
 0x300   :  { %13498 = vst [vmem:[#allocation40_spill] sm:$0xff] %v10299_v47  ;;  %v3286_v2 = vmax.f32 %v3278_v46, 0.0  ;;  %v3279_v60 = vadd.f32 %v3271_v17, %v3259_v12  ;;  %v3260_v50 = vmul.f32 %v3251_v33, %v10299_v47  ;;  %3449 = vrot.lane.b32.xlu1 %v10296_v31, %s9510_s19 }
 0x302   :  { %v3287_v14 = vmax.f32 %v3279_v60, 0.0  ;;  %v3280_v32 = vadd.f32 %v3271_v17, %v3260_v50  ;;  %3453 = vrot.lane.b32.xlu0 %v3286_v2, %s9510_s19  ;;  %3324 = vmatprep.subr.mxu0 %v3286_v2 }
 0x303   :  { %3325 = vmatpush1.msra.mxu0 %v10296_v31 }
 0x304   :  { %v3288_v3 = vmax.f32 %v3280_v32, 0.0  ;;  %3457 = vrot.lane.b32.xlu1 %v3287_v14, %s9510_s19  ;;  %3326 = vmatprep.subr.mxu0 %v10218_v52  ;;  %v10334_v52 = vpop.permute.xlu0 %3451 }
 0x305   :  { %3327 = vmatpush1.msra.mxu0 %v10216_v4  ;;  %v10331_v4 = vpop.permute.xlu1 %3447 }
 0x306   :  { %3395 = vmatprep.subr.mxu1 %v3288_v3  ;;  %3461 = vrot.lane.b32.xlu0 %v3288_v3, %s9510_s19 }
 0x307   :  { %9342 = vmatmul.mubr.msk.f32.vlgmr.msra.gmra.mxu0 %vm3292_vm9, %v9341_v61  ;;  %3396 = vmatpush1.msra.mxu1 %v3287_v14 }
 0x308   :  { %3397 = vmatprep.subr.mxu1 %v10226_v8  ;;  %3631 = vrot.lane.b32.xlu1 %v10296_v31, %s9511_s25  ;;  %v10342_v15 = vpop.permute.xlu0 %3459 }
 0x309   :  { %3398 = vmatpush1.msra.mxu1 %v10224_v55  ;;  %3547 = vmatprep.mubr.f32.mxu0 %v13485_v13  ;;  %v10338_v5 = vpop.permute.xlu1 %3455 }
 0x30a   :  { %9343 = vmatmul.mubr.msk.f32.vlgmr.msra.gmra.mxu1 %vm3292_vm9, %v9341_v61  ;;  %3635 = vrot.lane.b32.xlu0 %v3286_v2, %s9511_s25  ;;  %v3467_v61 = vsel %vm246_vm1, %v10331_v4, %v10334_v52 }
 0x30b   :  { %3618 = vmatprep.mubr.f32.mxu1 %v13485_v13 }
 0x30c   :  { %3639 = vrot.lane.b32.xlu1 %v3287_v14, %s9511_s25  ;;  %v10349_v33 = vpop.permute.xlu0 %3633 }
 0x30d   :  { %v10346_v11 = vpop.permute.xlu1 %3629 }
 0x30e   :  { %3643 = vrot.lane.b32.xlu0 %v3288_v3, %s9511_s25 }
 0x310   :  { %3814 = vrot.lane.b32.xlu1 %v10296_v31, %s9512_s26  ;;  %v10357_v26 = vpop.permute.xlu0 %3641 }
 0x311   :  { %v10354_v35 = vpop.permute.xlu1 %3637 }
 0x312   :  { %3818 = vrot.lane.b32.xlu0 %v3286_v2, %s9512_s26 }
 0x314   :  { %3822 = vrot.lane.b32.xlu1 %v3287_v14, %s9512_s26  ;;  %v10365_v36 = vpop.permute.xlu0 %3816 }
 0x315   :  { %v10362_v28 = vpop.permute.xlu1 %3812 }
 0x316   :  { %3826 = vrot.lane.b32.xlu0 %v3288_v3, %s9512_s26 }
 0x318   :  { %3997 = vrot.lane.b32.xlu1 %v10296_v31, %s9513_s27  ;;  %v10373_v18 = vpop.permute.xlu0 %3824 }
 0x319   :  { %v10369_v9 = vpop.permute.xlu1 %3820 }
 0x31a   :  { %4001 = vrot.lane.b32.xlu0 %v3286_v2, %s9513_s27 }
 0x31c   :  { %4005 = vrot.lane.b32.xlu1 %v3287_v14, %s9513_s27  ;;  %v10380_v24 = vpop.permute.xlu0 %3999 }
 0x31d   :  { %v10377_v53 = vpop.permute.xlu1 %3995 }
 0x31e   :  { %4009 = vrot.lane.b32.xlu0 %v3288_v3, %s9513_s27 }
 0x320   :  { %4180 = vrot.lane.b32.xlu1 %v10296_v31, %s9514_s28  ;;  %v10397_v62 = vpop.permute.xlu0 %4007 }
 0x321   :  { %v10392_v49 = vpop.permute.xlu1 %4003 }
 0x322   :  { %4184 = vrot.lane.b32.xlu0 %v3286_v2, %s9514_s28 }
 0x324   :  { %4188 = vrot.lane.b32.xlu1 %v3287_v14, %s9514_s28  ;;  %v10410_v43 = vpop.permute.xlu0 %4182 }
 0x325   :  { %v10405_v29 = vpop.permute.xlu1 %4178 }
 0x326   :  { %4192 = vrot.lane.b32.xlu0 %v3288_v3, %s9514_s28 }
 0x328   :  { %4363 = vrot.lane.b32.xlu1 %v10296_v31, %s9515_s29  ;;  %v10417_v45 = vpop.permute.xlu0 %4190 }
 0x329   :  { %v10415_v58 = vpop.permute.xlu1 %4186 }
 0x32a   :  { %4367 = vrot.lane.b32.xlu0 %v3286_v2, %s9515_s29 }
 0x32c   :  { %4371 = vrot.lane.b32.xlu1 %v3287_v14, %s9515_s29  ;;  %v10421_v30 = vpop.permute.xlu0 %4365 }
 0x32d   :  { %v10419_v17 = vpop.permute.xlu1 %4361 }
 0x32e   :  { %4375 = vrot.lane.b32.xlu0 %v3288_v3, %s9515_s29 }
 0x330   :  { %4546 = vrot.lane.b32.xlu1 %v10296_v31, %s9516_s30  ;;  %v10425_v34 = vpop.permute.xlu0 %4373 }
 0x331   :  { %v10423_v7 = vpop.permute.xlu1 %4369 }
 0x332   :  { %4550 = vrot.lane.b32.xlu0 %v3286_v2, %s9516_s30 }
 0x334   :  { %4554 = vrot.lane.b32.xlu1 %v3287_v14, %s9516_s30  ;;  %v10429_v0 = vpop.permute.xlu0 %4548 }
 0x335   :  { %v10427_v42 = vpop.permute.xlu1 %4544 }
 0x336   :  { %4558 = vrot.lane.b32.xlu0 %v3288_v3, %s9516_s30 }
 0x338   :  { %4729 = vrot.lane.b32.xlu1 %v10296_v31, %s9518_s0  ;;  %v10433_v46 = vpop.permute.xlu0 %4556 }
 0x339   :  { %v10431_v31 = vpop.permute.xlu1 %4552 }
 0x33a   :  { %4733 = vrot.lane.b32.xlu0 %v3286_v2, %s9518_s0 }
 0x33c   :  { %4737 = vrot.lane.b32.xlu1 %v3287_v14, %s9518_s0  ;;  %v10437_v2 = vpop.permute.xlu0 %4731 }
 0x33d   :  { %v10435_v12 = vpop.permute.xlu1 %4727 }
 0x33e   :  { %4741 = vrot.lane.b32.xlu0 %v3288_v3, %s9518_s0 }
 0x340   :  { %4735 = vrot.lane.b32.xlu1 %v10224_v55, %s9518_s0  ;;  %v4942_v55 = vld [vmem:[%s13268_s11 + $0x10] sm:$0xff] }
 0x342   :  { %4739 = vrot.lane.b32.xlu0 %v10226_v8, %s9518_s0  ;;  %v4910_v8 = vld [vmem:[%s13267_s10] sm:$0xff] }
 0x344   :  { %3440 = vperm.xlu1 %9508, %v3289_v27  }
 0x346   :  { %4925 = vperm.xlu0 %9507, %v4912_v48  }
 0x348   :  { %4920 = vperm.xlu1 %9508, %v4911_v44   ;;  %v3463_v44 = vsel %vm246_vm1, %v10338_v5, %v10342_v15 }
 0x34a   :  { %4955 = vperm.xlu0 %9507, %v4942_v55   ;;  %v3469_v55 = vsel %vm246_vm1, %v10342_v15, %v10331_v4  ;;  %v3472_v4 = vmul.f32 %v3467_v61, %v9697_v22 }
 0x34b   :  { %v3471_v15 = vmul.f32 %v3469_v55, %v9688_v19  ;;  %v3645_v55 = vsel %vm434_vm2, %v10354_v35, %v10357_v26 }
 0x34c   :  { %4915 = vperm.xlu1 %9508, %v4910_v8  }
 0x34e   :  { %4950 = vperm.xlu0 %9507, %v4941_v37  }
 0x350   :  { %4945 = vperm.xlu1 %9508, %v4940_v54   ;;  %v3465_v54 = vsel %vm246_vm1, %v10334_v52, %v10338_v5  ;;  %v3479_v52 = vld [vmem:[%s13265_s8] sm:$0xff] }
 0x351   :  { %v3473_v5 = vmul.f32 %v3465_v54, %v9691_v20 }
 0x372   :  { %v3450_v60 = vpop.permute.xlu1 %3449 }
 0x374   :  { %v3454_v50 = vpop.permute.xlu0 %3453 }
 0x375   :  { %v3468_v14 = vsel %vm246_vm1, %v3450_v60, %v3454_v50 }
 0x376   :  { %v3458_v32 = vpop.permute.xlu1 %3457  ;;  %v3476_v3 = vmul.f32 %v3468_v14, %v9697_v22 }
 0x377   :  { %v3466_v27 = vsel %vm246_vm1, %v3454_v50, %v3458_v32 }
 0x378   :  { %v3462_v48 = vpop.permute.xlu0 %3461  ;;  %3511 = vmatprep.subr.mxu0 %v3476_v3  ;;  %v3477_v47 = vmul.f32 %v3466_v27, %v9691_v20 }
 0x379   :  { %v3464_v8 = vsel %vm246_vm1, %v3458_v32, %v3462_v48  ;;  %v3470_v37 = vsel %vm246_vm1, %v3462_v48, %v3450_v60  ;;  %v3474_v60 = vmul.f32 %v3463_v44, %v9694_v21  ;;  %v3649_v44 = vsel %vm434_vm2, %v10346_v11, %v10349_v33 }
 0x37a   :  { %v3475_v50 = vmul.f32 %v3470_v37, %v9688_v19  ;;  %v3632_v14 = vpop.permute.xlu1 %3631  ;;  %v3478_v3 = vmul.f32 %v3464_v8, %v9694_v21  ;;  %v3651_v37 = vsel %vm434_vm2, %v10357_v26, %v10346_v11 }
 0x37c   :  { %3582 = vmatprep.subr.mxu1 %v3478_v3  ;;  %v3636_v32 = vpop.permute.xlu0 %3635  ;;  %3512 = vmatpush1.msra.mxu0 %v3475_v50  ;;  %v3647_v3 = vsel %vm434_vm2, %v10349_v33, %v10354_v35  ;;  %v9346_v33 = vld [vmem:[%s13265_s8 + $0x8] sm:$0xff] }
 0x37d   :  { %v3650_v48 = vsel %vm434_vm2, %v3632_v14, %v3636_v32  ;;  %3513 = vmatprep.subr.mxu0 %v3472_v4  ;;  %3583 = vmatpush1.msra.mxu1 %v3477_v47  ;;  %v3655_v35 = vmul.f32 %v3647_v3, %v9724_v39 }
 0x37e   :  { %v3640_v27 = vpop.permute.xlu1 %3639  ;;  %3514 = vmatpush1.msra.mxu0 %v3471_v15  ;;  %3584 = vmatprep.subr.mxu1 %v3474_v60  ;;  %v3658_v61 = vmul.f32 %v3650_v48, %v9701_v25 }
 0x37f   :  { %9344 = vmatmul.mubr.msk.f32.vlgmr.msra.gmra.mxu0 %vm3292_vm9, %v3479_v52  ;;  %3585 = vmatpush1.msra.mxu1 %v3473_v5  ;;  %v3648_v47 = vsel %vm434_vm2, %v3636_v32, %v3640_v27  ;;  %v3654_v32 = vmul.f32 %v3649_v44, %v9701_v25  ;;  %v3828_v44 = vsel %vm623_vm3, %v10369_v9, %v10373_v18 }
 0x380   :  { %9345 = vmatmul.mubr.msk.f32.vlgmr.msra.gmra.mxu1 %vm3292_vm9, %v3479_v52  ;;  %v3644_v8 = vpop.permute.xlu0 %3643  ;;  %3694 = vmatprep.subr.mxu0 %v3658_v61  ;;  %v3659_v26 = vmul.f32 %v3648_v47, %v9724_v39  ;;  %v3656_v52 = vmul.f32 %v3645_v55, %v9728_v41  ;;  %v3832_v61 = vsel %vm623_vm3, %v10362_v28, %v10365_v36 }
 0x381   :  { %v3646_v54 = vsel %vm434_vm2, %v3640_v27, %v3644_v8  ;;  %v3652_v50 = vsel %vm434_vm2, %v3644_v8, %v3632_v14  ;;  %3730 = vmatprep.mubr.f32.mxu0 %v13485_v13  ;;  %3801 = vmatprep.mubr.f32.mxu1 %v13485_v13  ;;  %v3653_v14 = vmul.f32 %v3651_v37, %v9721_v38 }
 0x382   :  { %v3657_v4 = vmul.f32 %v3652_v50, %v9721_v38  ;;  %v3815_v15 = vpop.permute.xlu1 %3814  ;;  %v3660_v11 = vmul.f32 %v3646_v54, %v9728_v41  ;;  %v3834_v8 = vsel %vm623_vm3, %v10373_v18, %v10362_v28  ;;  %v3830_v50 = vsel %vm623_vm3, %v10365_v36, %v10369_v9  ;;  %v9349_v36 = vld [vmem:[%s13265_s8 + $0x10] sm:$0xff] }
 0x383   :  { %v3838_v9 = vmul.f32 %v3830_v50, %v9760_v57 }
 0x384   :  { %3765 = vmatprep.subr.mxu1 %v3660_v11  ;;  %v3819_v60 = vpop.permute.xlu0 %3818  ;;  %3695 = vmatpush1.msra.mxu0 %v3657_v4  ;;  %v3837_v11 = vmul.f32 %v3832_v61, %v9748_v51 }
 0x385   :  { %v3833_v5 = vsel %vm623_vm3, %v3815_v15, %v3819_v60  ;;  %3696 = vmatprep.subr.mxu0 %v3654_v32  ;;  %3766 = vmatpush1.msra.mxu1 %v3659_v26  ;;  %v3839_v32 = vmul.f32 %v3828_v44, %v9764_v59 }
 0x386   :  { %v3823_v48 = vpop.permute.xlu1 %3822  ;;  %3697 = vmatpush1.msra.mxu0 %v3653_v14  ;;  %3767 = vmatprep.subr.mxu1 %v3656_v52  ;;  %v3841_v27 = vmul.f32 %v3833_v5, %v9748_v51 }
 0x387   :  { %9347 = vmatmul.mubr.msk.f32.vlgmr.msra.gmra.mxu0 %vm3292_vm9, %v9346_v33  ;;  %3768 = vmatpush1.msra.mxu1 %v3655_v35  ;;  %v3831_v55 = vsel %vm623_vm3, %v3819_v60, %v3823_v48  ;;  %v4011_v35 = vsel %vm812_vm4, %v10392_v49, %v10397_v62 }
 0x388   :  { %9348 = vmatmul.mubr.msk.f32.vlgmr.msra.gmra.mxu1 %vm3292_vm9, %v9346_v33  ;;  %v3827_v47 = vpop.permute.xlu0 %3826  ;;  %3877 = vmatprep.subr.mxu0 %v3841_v27  ;;  %v3842_v18 = vmul.f32 %v3831_v55, %v9760_v57  ;;  %v4015_v33 = vsel %vm812_vm4, %v10377_v53, %v10380_v24  ;;  %v4017_v27 = vsel %vm812_vm4, %v10397_v62, %v10377_v53  ;;  %v13499_v62 = vld [vmem:[#allocation15_spill] sm:$0xff] }
 0x389   :  { %v3829_v37 = vsel %vm623_vm3, %v3823_v48, %v3827_v47  ;;  %v3835_v54 = vsel %vm623_vm3, %v3827_v47, %v3815_v15  ;;  %3913 = vmatprep.mubr.f32.mxu0 %v13485_v13  ;;  %3984 = vmatprep.mubr.f32.mxu1 %v13485_v13  ;;  %v3836_v15 = vmul.f32 %v3834_v8, %v9756_v56 }
 0x38a   :  { %v3840_v3 = vmul.f32 %v3835_v54, %v9756_v56  ;;  %v3998_v4 = vpop.permute.xlu1 %3997  ;;  %v3843_v28 = vmul.f32 %v3829_v37, %v9764_v59  ;;  %v4013_v55 = vsel %vm812_vm4, %v10380_v24, %v10392_v49  ;;  %v4020_v54 = vmul.f32 %v4015_v33, %v9783_v6  ;;  %v9352_v24 = vld [vmem:[%s13265_s8 + $0x18] sm:$0xff] }
 0x38b   :  { %v4019_v50 = vmul.f32 %v4017_v27, %v9791_v16  ;;  %v4021_v49 = vmul.f32 %v4013_v55, %v13499_v62 }
 0x38c   :  { %3948 = vmatprep.subr.mxu1 %v3843_v28  ;;  %v4002_v26 = vpop.permute.xlu0 %4001  ;;  %3878 = vmatpush1.msra.mxu0 %v3840_v3 }
 0x38d   :  { %v4016_v14 = vsel %vm812_vm4, %v3998_v4, %v4002_v26  ;;  %3879 = vmatprep.subr.mxu0 %v3837_v11  ;;  %3949 = vmatpush1.msra.mxu1 %v3842_v18  ;;  %v4196_v11 = vsel %vm1001_vm5, %v10410_v43, %v10415_v58 }
 0x38e   :  { %v4006_v60 = vpop.permute.xlu1 %4005  ;;  %3880 = vmatpush1.msra.mxu0 %v3836_v15  ;;  %3950 = vmatprep.subr.mxu1 %v3839_v32  ;;  %v4024_v52 = vmul.f32 %v4016_v14, %v9783_v6  ;;  %v4200_v14 = vsel %vm1001_vm5, %v10417_v45, %v10405_v29 }
 0x38f   :  { %9350 = vmatmul.mubr.msk.f32.vlgmr.msra.gmra.mxu0 %vm3292_vm9, %v9349_v36  ;;  %3951 = vmatpush1.msra.mxu1 %v3838_v9  ;;  %v4014_v5 = vsel %vm812_vm4, %v4002_v26, %v4006_v60  ;;  %v4198_v26 = vsel %vm1001_vm5, %v10405_v29, %v10410_v43  ;;  %v13503_v29 = vld [vmem:[#allocation18_spill] sm:$0xff] }
 0x390   :  { %9351 = vmatmul.mubr.msk.f32.vlgmr.msra.gmra.mxu1 %vm3292_vm9, %v9349_v36  ;;  %v4010_v48 = vpop.permute.xlu0 %4009  ;;  %4060 = vmatprep.subr.mxu0 %v4024_v52  ;;  %v4025_v37 = vmul.f32 %v4014_v5, %v13499_v62  ;;  %v13500_v36 = vld [vmem:[#allocation19_spill] sm:$0xff]  ;;  %v13502_v5 = vld [vmem:[#allocation17_spill] sm:$0xff] }
 0x391   :  { %v4012_v61 = vsel %vm812_vm4, %v4006_v60, %v4010_v48  ;;  %v4018_v44 = vsel %vm812_vm4, %v4010_v48, %v3998_v4  ;;  %4096 = vmatprep.mubr.f32.mxu0 %v13485_v13  ;;  %4167 = vmatprep.mubr.f32.mxu1 %v13485_v13  ;;  %v4022_v4 = vmul.f32 %v4011_v35, %v9799_v23  ;;  %v13501_v60 = vld [vmem:[#allocation20_spill] sm:$0xff] }
 0x392   :  { %v4023_v47 = vmul.f32 %v4018_v44, %v9791_v16  ;;  %v4181_v8 = vpop.permute.xlu1 %4180  ;;  %v4026_v53 = vmul.f32 %v4012_v61, %v9799_v23  ;;  %v4194_v35 = vsel %vm1001_vm5, %v10415_v58, %v10417_v45  ;;  %v4203_v44 = vmul.f32 %v4196_v11, %v13500_v36 }
 0x393   :  { %v4202_v55 = vmul.f32 %v4198_v26, %v13501_v60  ;;  %v4205_v58 = vmul.f32 %v4200_v14, %v13503_v29  ;;  %v4204_v45 = vmul.f32 %v4194_v35, %v13502_v5  ;;  %v9358_v35 = vld [vmem:[%s13265_s8 + $0x30] sm:$0xff] }
 0x394   :  { %4131 = vmatprep.subr.mxu1 %v4026_v53  ;;  %v4185_v3 = vpop.permute.xlu0 %4184  ;;  %4061 = vmatpush1.msra.mxu0 %v4023_v47  ;;  %v9355_v47 = vld [vmem:[%s13265_s8 + $0x28] sm:$0xff] }
 0x395   :  { %4062 = vmatprep.subr.mxu0 %v4020_v54  ;;  %4132 = vmatpush1.msra.mxu1 %v4025_v37  ;;  %v4199_v28 = vsel %vm1001_vm5, %v4181_v8, %v4185_v3  ;;  %v4379_v54 = vsel %vm1190_vm6, %v10421_v30, %v10423_v7 }
 0x396   :  { %v4189_v18 = vpop.permute.xlu1 %4188  ;;  %4063 = vmatpush1.msra.mxu0 %v4019_v50  ;;  %4133 = vmatprep.subr.mxu1 %v4022_v4  ;;  %v4206_v52 = vmul.f32 %v4199_v28, %v13501_v60  ;;  %v4383_v28 = vsel %vm1190_vm6, %v10425_v34, %v10419_v17 }
 0x397   :  { %v4197_v15 = vsel %vm1001_vm5, %v4185_v3, %v4189_v18  ;;  %9353 = vmatmul.mubr.msk.f32.vlgmr.msra.gmra.mxu0 %vm3292_vm9, %v9352_v24  ;;  %4134 = vmatpush1.msra.mxu1 %v4021_v49  ;;  %v4381_v3 = vsel %vm1190_vm6, %v10419_v17, %v10421_v30  ;;  %v4377_v30 = vsel %vm1190_vm6, %v10423_v7, %v10425_v34  ;;  %v13507_v17 = vld [vmem:[#allocation22_spill] sm:$0xff] }
 0x398   :  { %9354 = vmatmul.mubr.msk.f32.vlgmr.msra.gmra.mxu1 %vm3292_vm9, %v9352_v24  ;;  %v4193_v32 = vpop.permute.xlu0 %4192  ;;  %v4207_v9 = vmul.f32 %v4197_v15, %v13500_v36  ;;  %4279 = vmatprep.mubr.f32.mxu0 %v13485_v13  ;;  %v13504_v24 = vld [vmem:[#allocation23_spill] sm:$0xff]  ;;  %v4388_v7 = vmul.f32 %v4383_v28, %v13507_v17 }
 0x399   :  { %v4195_v33 = vsel %vm1001_vm5, %v4189_v18, %v4193_v32  ;;  %v4201_v43 = vsel %vm1001_vm5, %v4193_v32, %v4181_v8  ;;  %4350 = vmatprep.mubr.f32.mxu1 %v13485_v13  ;;  %v13505_v18 = vld [vmem:[#allocation24_spill] sm:$0xff]  ;;  %v13506_v32 = vld [vmem:[#allocation21_spill] sm:$0xff] }
 0x39a   :  { %v4208_v48 = vmul.f32 %v4195_v33, %v13502_v5  ;;  %v4364_v27 = vpop.permute.xlu1 %4363  ;;  %4243 = vmatprep.subr.mxu0 %v4207_v9  ;;  %v4209_v61 = vmul.f32 %v4201_v43, %v13503_v29  ;;  %v4386_v33 = vmul.f32 %v4379_v54, %v13504_v24  ;;  %v4385_v43 = vmul.f32 %v4381_v3, %v13505_v18 }
 0x39b   :  { %4244 = vmatpush1.msra.mxu0 %v4206_v52  ;;  %v4387_v34 = vmul.f32 %v4377_v30, %v13506_v32  ;;  %v9361_v30 = vld [vmem:[%s13265_s8 + $0x38] sm:$0xff] }
 0x39c   :  { %4314 = vmatprep.subr.mxu1 %v4209_v61  ;;  %v4368_v8 = vpop.permute.xlu0 %4367  ;;  %4245 = vmatprep.subr.mxu0 %v4203_v44  ;;  %v4562_v44 = vsel %vm1379_vm7, %v10429_v0, %v10431_v31 }
 0x39d   :  { %4246 = vmatpush1.msra.mxu0 %v4202_v55  ;;  %4315 = vmatpush1.msra.mxu1 %v4208_v48  ;;  %v4382_v53 = vsel %vm1190_vm6, %v4364_v27, %v4368_v8 }
 0x39e   :  { %v4372_v37 = vpop.permute.xlu1 %4371  ;;  %9356 = vmatmul.mubr.msk.f32.vlgmr.msra.gmra.mxu0 %vm3292_vm9, %v9355_v47  ;;  %4316 = vmatprep.subr.mxu1 %v4205_v58  ;;  %v4389_v11 = vmul.f32 %v4382_v53, %v13505_v18  ;;  %v13508_v58 = vld [vmem:[#allocation27_spill] sm:$0xff]  ;;  %v4566_v53 = vsel %vm1379_vm7, %v10433_v46, %v10427_v42 }
 0x39f   :  { %v4380_v50 = vsel %vm1190_vm6, %v4368_v8, %v4372_v37  ;;  %4317 = vmatpush1.msra.mxu1 %v4204_v45  ;;  %4462 = vmatprep.mubr.f32.mxu0 %v13485_v13 }
 0x3a0   :  { %9357 = vmatmul.mubr.msk.f32.vlgmr.msra.gmra.mxu1 %vm3292_vm9, %v9355_v47  ;;  %v4376_v4 = vpop.permute.xlu0 %4375  ;;  %v4390_v49 = vmul.f32 %v4380_v50, %v13504_v24  ;;  %v4564_v47 = vsel %vm1379_vm7, %v10427_v42, %v10429_v0  ;;  %v4560_v0 = vsel %vm1379_vm7, %v10431_v31, %v10433_v46  ;;  %v13511_v42 = vld [vmem:[#allocation26_spill] sm:$0xff] }
 0x3a1   :  { %v4378_v15 = vsel %vm1190_vm6, %v4372_v37, %v4376_v4  ;;  %v4384_v26 = vsel %vm1190_vm6, %v4376_v4, %v4364_v27  ;;  %4533 = vmatprep.mubr.f32.mxu1 %v13485_v13  ;;  %v13509_v37 = vld [vmem:[#allocation28_spill] sm:$0xff]  ;;  %v13510_v4 = vld [vmem:[#allocation25_spill] sm:$0xff]  ;;  %v4571_v31 = vmul.f32 %v4566_v53, %v13511_v42 }
 0x3a2   :  { %v4391_v9 = vmul.f32 %v4378_v15, %v13506_v32  ;;  %v4547_v14 = vpop.permute.xlu1 %4546  ;;  %4426 = vmatprep.subr.mxu0 %v4390_v49  ;;  %v4392_v52 = vmul.f32 %v4384_v26, %v13507_v17  ;;  %v4569_v15 = vmul.f32 %v4562_v44, %v13508_v58  ;;  %v4568_v26 = vmul.f32 %v4564_v47, %v13509_v37 }
 0x3a3   :  { %4427 = vmatpush1.msra.mxu0 %v4389_v11  ;;  %v4570_v46 = vmul.f32 %v4560_v0, %v13510_v4  ;;  %v4747_v44 = vsel %vm1568_vm8, %v10435_v12, %v10437_v2 }
 0x3a4   :  { %4497 = vmatprep.subr.mxu1 %v4392_v52  ;;  %v4551_v48 = vpop.permute.xlu0 %4550  ;;  %4428 = vmatprep.subr.mxu0 %v4386_v33 }
 0x3a5   :  { %4429 = vmatpush1.msra.mxu0 %v4385_v43  ;;  %4498 = vmatpush1.msra.mxu1 %v4391_v9  ;;  %v4565_v27 = vsel %vm1379_vm7, %v4547_v14, %v4551_v48 }
 0x3a6   :  { %v4555_v61 = vpop.permute.xlu1 %4554  ;;  %9359 = vmatmul.mubr.msk.f32.vlgmr.msra.gmra.mxu0 %vm3292_vm9, %v9358_v35  ;;  %4499 = vmatprep.subr.mxu1 %v4388_v7  ;;  %v4572_v54 = vmul.f32 %v4565_v27, %v13509_v37  ;;  %v13513_v7 = vld [vmem:[#allocation32_spill] sm:$0xff] }
 0x3a7   :  { %v4563_v55 = vsel %vm1379_vm7, %v4551_v48, %v4555_v61  ;;  %4500 = vmatpush1.msra.mxu1 %v4387_v34  ;;  %4645 = vmatprep.mubr.f32.mxu0 %v13485_v13  ;;  %v4751_v0 = vmul.f32 %v4747_v44, %v13513_v7  ;;  %v13517_v44 = vld [vmem:[#allocation36_spill] sm:$0xff] }
 0x3a8   :  { %9360 = vmatmul.mubr.msk.f32.vlgmr.msra.gmra.mxu1 %vm3292_vm9, %v9358_v35  ;;  %v4559_v8 = vpop.permute.xlu0 %4558  ;;  %v4573_v45 = vmul.f32 %v4563_v55, %v13508_v58  ;;  %v13512_v35 = vld [vmem:[#allocation30_spill] sm:$0xff]  ;;  %v13514_v55 = vld [vmem:[#allocation29_spill] sm:$0xff] }
 0x3a9   :  { %v4561_v50 = vsel %vm1379_vm7, %v4555_v61, %v4559_v8  ;;  %v4567_v3 = vsel %vm1379_vm7, %v4559_v8, %v4547_v14  ;;  %4716 = vmatprep.mubr.f32.mxu1 %v13485_v13 }
 0x3aa   :  { %v4574_v49 = vmul.f32 %v4561_v50, %v13510_v4  ;;  %v4730_v28 = vpop.permute.xlu1 %4729  ;;  %4609 = vmatprep.subr.mxu0 %v4573_v45  ;;  %v4575_v11 = vmul.f32 %v4567_v3, %v13511_v42  ;;  %v13515_v45 = vld [vmem:[#allocation31_spill] sm:$0xff] }
 0x3ab   :  { %4610 = vmatpush1.msra.mxu0 %v4572_v54 }
 0x3ac   :  { %4680 = vmatprep.subr.mxu1 %v4575_v11  ;;  %v4734_v9 = vpop.permute.xlu0 %4733  ;;  %4611 = vmatprep.subr.mxu0 %v4569_v15  ;;  %v9364_v11 = vld [vmem:[%s13265_s8 + $0x40] sm:$0xff] }
 0x3ad   :  { %4612 = vmatpush1.msra.mxu0 %v4568_v26  ;;  %4681 = vmatpush1.msra.mxu1 %v4574_v49  ;;  %v4748_v14 = vsel %vm1568_vm8, %v4730_v28, %v4734_v9 }
 0x3ae   :  { %v4738_v52 = vpop.permute.xlu1 %4737  ;;  %9362 = vmatmul.mubr.msk.f32.vlgmr.msra.gmra.mxu0 %vm3292_vm9, %v9361_v30  ;;  %4682 = vmatprep.subr.mxu1 %v4571_v31  ;;  %v4755_v34 = vmul.f32 %v4748_v14, %v13513_v7 }
 0x3af   :  { %v4746_v33 = vsel %vm1568_vm8, %v4734_v9, %v4738_v52  ;;  %4683 = vmatpush1.msra.mxu1 %v4570_v46  ;;  %4828 = vmatprep.mubr.f32.mxu0 %v13485_v13 }
 0x3b0   :  { %9363 = vmatmul.mubr.msk.f32.vlgmr.msra.gmra.mxu1 %vm3292_vm9, %v9361_v30  ;;  %v4742_v43 = vpop.permute.xlu0 %4741  ;;  %v4756_v48 = vmul.f32 %v4746_v33, %v13512_v35 }
 0x3b1   :  { %v4744_v27 = vsel %vm1568_vm8, %v4738_v52, %v4742_v43  ;;  %v4750_v61 = vsel %vm1568_vm8, %v4742_v43, %v4730_v28  ;;  %4899 = vmatprep.mubr.f32.mxu1 %v13485_v13  ;;  %v13516_v43 = vld [vmem:[#allocation35_spill] sm:$0xff] }
 0x3b2   :  { %v4757_v47 = vmul.f32 %v4744_v27, %v13514_v55  ;;  %v4736_v8 = vpop.permute.xlu1 %4735  ;;  %4792 = vmatprep.subr.mxu0 %v4756_v48  ;;  %v4758_v53 = vmul.f32 %v4750_v61, %v13515_v45 }
 0x3b3   :  { %v4745_v54 = vsel %vm1568_vm8, %v10437_v2, %v4736_v8  ;;  %4793 = vmatpush1.msra.mxu0 %v4755_v34 }
 0x3b4   :  { %4863 = vmatprep.subr.mxu1 %v4758_v53  ;;  %v4740_v50 = vpop.permute.xlu0 %4739  ;;  %v4752_v3 = vmul.f32 %v4745_v54, %v13512_v35  ;;  %v13518_v53 = vld [vmem:[#allocation33_spill] sm:$0xff] }
 0x3b5   :  { %v4743_v49 = vsel %vm1568_vm8, %v4736_v8, %v4740_v50  ;;  %v4749_v28 = vsel %vm1568_vm8, %v4740_v50, %v10435_v12  ;;  %4864 = vmatpush1.msra.mxu1 %v4757_v47 }
 0x3b6   :  { %v4753_v2 = vmul.f32 %v4743_v49, %v13514_v55  ;;  %4794 = vmatprep.subr.mxu0 %v4752_v3  ;;  %v4754_v15 = vmul.f32 %v4749_v28, %v13515_v45  ;;  %v13519_v28 = vld [vmem:[#allocation34_spill] sm:$0xff] }
 0x3b7   :  { %4795 = vmatpush1.msra.mxu0 %v4751_v0 }
 0x3b8   :  { %9365 = vmatmul.mubr.msk.f32.vlgmr.msra.gmra.mxu0 %vm3292_vm9, %v9364_v11  ;;  %4865 = vmatprep.subr.mxu1 %v4754_v15 }
 0x3b9   :  { %4866 = vmatpush1.msra.mxu1 %v4753_v2  ;;  %5053 = vmatprep.mubr.f32.mxu0 %v13485_v13 }
 0x3ba   :  { %9366 = vmatmul.mubr.msk.f32.vlgmr.msra.gmra.mxu1 %vm3292_vm9, %v9364_v11 }
 0x3bb   :  { %5124 = vmatprep.mubr.f32.mxu1 %v13485_v13 }
 0x3bf   :  { %v10747_v12 = vpop.permute.xlu1 %3440 }
 0x3c1   :  { %v10749_v26 = vpop.permute.xlu0 %4925 }
 0x3c3   :  { %v4921_v30 = vpop.permute.xlu1 %4920 }
 0x3c4   :  { %v4932_v46 = vmul.f32 %v4921_v30, %v10288_v40  ;;  %v4934_v52 = vmul.f32 %v4921_v30, %v10294_v1 }
 0x3c5   :  { %v10751_v9 = vpop.permute.xlu0 %4955 }
 0x3c7   :  { %v4916_v31 = vpop.permute.xlu1 %4915 }
 0x3c8   :  { %v4929_v48 = vmul.f32 %v4916_v31, %v13516_v43  ;;  %v4931_v47 = vmul.f32 %v4916_v31, %v13517_v44  ;;  %v4928_v54 = vmul.f32 %v4916_v31, %v13518_v53  ;;  %v4930_v11 = vmul.f32 %v4916_v31, %v13519_v28 }
 0x3c9   :  { %v4951_v14 = vpop.permute.xlu0 %4950  ;;  %v4933_v31 = vmul.f32 %v4921_v30, %v10291_v63 }
 0x3ca   :  { %v4962_v33 = vadd.f32 %v4951_v14, %v4932_v46  ;;  %v4964_v27 = vadd.f32 %v4951_v14, %v4934_v52 }
 0x3cb   :  { %v4946_v34 = vpop.permute.xlu1 %4945 }
 0x3cc   :  { %v10756_v61 = vmax.f32 %v4962_v33, 0.0  ;;  %v4959_v8 = vadd.f32 %v4946_v34, %v4929_v48  ;;  %v4961_v50 = vadd.f32 %v4946_v34, %v4931_v47  ;;  %v10764_v0 = vmax.f32 %v4964_v27, 0.0  ;;  %v13520_v48 = vld [vmem:[#allocation40_spill] sm:$0xff] }
 0x3cd   :  { %v4958_v49 = vadd.f32 %v4946_v34, %v4928_v54  ;;  %v4960_v15 = vadd.f32 %v4946_v34, %v4930_v11  ;;  %v4963_v33 = vadd.f32 %v4951_v14, %v4933_v31  ;;  %v4935_v34 = vmul.f32 %v4921_v30, %v13520_v48 }
 0x3ce   :  { %5142 = vrot.lane.b32.xlu0 %v10756_v61, %s9510_s19  ;;  %v10762_v3 = vmax.f32 %v4959_v8, 0.0  ;;  %v10771_v2 = vmax.f32 %v4961_v50, 0.0 }
 0x3cf   :  { %v10773_v46 = vmax.f32 %v4958_v49, 0.0  ;;  %v10779_v52 = vmax.f32 %v4960_v15, 0.0  ;;  %v4965_v27 = vadd.f32 %v4951_v14, %v4935_v34  ;;  %v10835_v47 = vmax.f32 %v4963_v33, 0.0  ;;  %v3362_v49 = vpop.f32.mrf.mxu0  ;;  %v3433_v15 = vpop.f32.mrf.mxu1 }
 0x3d0   :  { %5146 = vrot.lane.b32.xlu1 %v10762_v3, %s9510_s19  ;;  %v3443_v16 = vadd.f32 %v10747_v12, %v3362_v49  ;;  %v3445_v51 = vadd.f32 %v10747_v12, %v3433_v15 }
 0x3d1   :  { %v10841_v8 = vmax.f32 %v4965_v27, 0.0  ;;  %v3364_v33 = vpop.f32.mrf.mxu0  ;;  %v3435_v27 = vpop.f32.mrf.mxu1 }
 0x3d2   :  { %5154 = vrot.lane.b32.xlu0 %v10764_v0, %s9510_s19  ;;  %v3444_v59 = vadd.f32 %v10747_v12, %v3364_v33 }
 0x3d4   :  { %5158 = vrot.lane.b32.xlu1 %v10771_v2, %s9510_s19 }
 0x3d6   :  { %5140 = vrot.lane.b32.xlu0 %v10773_v46, %s9510_s19 }
 0x3d8   :  { %5344 = vrot.lane.b32.xlu1 %v10762_v3, %s9511_s25 }
 0x3da   :  { %5152 = vrot.lane.b32.xlu0 %v10779_v52, %s9510_s19 }
 0x3dc   :  { %5356 = vrot.lane.b32.xlu1 %v10771_v2, %s9511_s25 }
 0x3de   :  { %5340 = vrot.lane.b32.xlu0 %v10756_v61, %s9511_s25 }
 0x3e0   :  { %5543 = vrot.lane.b32.xlu1 %v10762_v3, %s9512_s26 }
 0x3e2   :  { %5352 = vrot.lane.b32.xlu0 %v10764_v0, %s9511_s25 }
 0x3e4   :  { %5555 = vrot.lane.b32.xlu1 %v10771_v2, %s9512_s26 }
 0x3e6   :  { %5338 = vrot.lane.b32.xlu0 %v10773_v46, %s9511_s25 }
 0x3e8   :  { %5742 = vrot.lane.b32.xlu1 %v10762_v3, %s9513_s27 }
 0x3ea   :  { %5350 = vrot.lane.b32.xlu0 %v10779_v52, %s9511_s25 }
 0x3ec   :  { %5754 = vrot.lane.b32.xlu1 %v10771_v2, %s9513_s27 }
 0x3ee   :  { %5539 = vrot.lane.b32.xlu0 %v10756_v61, %s9512_s26 }
 0x3f0   :  { %5941 = vrot.lane.b32.xlu1 %v10762_v3, %s9514_s28 }
 0x3f2   :  { %5551 = vrot.lane.b32.xlu0 %v10764_v0, %s9512_s26 }
 0x3f4   :  { %5953 = vrot.lane.b32.xlu1 %v10771_v2, %s9514_s28 }
 0x3f6   :  { %5537 = vrot.lane.b32.xlu0 %v10773_v46, %s9512_s26 }
 0x3f8   :  { %6140 = vrot.lane.b32.xlu1 %v10762_v3, %s9515_s29 }
 0x3fa   :  { %5549 = vrot.lane.b32.xlu0 %v10779_v52, %s9512_s26 }
 0x3fc   :  { %6152 = vrot.lane.b32.xlu1 %v10771_v2, %s9515_s29 }
 0x3fe   :  { %5738 = vrot.lane.b32.xlu0 %v10756_v61, %s9513_s27 }
 0x400   :  { %6339 = vrot.lane.b32.xlu1 %v10762_v3, %s9516_s30 }
 0x402   :  { %5750 = vrot.lane.b32.xlu0 %v10764_v0, %s9513_s27 }
 0x404   :  { %6351 = vrot.lane.b32.xlu1 %v10771_v2, %s9516_s30 }
 0x406   :  { %5736 = vrot.lane.b32.xlu0 %v10773_v46, %s9513_s27 }
 0x408   :  { %6538 = vrot.lane.b32.xlu1 %v10762_v3, %s9518_s0 }
 0x40a   :  { %5748 = vrot.lane.b32.xlu0 %v10779_v52, %s9513_s27 }
 0x40c   :  { %5148 = vrot.lane.b32.xlu1 %v10835_v47, %s9510_s19 }
 0x40e   :  { %5937 = vrot.lane.b32.xlu0 %v10756_v61, %s9514_s28 }
 0x410   :  { %5160 = vrot.lane.b32.xlu1 %v10841_v8, %s9510_s19 }
 0x412   :  { %5949 = vrot.lane.b32.xlu0 %v10764_v0, %s9514_s28 }
 0x414   :  { %5346 = vrot.lane.b32.xlu1 %v10835_v47, %s9511_s25 }
 0x416   :  { %5935 = vrot.lane.b32.xlu0 %v10773_v46, %s9514_s28 }
 0x418   :  { %5358 = vrot.lane.b32.xlu1 %v10841_v8, %s9511_s25 }
 0x41a   :  { %5947 = vrot.lane.b32.xlu0 %v10779_v52, %s9514_s28 }
 0x41c   :  { %5545 = vrot.lane.b32.xlu1 %v10835_v47, %s9512_s26 }
 0x41e   :  { %6136 = vrot.lane.b32.xlu0 %v10756_v61, %s9515_s29 }
 0x420   :  { %5557 = vrot.lane.b32.xlu1 %v10841_v8, %s9512_s26 }
 0x422   :  { %6148 = vrot.lane.b32.xlu0 %v10764_v0, %s9515_s29 }
 0x424   :  { %5744 = vrot.lane.b32.xlu1 %v10835_v47, %s9513_s27 }
 0x426   :  { %6134 = vrot.lane.b32.xlu0 %v10773_v46, %s9515_s29 }
 0x428   :  { %5756 = vrot.lane.b32.xlu1 %v10841_v8, %s9513_s27 }
 0x42a   :  { %6146 = vrot.lane.b32.xlu0 %v10779_v52, %s9515_s29 }
 0x42c   :  { %5943 = vrot.lane.b32.xlu1 %v10835_v47, %s9514_s28 }
 0x42e   :  { %6335 = vrot.lane.b32.xlu0 %v10756_v61, %s9516_s30 }
 0x430   :  { %5955 = vrot.lane.b32.xlu1 %v10841_v8, %s9514_s28 }
 0x432   :  { %6347 = vrot.lane.b32.xlu0 %v10764_v0, %s9516_s30 }
 0x434   :  { %6142 = vrot.lane.b32.xlu1 %v10835_v47, %s9515_s29 }
 0x436   :  { %6333 = vrot.lane.b32.xlu0 %v10773_v46, %s9516_s30 }
 0x438   :  { %6154 = vrot.lane.b32.xlu1 %v10841_v8, %s9515_s29 }
 0x43a   :  { %6345 = vrot.lane.b32.xlu0 %v10779_v52, %s9516_s30 }
 0x43c   :  { %6341 = vrot.lane.b32.xlu1 %v10835_v47, %s9516_s30 }
 0x43e   :  { %6534 = vrot.lane.b32.xlu0 %v10756_v61, %s9518_s0 }
 0x43f   :  { %v3549_v28 = vpop.f32.mrf.mxu0 }
 0x440   :  { %v10891_v30 = vpop.permute.xlu0 %5142  ;;  %6353 = vrot.lane.b32.xlu1 %v10841_v8, %s9516_s30  ;;  %v3620_v53 = vpop.f32.mrf.mxu1  ;;  %v3625_v56 = vadd.f32 %v3549_v28, %v3443_v16 }
 0x441   :  { %v3551_v43 = vpop.f32.mrf.mxu0  ;;  %v3627_v41 = vadd.f32 %v3620_v53, %v3445_v51 }
 0x442   :  { %6546 = vrot.lane.b32.xlu0 %v10764_v0, %s9518_s0  ;;  %v10897_v14 = vpop.permute.xlu1 %5146  ;;  %v3622_v48 = vpop.f32.mrf.mxu1 }
 0x444   :  { %v10899_v54 = vpop.permute.xlu0 %5154  ;;  %6540 = vrot.lane.b32.xlu1 %v10835_v47, %s9518_s0 }
 0x446   :  { %6532 = vrot.lane.b32.xlu0 %v10773_v46, %s9518_s0  ;;  %v10905_v50 = vpop.permute.xlu1 %5158 }
 0x447   :  { %v3732_v40 = vpop.f32.mrf.mxu0 }
 0x448   :  { %v10907_v11 = vpop.permute.xlu0 %5140  ;;  %6552 = vrot.lane.b32.xlu1 %v10841_v8, %s9518_s0  ;;  %v3803_v45 = vpop.f32.mrf.mxu1 }
 0x449   :  { %v3734_v55 = vpop.f32.mrf.mxu0  ;;  %v3810_v49 = vadd.f32 %v3803_v45, %v3627_v41 }
 0x44a   :  { %v10911_v31 = vpop.permute.xlu1 %5344  ;;  %v3805_v35 = vpop.f32.mrf.mxu1 }
 0x44b   :  { %13521 = vst [vmem:[#allocation41_spill] sm:$0xff] %v10911_v31 }
 0x44c   :  { %v10913_v34 = vpop.permute.xlu0 %5152 }
 0x44e   :  { %v10915_v44 = vpop.permute.xlu1 %5356 }
 0x44f   :  { %13522 = vst [vmem:[#allocation42_spill] sm:$0xff] %v10915_v44  ;;  %v3915_v42 = vpop.f32.mrf.mxu0 }
 0x450   :  { %v10917_v1 = vpop.permute.xlu0 %5340  ;;  %v3986_v37 = vpop.f32.mrf.mxu1 }
 0x451   :  { %13523 = vst [vmem:[#allocation43_spill] sm:$0xff] %v10917_v1  ;;  %v3917_v58 = vpop.f32.mrf.mxu0  ;;  %v3808_v1 = vadd.f32 %v3732_v40, %v3625_v56  ;;  %v3993_v15 = vadd.f32 %v3986_v37, %v3810_v49 }
 0x452   :  { %v10919_v63 = vpop.permute.xlu1 %5543  ;;  %v3988_v32 = vpop.f32.mrf.mxu1 }
 0x453   :  { %13524 = vst [vmem:[#allocation44_spill] sm:$0xff] %v10919_v63  ;;  %v3991_v31 = vadd.f32 %v3915_v42, %v3808_v1 }
 0x454   :  { %v10921_v7 = vpop.permute.xlu0 %5352 }
 0x455   :  { %13525 = vst [vmem:[#allocation45_spill] sm:$0xff] %v10921_v7  ;;  %v3626_v7 = vadd.f32 %v3551_v43, %v3444_v59 }
 0x456   :  { %v10923_v4 = vpop.permute.xlu1 %5555 }
 0x457   :  { %13526 = vst [vmem:[#allocation46_spill] sm:$0xff] %v10923_v4  ;;  %v4098_v18 = vpop.f32.mrf.mxu0  ;;  %v3446_v4 = vadd.f32 %v10747_v12, %v3435_v27  ;;  %v3809_v38 = vadd.f32 %v3734_v55, %v3626_v7 }
 0x458   :  { %v10925_v17 = vpop.permute.xlu0 %5338  ;;  %v4169_v29 = vpop.f32.mrf.mxu1  ;;  %v4174_v28 = vadd.f32 %v4098_v18, %v3991_v31 }
 0x459   :  { %13527 = vst [vmem:[#allocation47_spill] sm:$0xff] %v10925_v17  ;;  %v4100_v5 = vpop.f32.mrf.mxu0  ;;  %v3628_v25 = vadd.f32 %v3622_v48, %v3446_v4  ;;  %v3992_v16 = vadd.f32 %v3917_v58, %v3809_v38  ;;  %v4176_v51 = vadd.f32 %v4169_v29, %v3993_v15 }
 0x45a   :  { %v10927_v24 = vpop.permute.xlu1 %5742  ;;  %v4171_v36 = vpop.f32.mrf.mxu1 }
 0x45b   :  { %13528 = vst [vmem:[#allocation48_spill] sm:$0xff] %v10927_v24  ;;  %v3811_v20 = vadd.f32 %v3805_v35, %v3628_v25  ;;  %v4175_v59 = vadd.f32 %v4100_v5, %v3992_v16 }
 0x45c   :  { %v10929_v60 = vpop.permute.xlu0 %5350 }
 0x45d   :  { %13529 = vst [vmem:[#allocation49_spill] sm:$0xff] %v10929_v60  ;;  %v3994_v12 = vadd.f32 %v3988_v32, %v3811_v20 }
 0x45e   :  { %v4281_v62 = vpop.f32.mrf.mxu0  ;;  %v10931_v23 = vpop.permute.xlu1 %5754 }
 0x45f   :  { %13530 = vst [vmem:[#allocation50_spill] sm:$0xff] %v10931_v23  ;;  %v4357_v56 = vadd.f32 %v4281_v62, %v4174_v28  ;;  %v4177_v4 = vadd.f32 %v4171_v36, %v3994_v12 }
 0x460   :  { %v4352_v6 = vpop.f32.mrf.mxu1  ;;  %v4283_v57 = vpop.f32.mrf.mxu0 }
 0x461   :  { %v10936_v63 = vpop.permute.xlu0 %5539  ;;  %v4359_v41 = vadd.f32 %v4352_v6, %v4176_v51  ;;  %v4358_v7 = vadd.f32 %v4283_v57, %v4175_v59 }
 0x462   :  { %13531 = vst [vmem:[#allocation51_spill] sm:$0xff] %v10936_v63  ;;  %v4354_v24 = vpop.f32.mrf.mxu1  ;;  %v10939_v60 = vpop.permute.xlu1 %5941 }
 0x463   :  { %v4360_v25 = vadd.f32 %v4354_v24, %v4177_v4 }
 0x465   :  { %v10941_v63 = vpop.permute.xlu0 %5551 }
 0x466   :  { %v4464_v39 = vpop.f32.mrf.mxu0  ;;  %v10943_v40 = vpop.permute.xlu1 %5953 }
 0x467   :  { %v4540_v1 = vadd.f32 %v4464_v39, %v4357_v56 }
 0x468   :  { %v4535_v23 = vpop.f32.mrf.mxu1  ;;  %v4466_v33 = vpop.f32.mrf.mxu0 }
 0x469   :  { %v4542_v37 = vadd.f32 %v4535_v23, %v4359_v41  ;;  %v10945_v38 = vpop.permute.xlu0 %5537  ;;  %v4541_v18 = vadd.f32 %v4466_v33, %v4358_v7 }
 0x46a   :  { %v4537_v44 = vpop.f32.mrf.mxu1  ;;  %v10947_v20 = vpop.permute.xlu1 %6140 }
 0x46b   :  { %v4543_v5 = vadd.f32 %v4537_v44, %v4360_v25 }
 0x46d   :  { %v10957_v45 = vpop.permute.xlu0 %5549 }
 0x46e   :  { %v4647_v17 = vpop.f32.mrf.mxu0  ;;  %v10966_v27 = vpop.permute.xlu1 %6152 }
 0x46f   :  { %v4723_v58 = vadd.f32 %v4647_v17, %v4540_v1 }
 0x470   :  { %v4718_v43 = vpop.f32.mrf.mxu1  ;;  %v4649_v42 = vpop.f32.mrf.mxu0 }
 0x471   :  { %v4725_v62 = vadd.f32 %v4718_v43, %v4542_v37  ;;  %v4724_v29 = vadd.f32 %v4649_v42, %v4541_v18  ;;  %v10979_v51 = vpop.permute.xlu0 %5738 }
 0x472   :  { %v4720_v35 = vpop.f32.mrf.mxu1 }
 0x473   :  { %v4726_v57 = vadd.f32 %v4720_v35, %v4543_v5 }
 0x475   :  { %v11004_v43 = vpop.permute.xlu0 %5750 }
 0x478   :  { %v4830_v55 = vpop.f32.mrf.mxu0 }
 0x479   :  { %v10949_v32 = vadd.f32 %v4830_v55, %v4723_v58 }
 0x47a   :  { %v4832_v36 = vpop.f32.mrf.mxu0  ;;  %v4901_v6 = vpop.f32.mrf.mxu1 }
 0x47b   :  { %13532 = vst [vmem:[#allocation52_spill] sm:$0xff] %v10949_v32  ;;  %v4936_v39 = vmul.f32 %v10749_v26, %v10949_v32  ;;  %v10953_v23 = vadd.f32 %v4832_v36, %v4724_v29  ;;  %v10955_v24 = vadd.f32 %v4901_v6, %v4725_v62  ;;  %v4982_v29 = vld [vmem:[%s13270_s13] sm:$0xff]  ;;  %v6734_v6 = vld [vmem:[%s13271_s14 + $0x18] sm:$0xff] }
 0x47c   :  { %v4903_v17 = vpop.f32.mrf.mxu1 }
 0x47d   :  { %13533 = vst [vmem:[#allocation53_spill] sm:$0xff] %v10953_v23  ;;  %13534 = vst [vmem:[#allocation54_spill] sm:$0xff] %v10955_v24  ;;  %v4966_v53 = vadd.f32 %v10751_v9, %v4936_v39  ;;  %v4937_v44 = vmul.f32 %v10749_v26, %v10953_v23  ;;  %v4938_v48 = vmul.f32 %v10749_v26, %v10955_v24  ;;  %v6774_v39 = vld [vmem:[%s13272_s15 + $0x18] sm:$0xff] }
 0x47e   :  { %v10964_v31 = vadd.f32 %v4903_v17, %v4726_v57  ;;  %v6732_v17 = vld [vmem:[%s13271_s14 + $0x8] sm:$0xff] }
 0x47f   :  { %v10968_v49 = vmax.f32 %v4966_v53, 0.0  ;;  %v4967_v33 = vadd.f32 %v10751_v9, %v4937_v44  ;;  %v4968_v15 = vadd.f32 %v10751_v9, %v4938_v48  ;;  %v6773_v44 = vld [vmem:[%s13272_s15 + $0x10] sm:$0xff]  ;;  %v6731_v48 = vld [vmem:[%s13271_s14] sm:$0xff] }
 0x480   :  { %13535 = vst [vmem:[#allocation55_spill] sm:$0xff] %v10964_v31  ;;  %v4939_v16 = vmul.f32 %v10749_v26, %v10964_v31  ;;  %v10989_v26 = vpop.permute.xlu1 %6339  ;;  %v5173_v31 = vsel %vm246_vm1, %v10905_v50, %v10907_v11 }
 0x481   :  { %v10974_v28 = vmax.f32 %v4967_v33, 0.0  ;;  %5144 = vrot.lane.b32.xlu0 %v10968_v49, %s9510_s19  ;;  %v10981_v59 = vmax.f32 %v4968_v15, 0.0  ;;  %v6772_v33 = vld [vmem:[%s13272_s15 + $0x8] sm:$0xff]  ;;  %v5176_v32 = vmul.f32 %v5173_v31, %v9688_v19 }
 0x482   :  { %v4969_v12 = vadd.f32 %v10751_v9, %v4939_v16  ;;  %v9367_v9 = vld [vmem:[%s13269_s12 + $0x20] sm:$0xff] }
 0x483   :  { %5150 = vrot.lane.b32.xlu1 %v10974_v28, %s9510_s19  ;;  %5015 = vmatprep.subr.mxu0 %v10974_v28  ;;  %v6771_v16 = vld [vmem:[%s13272_s15] sm:$0xff] }
 0x484   :  { %v10983_v56 = vmax.f32 %v4969_v12, 0.0  ;;  %5016 = vmatpush1.msra.mxu0 %v10968_v49 }
 0x485   :  { %5156 = vrot.lane.b32.xlu0 %v10981_v59, %s9510_s19  ;;  %5017 = vmatprep.subr.mxu0 %v10835_v47 }
 0x486   :  { %5086 = vmatprep.subr.mxu1 %v10983_v56  ;;  %5018 = vmatpush1.msra.mxu0 %v10756_v61  ;;  %v11011_v61 = vpop.permute.xlu1 %6351 }
 0x487   :  { %5087 = vmatpush1.msra.mxu1 %v10981_v59  ;;  %5162 = vrot.lane.b32.xlu1 %v10983_v56, %s9510_s19  ;;  %13536 = vst [vmem:[#allocation56_spill] sm:$0xff] %v11011_v61 }
 0x488   :  { %5088 = vmatprep.subr.mxu1 %v10841_v8  ;;  %5019 = vmatprep.subr.mxu0 %v10762_v3  ;;  %v11022_v3 = vpop.permute.xlu0 %5736 }
 0x489   :  { %5089 = vmatpush1.msra.mxu1 %v10764_v0  ;;  %5020 = vmatpush1.msra.mxu0 %v10773_v46 }
 0x48a   :  { %5090 = vmatprep.subr.mxu1 %v10771_v2  ;;  %5342 = vrot.lane.b32.xlu0 %v10968_v49, %s9511_s25  ;;  %v11026_v0 = vpop.permute.xlu1 %6538 }
 0x48b   :  { %9368 = vmatmul.mubr.msk.f32.vlgmr.msra.gmra.mxu0 %vm4985_vm10, %v9367_v9  ;;  %5091 = vmatpush1.msra.mxu1 %v10779_v52  ;;  %13537 = vst [vmem:[#allocation57_spill] sm:$0xff] %v11026_v0 }
 0x48c   :  { %9369 = vmatmul.mubr.msk.f32.vlgmr.msra.gmra.mxu1 %vm4985_vm10, %v9367_v9  ;;  %5348 = vrot.lane.b32.xlu1 %v10974_v28, %s9511_s25  ;;  %v11032_v46 = vpop.permute.xlu0 %5748 }
 0x48d   :  { %5256 = vmatprep.mubr.f32.mxu0 %v13485_v13  ;;  %5327 = vmatprep.mubr.f32.mxu1 %v13485_v13 }
 0x48e   :  { %5354 = vrot.lane.b32.xlu0 %v10981_v59, %s9511_s25  ;;  %v11036_v47 = vpop.permute.xlu1 %5148 }
 0x490   :  { %5360 = vrot.lane.b32.xlu1 %v10983_v56, %s9511_s25  ;;  %v11042_v8 = vpop.permute.xlu0 %5937 }
 0x492   :  { %5541 = vrot.lane.b32.xlu0 %v10968_v49, %s9512_s26  ;;  %v11046_v4 = vpop.permute.xlu1 %5160 }
 0x494   :  { %5547 = vrot.lane.b32.xlu1 %v10974_v28, %s9512_s26  ;;  %v11052_v41 = vpop.permute.xlu0 %5949 }
 0x496   :  { %5553 = vrot.lane.b32.xlu0 %v10981_v59, %s9512_s26  ;;  %v11056_v7 = vpop.permute.xlu1 %5346 }
 0x498   :  { %5559 = vrot.lane.b32.xlu1 %v10983_v56, %s9512_s26  ;;  %v11062_v1 = vpop.permute.xlu0 %5935 }
 0x49a   :  { %5740 = vrot.lane.b32.xlu0 %v10968_v49, %s9513_s27  ;;  %v11066_v42 = vpop.permute.xlu1 %5358 }
 0x49c   :  { %5746 = vrot.lane.b32.xlu1 %v10974_v28, %s9513_s27  ;;  %v11072_v25 = vpop.permute.xlu0 %5947 }
 0x49e   :  { %5752 = vrot.lane.b32.xlu0 %v10981_v59, %s9513_s27  ;;  %v11076_v37 = vpop.permute.xlu1 %5545 }
 0x4a0   :  { %5758 = vrot.lane.b32.xlu1 %v10983_v56, %s9513_s27  ;;  %v11082_v18 = vpop.permute.xlu0 %6136 }
 0x4a2   :  { %5939 = vrot.lane.b32.xlu0 %v10968_v49, %s9514_s28  ;;  %v11086_v58 = vpop.permute.xlu1 %5557 }
 0x4a4   :  { %5945 = vrot.lane.b32.xlu1 %v10974_v28, %s9514_s28  ;;  %v11092_v35 = vpop.permute.xlu0 %6148 }
 0x4a6   :  { %5951 = vrot.lane.b32.xlu0 %v10981_v59, %s9514_s28  ;;  %v11096_v55 = vpop.permute.xlu1 %5744 }
 0x4a8   :  { %5957 = vrot.lane.b32.xlu1 %v10983_v56, %s9514_s28  ;;  %v11102_v5 = vpop.permute.xlu0 %6134 }
 0x4aa   :  { %6138 = vrot.lane.b32.xlu0 %v10968_v49, %s9515_s29  ;;  %v11106_v62 = vpop.permute.xlu1 %5756 }
 0x4ac   :  { %6144 = vrot.lane.b32.xlu1 %v10974_v28, %s9515_s29  ;;  %v11115_v36 = vpop.permute.xlu0 %6146 }
 0x4ae   :  { %6150 = vrot.lane.b32.xlu0 %v10981_v59, %s9515_s29  ;;  %v11120_v57 = vpop.permute.xlu1 %5943 }
 0x4b0   :  { %6156 = vrot.lane.b32.xlu1 %v10983_v56, %s9515_s29 }
 0x4b2   :  { %6337 = vrot.lane.b32.xlu0 %v10968_v49, %s9516_s30  ;;  %v11133_v53 = vpop.permute.xlu1 %5955 }
 0x4b4   :  { %6343 = vrot.lane.b32.xlu1 %v10974_v28, %s9516_s30 }
 0x4b6   :  { %6349 = vrot.lane.b32.xlu0 %v10981_v59, %s9516_s30  ;;  %v11146_v15 = vpop.permute.xlu1 %6142 }
 0x4b8   :  { %6355 = vrot.lane.b32.xlu1 %v10983_v56, %s9516_s30 }
 0x4ba   :  { %6536 = vrot.lane.b32.xlu0 %v10968_v49, %s9518_s0  ;;  %v11153_v12 = vpop.permute.xlu1 %6154 }
 0x4bc   :  { %6542 = vrot.lane.b32.xlu1 %v10974_v28, %s9518_s0 }
 0x4be   :  { %6548 = vrot.lane.b32.xlu0 %v10981_v59, %s9518_s0 }
 0x4c0   :  { %6554 = vrot.lane.b32.xlu1 %v10983_v56, %s9518_s0  ;;  %v11157_v56 = vpop.permute.xlu1 %6341 }
 0x4c2   :  { %6544 = vrot.lane.b32.xlu0 %v10779_v52, %s9518_s0  ;;  %v6733_v52 = vld [vmem:[%s13271_s14 + $0x10] sm:$0xff] }
 0x4c4   :  { %6550 = vrot.lane.b32.xlu1 %v10771_v2, %s9518_s0  ;;  %v11128_v2 = vpop.permute.xlu0 %6335 }
 0x4c5   :  { %13538 = vst [vmem:[#allocation58_spill] sm:$0xff] %v11128_v2 }
 0x4c6   :  { %5133 = vperm.xlu0 %9507, %v4982_v29   ;;  %v11161_v29 = vpop.permute.xlu1 %6353 }
 0x4c7   :  { %13541 = vst [vmem:[#allocation61_spill] sm:$0xff] %v11161_v29 }
 0x4c8   :  { %6752 = vperm.xlu1 %9508, %v6734_v6   ;;  %v11141_v49 = vpop.permute.xlu0 %6347 }
 0x4ca   :  { %6747 = vperm.xlu0 %9507, %v6733_v52   ;;  %v11165_v52 = vpop.permute.xlu1 %6540 }
 0x4cb   :  { %13543 = vst [vmem:[#allocation63_spill] sm:$0xff] %v11165_v52 }
 0x4cc   :  { %6792 = vperm.xlu1 %9508, %v6774_v39   ;;  %v11151_v28 = vpop.permute.xlu0 %6333 }
 0x4ce   :  { %6742 = vperm.xlu0 %9507, %v6732_v17   ;;  %v11169_v17 = vpop.permute.xlu1 %6552 }
 0x4cf   :  { %13545 = vst [vmem:[#allocation65_spill] sm:$0xff] %v11169_v17  ;;  %v5171_v17 = vsel %vm246_vm1, %v10891_v30, %v11036_v47 }
 0x4d0   :  { %6787 = vperm.xlu1 %9508, %v6773_v44   ;;  %v11155_v59 = vpop.permute.xlu0 %6345  ;;  %v5181_v29 = vmul.f32 %v5171_v17, %v9697_v22  ;;  %v13550_v17 = vld [vmem:[#allocation6_spill] sm:$0xff] }
 0x4d1   :  { %13539 = vst [vmem:[#allocation59_spill] sm:$0xff] %v11155_v59 }
 0x4d2   :  { %6737 = vperm.xlu0 %9507, %v6731_v48  }
 0x4d4   :  { %6782 = vperm.xlu1 %9508, %v6772_v33   ;;  %v11159_v9 = vpop.permute.xlu0 %6534 }
 0x4d5   :  { %13540 = vst [vmem:[#allocation60_spill] sm:$0xff] %v11159_v9 }
 0x4d6   :  { %6777 = vperm.xlu0 %9507, %v6771_v16   ;;  %v5170_v16 = vsel %vm246_vm1, %v10907_v11, %v10897_v14  ;;  %v5165_v11 = vsel %vm246_vm1, %v10899_v54, %v11046_v4 }
 0x4d7   :  { %v5177_v9 = vmul.f32 %v5170_v16, %v9697_v22  ;;  %v5168_v16 = vsel %vm246_vm1, %v11036_v47, %v10899_v54  ;;  %v13549_v54 = vld [vmem:[#allocation41_spill] sm:$0xff] }
 0x4d8   :  { %v11163_v6 = vpop.permute.xlu0 %6546 }
 0x4d9   :  { %13542 = vst [vmem:[#allocation62_spill] sm:$0xff] %v11163_v6 }
 0x4dc   :  { %v11167_v39 = vpop.permute.xlu0 %6532 }
 0x4dd   :  { %13544 = vst [vmem:[#allocation64_spill] sm:$0xff] %v11167_v39 }
 0x4f3   :  { %v5145_v44 = vpop.permute.xlu0 %5144 }
 0x4f5   :  { %v5151_v48 = vpop.permute.xlu1 %5150 }
 0x4f6   :  { %v5172_v33 = vsel %vm246_vm1, %v5145_v44, %v5151_v48 }
 0x4f7   :  { %v5157_v23 = vpop.permute.xlu0 %5156  ;;  %v5185_v24 = vmul.f32 %v5172_v33, %v9697_v22 }
 0x4f8   :  { %v5169_v39 = vsel %vm246_vm1, %v5151_v48, %v5157_v23  ;;  %v5167_v48 = vsel %vm246_vm1, %v10897_v14, %v10913_v34 }
 0x4f9   :  { %5218 = vmatprep.subr.mxu0 %v5185_v24  ;;  %v5163_v0 = vpop.permute.xlu1 %5162  ;;  %v5174_v24 = vsel %vm246_vm1, %v11046_v4, %v10891_v30  ;;  %v13547_v4 = vld [vmem:[#allocation42_spill] sm:$0xff] }
 0x4fa   :  { %v5166_v31 = vsel %vm246_vm1, %v5157_v23, %v5163_v0  ;;  %v5175_v33 = vsel %vm246_vm1, %v5163_v0, %v5145_v44  ;;  %v5164_v23 = vsel %vm246_vm1, %v10913_v34, %v10905_v50  ;;  %v13546_v0 = vld [vmem:[#allocation47_spill] sm:$0xff]  ;;  %v13548_v44 = vld [vmem:[#allocation2_spill] sm:$0xff]  ;;  %v5183_v50 = vmul.f32 %v5165_v11, %v9694_v21  ;;  %v13551_v11 = vld [vmem:[#allocation5_spill] sm:$0xff] }
 0x4fb   :  { %v5184_v52 = vmul.f32 %v5175_v33, %v9688_v19  ;;  %v5187_v30 = vmul.f32 %v5166_v31, %v9694_v21  ;;  %v5371_v14 = vsel %vm434_vm2, %v13547_v4, %v13546_v0  ;;  %v5186_v61 = vmul.f32 %v5169_v39, %v13548_v44 }
 0x4fc   :  { %v5343_v6 = vpop.permute.xlu0 %5342  ;;  %v5368_v47 = vsel %vm434_vm2, %v13546_v0, %v13549_v54  ;;  %v5180_v31 = vmul.f32 %v5174_v24, %v9688_v19  ;;  %v5178_v34 = vmul.f32 %v5167_v48, %v13548_v44  ;;  %v5182_v2 = vmul.f32 %v5168_v16, %v13548_v44  ;;  %v13552_v16 = vld [vmem:[#allocation49_spill] sm:$0xff] }
 0x4fd   :  { %5289 = vmatprep.subr.mxu1 %v5187_v30  ;;  %5219 = vmatpush1.msra.mxu0 %v5184_v52  ;;  %v5374_v22 = vmul.f32 %v5371_v14, %v13550_v17  ;;  %v5179_v24 = vmul.f32 %v5164_v23, %v9694_v21  ;;  %v5188_v52 = vld [vmem:[%s13269_s12] sm:$0xff]  ;;  %v5362_v30 = vsel %vm434_vm2, %v13552_v16, %v13547_v4  ;;  %v13553_v23 = vld [vmem:[#allocation43_spill] sm:$0xff]  ;;  %v13554_v14 = vld [vmem:[#allocation45_spill] sm:$0xff] }
 0x4fe   :  { %v5349_v33 = vpop.permute.xlu1 %5348  ;;  %5220 = vmatprep.subr.mxu0 %v5181_v29  ;;  %5290 = vmatpush1.msra.mxu1 %v5186_v61  ;;  %v5365_v61 = vsel %vm434_vm2, %v13549_v54, %v13552_v16  ;;  %v5375_v29 = vmul.f32 %v5368_v47, %v13551_v11  ;;  %v5369_v0 = vsel %vm434_vm2, %v13553_v23, %v11056_v7 }
 0x4ff   :  { %v5370_v39 = vsel %vm434_vm2, %v5343_v6, %v5349_v33  ;;  %5221 = vmatpush1.msra.mxu0 %v5180_v31  ;;  %5291 = vmatprep.subr.mxu1 %v5183_v50  ;;  %v5363_v31 = vsel %vm434_vm2, %v13554_v14, %v11066_v42  ;;  %v5366_v47 = vsel %vm434_vm2, %v11056_v7, %v13554_v14  ;;  %v13558_v7 = vld [vmem:[#allocation44_spill] sm:$0xff] }
 0x500   :  { %v5355_v59 = vpop.permute.xlu0 %5354  ;;  %v5383_v48 = vmul.f32 %v5370_v39, %v13551_v11  ;;  %5222 = vmatprep.subr.mxu0 %v5177_v9  ;;  %5292 = vmatpush1.msra.mxu1 %v5182_v2  ;;  %v5372_v2 = vsel %vm434_vm2, %v11066_v42, %v13553_v23  ;;  %v13555_v42 = vld [vmem:[#allocation8_spill] sm:$0xff]  ;;  %v5379_v16 = vmul.f32 %v5369_v0, %v13551_v11 }
 0x501   :  { %v5367_v4 = vsel %vm434_vm2, %v5349_v33, %v5355_v59  ;;  %5293 = vmatprep.subr.mxu1 %v5179_v24  ;;  %5223 = vmatpush1.msra.mxu0 %v5176_v32  ;;  %v13557_v24 = vld [vmem:[#allocation7_spill] sm:$0xff]  ;;  %v5381_v14 = vmul.f32 %v5363_v31, %v13555_v42 }
 0x502   :  { %v5361_v50 = vpop.permute.xlu1 %5360  ;;  %9370 = vmatmul.mubr.msk.f32.vlgmr.msra.gmra.mxu0 %vm4985_vm10, %v5188_v52  ;;  %5294 = vmatpush1.msra.mxu1 %v5178_v34  ;;  %v5384_v34 = vmul.f32 %v5367_v4, %v13557_v24  ;;  %v5376_v4 = vmul.f32 %v5365_v61, %v13557_v24  ;;  %v5380_v0 = vmul.f32 %v5366_v47, %v13557_v24  ;;  %v9372_v31 = vld [vmem:[%s13269_s12 + $0x8] sm:$0xff] }
 0x503   :  { %v5364_v9 = vsel %vm434_vm2, %v5355_v59, %v5361_v50  ;;  %v5373_v54 = vsel %vm434_vm2, %v5361_v50, %v5343_v6  ;;  %5417 = vmatprep.subr.mxu0 %v5383_v48  ;;  %9371 = vmatmul.mubr.msk.f32.vlgmr.msra.gmra.mxu1 %vm4985_vm10, %v5188_v52  ;;  %v13556_v59 = vld [vmem:[#allocation46_spill] sm:$0xff]  ;;  %v5567_v52 = vsel %vm623_vm3, %v10945_v38, %v13558_v7 }
 0x504   :  { %v5382_v32 = vmul.f32 %v5373_v54, %v13550_v17  ;;  %v5542_v33 = vpop.permute.xlu0 %5541  ;;  %v5385_v39 = vmul.f32 %v5364_v9, %v13555_v42  ;;  %v5570_v6 = vsel %vm623_vm3, %v13556_v59, %v10945_v38  ;;  %5455 = vmatprep.mubr.f32.mxu0 %v13485_v13  ;;  %5526 = vmatprep.mubr.f32.mxu1 %v13485_v13  ;;  %v13559_v9 = vld [vmem:[#allocation10_spill] sm:$0xff] }
 0x505   :  { %v5378_v48 = vmul.f32 %v5372_v2, %v13550_v17  ;;  %v5573_v54 = vmul.f32 %v5570_v6, %v13559_v9  ;;  %v5377_v38 = vmul.f32 %v5362_v30, %v13555_v42  ;;  %v13560_v2 = vld [vmem:[#allocation9_spill] sm:$0xff]  ;;  %v5561_v47 = vsel %vm623_vm3, %v10957_v45, %v13556_v59 }
 0x506   :  { %5488 = vmatprep.subr.mxu1 %v5385_v39  ;;  %v5548_v23 = vpop.permute.xlu1 %5547  ;;  %5418 = vmatpush1.msra.mxu0 %v5382_v32  ;;  %v5564_v32 = vsel %vm623_vm3, %v13558_v7, %v10957_v45  ;;  %v5574_v30 = vmul.f32 %v5567_v52, %v13560_v2  ;;  %v13561_v39 = vld [vmem:[#allocation51_spill] sm:$0xff]  ;;  %v5565_v52 = vsel %vm623_vm3, %v11076_v37, %v10941_v63 }
 0x507   :  { %v5569_v50 = vsel %vm623_vm3, %v5542_v33, %v5548_v23  ;;  %5419 = vmatprep.subr.mxu0 %v5379_v16  ;;  %5489 = vmatpush1.msra.mxu1 %v5384_v34  ;;  %v5568_v6 = vsel %vm623_vm3, %v13561_v39, %v11076_v37  ;;  %v5562_v34 = vsel %vm623_vm3, %v10941_v63, %v11086_v58  ;;  %v13565_v63 = vld [vmem:[#allocation48_spill] sm:$0xff] }
 0x508   :  { %v5554_v11 = vpop.permute.xlu0 %5553  ;;  %5420 = vmatpush1.msra.mxu0 %v5378_v48  ;;  %5490 = vmatprep.subr.mxu1 %v5381_v14  ;;  %v5582_v61 = vmul.f32 %v5569_v50, %v13560_v2  ;;  %v5571_v45 = vsel %vm623_vm3, %v11086_v58, %v13561_v39  ;;  %v13562_v58 = vld [vmem:[#allocation12_spill] sm:$0xff]  ;;  %v13564_v14 = vld [vmem:[#allocation11_spill] sm:$0xff]  ;;  %v5766_v37 = vsel %vm812_vm4, %v11022_v3, %v13565_v63 }
 0x509   :  { %5421 = vmatprep.subr.mxu0 %v5375_v29  ;;  %5491 = vmatpush1.msra.mxu1 %v5380_v0  ;;  %v5566_v59 = vsel %vm623_vm3, %v5548_v23, %v5554_v11  ;;  %v5578_v0 = vmul.f32 %v5568_v6, %v13560_v2  ;;  %v5577_v50 = vmul.f32 %v5571_v45, %v13559_v9  ;;  %v13567_v45 = vld [vmem:[#allocation13_spill] sm:$0xff] }
 0x50a   :  { %5492 = vmatprep.subr.mxu1 %v5377_v38  ;;  %v5560_v16 = vpop.permute.xlu1 %5559  ;;  %5422 = vmatpush1.msra.mxu0 %v5374_v22  ;;  %v5579_v39 = vmul.f32 %v5565_v52, %v13564_v14  ;;  %v5763_v52 = vsel %vm812_vm4, %v13565_v63, %v11032_v46 }
 0x50b   :  { %v5563_v29 = vsel %vm623_vm3, %v5554_v11, %v5560_v16  ;;  %v5572_v7 = vsel %vm623_vm3, %v5560_v16, %v5542_v33  ;;  %9373 = vmatmul.mubr.msk.f32.vlgmr.msra.gmra.mxu0 %vm4985_vm10, %v9372_v31  ;;  %5493 = vmatpush1.msra.mxu1 %v5376_v4  ;;  %v13563_v11 = vld [vmem:[#allocation50_spill] sm:$0xff]  ;;  %v5583_v4 = vmul.f32 %v5566_v59, %v13564_v14 }
 0x50c   :  { %v5581_v22 = vmul.f32 %v5572_v7, %v13559_v9  ;;  %5616 = vmatprep.subr.mxu0 %v5582_v61  ;;  %v5741_v48 = vpop.permute.xlu0 %5740  ;;  %9374 = vmatmul.mubr.msk.f32.vlgmr.msra.gmra.mxu1 %vm4985_vm10, %v9372_v31  ;;  %v5584_v23 = vmul.f32 %v5563_v29, %v13562_v58  ;;  %v5769_v33 = vsel %vm812_vm4, %v13563_v11, %v11022_v3  ;;  %v13566_v59 = vld [vmem:[#allocation14_spill] sm:$0xff] }
 0x50d   :  { %5654 = vmatprep.mubr.f32.mxu0 %v13485_v13  ;;  %5725 = vmatprep.mubr.f32.mxu1 %v13485_v13  ;;  %v5580_v31 = vmul.f32 %v5562_v34, %v13562_v58  ;;  %v5575_v61 = vmul.f32 %v5564_v32, %v13564_v14  ;;  %v5772_v16 = vmul.f32 %v5769_v33, %v13566_v59  ;;  %v9375_v34 = vld [vmem:[%s13269_s12 + $0x10] sm:$0xff] }
 0x50e   :  { %5687 = vmatprep.subr.mxu1 %v5584_v23  ;;  %v5747_v38 = vpop.permute.xlu1 %5746  ;;  %5617 = vmatpush1.msra.mxu0 %v5581_v22  ;;  %v5576_v3 = vmul.f32 %v5561_v47, %v13562_v58  ;;  %v5760_v7 = vsel %vm812_vm4, %v11032_v46, %v13563_v11  ;;  %v5773_v47 = vmul.f32 %v5766_v37, %v13567_v45  ;;  %v13569_v37 = vld [vmem:[#allocation15_spill] sm:$0xff] }
 0x50f   :  { %v5768_v6 = vsel %vm812_vm4, %v5741_v48, %v5747_v38  ;;  %5618 = vmatprep.subr.mxu0 %v5578_v0  ;;  %5688 = vmatpush1.msra.mxu1 %v5583_v4  ;;  %v5767_v22 = vsel %vm812_vm4, %v10979_v51, %v11096_v55  ;;  %v5761_v23 = vsel %vm812_vm4, %v11004_v43, %v11106_v62 }
 0x510   :  { %v5753_v29 = vpop.permute.xlu0 %5752  ;;  %5619 = vmatpush1.msra.mxu0 %v5577_v50  ;;  %5689 = vmatprep.subr.mxu1 %v5580_v31  ;;  %v5781_v32 = vmul.f32 %v5768_v6, %v13567_v45  ;;  %v5770_v46 = vsel %vm812_vm4, %v11106_v62, %v10979_v51  ;;  %v5764_v0 = vsel %vm812_vm4, %v11096_v55, %v11004_v43  ;;  %v13568_v51 = vld [vmem:[#allocation16_spill] sm:$0xff] }
 0x511   :  { %5620 = vmatprep.subr.mxu0 %v5574_v30  ;;  %5690 = vmatpush1.msra.mxu1 %v5579_v39  ;;  %v5765_v11 = vsel %vm812_vm4, %v5747_v38, %v5753_v29  ;;  %v5774_v50 = vmul.f32 %v5763_v52, %v13569_v37  ;;  %v5777_v38 = vmul.f32 %v5767_v22, %v13567_v45  ;;  %v9378_v52 = vld [vmem:[%s13269_s12 + $0x18] sm:$0xff] }
 0x512   :  { %5691 = vmatprep.subr.mxu1 %v5576_v3  ;;  %v5759_v33 = vpop.permute.xlu1 %5758  ;;  %5621 = vmatpush1.msra.mxu0 %v5573_v54  ;;  %v5776_v43 = vmul.f32 %v5770_v46, %v13566_v59  ;;  %v5779_v31 = vmul.f32 %v5761_v23, %v13568_v51  ;;  %v5965_v39 = vsel %vm1001_vm5, %v11062_v1, %v10939_v60  ;;  %v13571_v46 = vld [vmem:[#allocation20_spill] sm:$0xff] }
 0x513   :  { %v5762_v30 = vsel %vm812_vm4, %v5753_v29, %v5759_v33  ;;  %v5771_v4 = vsel %vm812_vm4, %v5759_v33, %v5741_v48  ;;  %9376 = vmatmul.mubr.msk.f32.vlgmr.msra.gmra.mxu0 %vm4985_vm10, %v9375_v34  ;;  %5692 = vmatpush1.msra.mxu1 %v5575_v61  ;;  %v5782_v48 = vmul.f32 %v5765_v11, %v13569_v37  ;;  %v13570_v33 = vld [vmem:[#allocation19_spill] sm:$0xff] }
 0x514   :  { %v5780_v54 = vmul.f32 %v5771_v4, %v13566_v59  ;;  %5815 = vmatprep.subr.mxu0 %v5781_v32  ;;  %v5940_v63 = vpop.permute.xlu0 %5939  ;;  %9377 = vmatmul.mubr.msk.f32.vlgmr.msra.gmra.mxu1 %vm4985_vm10, %v9375_v34  ;;  %v5783_v62 = vmul.f32 %v5762_v30, %v13568_v51  ;;  %v5775_v61 = vmul.f32 %v5760_v7, %v13568_v51 }
 0x515   :  { %5853 = vmatprep.mubr.f32.mxu0 %v13485_v13  ;;  %5924 = vmatprep.mubr.f32.mxu1 %v13485_v13  ;;  %v5778_v6 = vmul.f32 %v5764_v0, %v13569_v37  ;;  %v5963_v29 = vsel %vm1001_vm5, %v11120_v57, %v11052_v41  ;;  %v5968_v3 = vsel %vm1001_vm5, %v10943_v40, %v11062_v1 }
 0x516   :  { %5886 = vmatprep.subr.mxu1 %v5783_v62  ;;  %v5946_v55 = vpop.permute.xlu1 %5945  ;;  %5816 = vmatpush1.msra.mxu0 %v5780_v54  ;;  %v5959_v34 = vsel %vm1001_vm5, %v11072_v25, %v10943_v40  ;;  %v5962_v1 = vsel %vm1001_vm5, %v10939_v60, %v11072_v25  ;;  %v5966_v40 = vsel %vm1001_vm5, %v11042_v8, %v11120_v57  ;;  %v13573_v54 = vld [vmem:[#allocation18_spill] sm:$0xff] }
 0x517   :  { %5817 = vmatprep.subr.mxu0 %v5777_v38  ;;  %5887 = vmatpush1.msra.mxu1 %v5782_v48  ;;  %v5967_v32 = vsel %vm1001_vm5, %v5940_v63, %v5946_v55  ;;  %v5969_v23 = vsel %vm1001_vm5, %v11133_v53, %v11042_v8  ;;  %v5976_v25 = vmul.f32 %v5963_v29, %v13570_v33 }
 0x518   :  { %v5952_v7 = vpop.permute.xlu0 %5951  ;;  %5818 = vmatpush1.msra.mxu0 %v5776_v43  ;;  %5888 = vmatprep.subr.mxu1 %v5779_v31  ;;  %v5979_v30 = vmul.f32 %v5967_v32, %v13571_v46  ;;  %v5960_v8 = vsel %vm1001_vm5, %v11052_v41, %v11133_v53  ;;  %v5971_v48 = vmul.f32 %v5965_v39, %v13571_v46 }
 0x519   :  { %v5964_v22 = vsel %vm1001_vm5, %v5946_v55, %v5952_v7  ;;  %5819 = vmatprep.subr.mxu0 %v5773_v47  ;;  %5889 = vmatpush1.msra.mxu1 %v5778_v6  ;;  %v5972_v41 = vmul.f32 %v5962_v1, %v13570_v33  ;;  %v5978_v53 = vmul.f32 %v5969_v23, %v13573_v54 }
 0x51a   :  { %5890 = vmatprep.subr.mxu1 %v5775_v61  ;;  %v5958_v11 = vpop.permute.xlu1 %5957  ;;  %5820 = vmatpush1.msra.mxu0 %v5772_v16  ;;  %v5980_v60 = vmul.f32 %v5964_v22, %v13570_v33  ;;  %v13572_v16 = vld [vmem:[#allocation17_spill] sm:$0xff]  ;;  %v5974_v38 = vmul.f32 %v5968_v3, %v13573_v54  ;;  %v6162_v31 = vsel %vm1190_vm6, %v11146_v15, %v11092_v35  ;;  %v9381_v61 = vld [vmem:[%s13269_s12 + $0x28] sm:$0xff]  ;;  %v13575_v22 = vld [vmem:[#allocation24_spill] sm:$0xff] }
 0x51b   :  { %v5961_v57 = vsel %vm1001_vm5, %v5952_v7, %v5958_v11  ;;  %v5970_v47 = vsel %vm1001_vm5, %v5958_v11, %v5940_v63  ;;  %9379 = vmatmul.mubr.msk.f32.vlgmr.msra.gmra.mxu0 %vm4985_vm10, %v9378_v52  ;;  %5891 = vmatpush1.msra.mxu1 %v5774_v50  ;;  %v5975_v63 = vmul.f32 %v5966_v40, %v13571_v46 }
 0x51c   :  { %v5981_v4 = vmul.f32 %v5961_v57, %v13572_v16  ;;  %v6139_v0 = vpop.permute.xlu0 %6138  ;;  %9380 = vmatmul.mubr.msk.f32.vlgmr.msra.gmra.mxu1 %vm4985_vm10, %v9378_v52  ;;  %6014 = vmatprep.subr.mxu0 %v5980_v60  ;;  %v5982_v62 = vmul.f32 %v5970_v47, %v13573_v54  ;;  %v5973_v43 = vmul.f32 %v5959_v34, %v13572_v16  ;;  %v13576_v60 = vld [vmem:[#allocation21_spill] sm:$0xff]  ;;  %v13577_v57 = vld [vmem:[#allocation22_spill] sm:$0xff] }
 0x51d   :  { %6015 = vmatpush1.msra.mxu0 %v5979_v30  ;;  %6052 = vmatprep.mubr.f32.mxu0 %v13485_v13  ;;  %v5977_v55 = vmul.f32 %v5960_v8, %v13572_v16  ;;  %v6164_v39 = vsel %vm1190_vm6, %v11102_v5, %v10947_v20  ;;  %v6167_v6 = vsel %vm1190_vm6, %v10966_v27, %v11102_v5 }
 0x51e   :  { %6085 = vmatprep.subr.mxu1 %v5982_v62  ;;  %v6145_v50 = vpop.permute.xlu1 %6144  ;;  %6016 = vmatprep.subr.mxu0 %v5976_v25  ;;  %v6161_v34 = vsel %vm1190_vm6, %v10947_v20, %v11115_v36  ;;  %v6165_v32 = vsel %vm1190_vm6, %v11082_v18, %v11146_v15  ;;  %v6168_v5 = vsel %vm1190_vm6, %v11153_v12, %v11082_v18  ;;  %v13574_v20 = vld [vmem:[#allocation23_spill] sm:$0xff] }
 0x51f   :  { %6017 = vmatpush1.msra.mxu0 %v5975_v63  ;;  %6086 = vmatpush1.msra.mxu1 %v5981_v4  ;;  %v6166_v29 = vsel %vm1190_vm6, %v6139_v0, %v6145_v50  ;;  %v6175_v40 = vmul.f32 %v6162_v31, %v13574_v20  ;;  %v6159_v18 = vsel %vm1190_vm6, %v11092_v35, %v11153_v12  ;;  %v9384_v63 = vld [vmem:[%s13269_s12 + $0x30] sm:$0xff]  ;;  %v13579_v31 = vld [vmem:[#allocation58_spill] sm:$0xff] }
 0x520   :  { %v6151_v3 = vpop.permute.xlu0 %6150  ;;  %6018 = vmatprep.subr.mxu0 %v5972_v41  ;;  %6087 = vmatprep.subr.mxu1 %v5978_v53  ;;  %v6178_v15 = vmul.f32 %v6166_v29, %v13575_v22  ;;  %v6158_v8 = vsel %vm1190_vm6, %v11115_v36, %v10966_v27  ;;  %v6174_v4 = vmul.f32 %v6165_v32, %v13575_v22 }
 0x521   :  { %v6163_v7 = vsel %vm1190_vm6, %v6145_v50, %v6151_v3  ;;  %6019 = vmatpush1.msra.mxu0 %v5971_v48  ;;  %6088 = vmatpush1.msra.mxu1 %v5977_v55  ;;  %v6170_v35 = vmul.f32 %v6164_v39, %v13575_v22  ;;  %v6177_v62 = vmul.f32 %v6168_v5, %v13577_v57 }
 0x522   :  { %6089 = vmatprep.subr.mxu1 %v5974_v38  ;;  %v6157_v52 = vpop.permute.xlu1 %6156  ;;  %9382 = vmatmul.mubr.msk.f32.vlgmr.msra.gmra.mxu0 %vm4985_vm10, %v9381_v61  ;;  %v6179_v1 = vmul.f32 %v6163_v7, %v13574_v20  ;;  %v6176_v48 = vmul.f32 %v6159_v18, %v13576_v60  ;;  %v6361_v27 = vsel %vm1379_vm7, %v11157_v56, %v11141_v49  ;;  %v13582_v7 = vld [vmem:[#allocation28_spill] sm:$0xff] }
 0x523   :  { %v6160_v23 = vsel %vm1190_vm6, %v6151_v3, %v6157_v52  ;;  %v6169_v11 = vsel %vm1190_vm6, %v6157_v52, %v6139_v0  ;;  %6090 = vmatpush1.msra.mxu1 %v5973_v43  ;;  %6123 = vmatprep.mubr.f32.mxu1 %v13485_v13  ;;  %v6171_v0 = vmul.f32 %v6161_v34, %v13574_v20  ;;  %v13578_v43 = vld [vmem:[#allocation59_spill] sm:$0xff] }
 0x524   :  { %v6180_v25 = vmul.f32 %v6160_v23, %v13576_v60  ;;  %v6338_v30 = vpop.permute.xlu0 %6337  ;;  %9383 = vmatmul.mubr.msk.f32.vlgmr.msra.gmra.mxu1 %vm4985_vm10, %v9381_v61  ;;  %6213 = vmatprep.subr.mxu0 %v6179_v1  ;;  %v6181_v47 = vmul.f32 %v6169_v11, %v13577_v57  ;;  %v6173_v36 = vmul.f32 %v6167_v6, %v13577_v57  ;;  %v13580_v6 = vld [vmem:[#allocation61_spill] sm:$0xff]  ;;  %v13584_v11 = vld [vmem:[#allocation26_spill] sm:$0xff] }
 0x525   :  { %6214 = vmatpush1.msra.mxu0 %v6178_v15  ;;  %6251 = vmatprep.mubr.f32.mxu0 %v13485_v13  ;;  %v6172_v50 = vmul.f32 %v6158_v8, %v13576_v60  ;;  %v6363_v41 = vsel %vm1379_vm7, %v11151_v28, %v10989_v26  ;;  %v6360_v55 = vsel %vm1379_vm7, %v10989_v26, %v13578_v43  ;;  %v13581_v26 = vld [vmem:[#allocation27_spill] sm:$0xff] }
 0x526   :  { %6284 = vmatprep.subr.mxu1 %v6181_v47  ;;  %v6344_v12 = vpop.permute.xlu1 %6343  ;;  %6215 = vmatprep.subr.mxu0 %v6175_v40  ;;  %v6364_v61 = vsel %vm1379_vm7, %v13579_v31, %v11157_v56  ;;  %v6367_v29 = vsel %vm1379_vm7, %v13580_v6, %v13579_v31  ;;  %v6374_v32 = vmul.f32 %v6361_v27, %v13581_v26  ;;  %v13583_v40 = vld [vmem:[#allocation25_spill] sm:$0xff] }
 0x527   :  { %6216 = vmatpush1.msra.mxu0 %v6174_v4  ;;  %6285 = vmatpush1.msra.mxu1 %v6180_v25  ;;  %v6365_v53 = vsel %vm1379_vm7, %v6338_v30, %v6344_v12  ;;  %v6358_v1 = vsel %vm1379_vm7, %v11141_v49, %v13580_v6  ;;  %v13585_v25 = vld [vmem:[#allocation56_spill] sm:$0xff]  ;;  %v6373_v49 = vmul.f32 %v6364_v61, %v13582_v7  ;;  %v9387_v27 = vld [vmem:[%s13269_s12 + $0x38] sm:$0xff] }
 0x528   :  { %v6350_v38 = vpop.permute.xlu0 %6349  ;;  %6217 = vmatprep.subr.mxu0 %v6171_v0  ;;  %6286 = vmatprep.subr.mxu1 %v6177_v62  ;;  %v6377_v56 = vmul.f32 %v6365_v53, %v13582_v7  ;;  %v6357_v47 = vsel %vm1379_vm7, %v13578_v43, %v13585_v25  ;;  %v6370_v4 = vmul.f32 %v6360_v55, %v13581_v26  ;;  %v13586_v0 = vld [vmem:[#allocation62_spill] sm:$0xff]  ;;  %v13587_v62 = vld [vmem:[#allocation63_spill] sm:$0xff]  ;;  %v13588_v53 = vld [vmem:[#allocation60_spill] sm:$0xff] }
 0x529   :  { %v6362_v39 = vsel %vm1379_vm7, %v6344_v12, %v6350_v38  ;;  %6218 = vmatpush1.msra.mxu0 %v6170_v35  ;;  %6287 = vmatpush1.msra.mxu1 %v6176_v48  ;;  %v6376_v35 = vmul.f32 %v6367_v29, %v13584_v11  ;;  %v6369_v12 = vmul.f32 %v6363_v41, %v13582_v7  ;;  %v13589_v43 = vld [vmem:[#allocation57_spill] sm:$0xff]  ;;  %v13590_v55 = vld [vmem:[#allocation64_spill] sm:$0xff] }
 0x52a   :  { %6288 = vmatprep.subr.mxu1 %v6173_v36  ;;  %v6356_v3 = vpop.permute.xlu1 %6355  ;;  %9385 = vmatmul.mubr.msk.f32.vlgmr.msra.gmra.mxu0 %vm4985_vm10, %v9384_v63  ;;  %v6378_v34 = vmul.f32 %v6362_v39, %v13581_v26  ;;  %v6560_v48 = vsel %vm1568_vm8, %v13587_v62, %v13586_v0  ;;  %v6371_v36 = vmul.f32 %v6357_v47, %v13583_v40  ;;  %v13591_v39 = vld [vmem:[#allocation65_spill] sm:$0xff]  ;;  %v13595_v47 = vld [vmem:[#allocation31_spill] sm:$0xff] }
 0x52b   :  { %v6359_v5 = vsel %vm1379_vm7, %v6350_v38, %v6356_v3  ;;  %v6368_v52 = vsel %vm1379_vm7, %v6356_v3, %v6338_v30  ;;  %6289 = vmatpush1.msra.mxu1 %v6172_v50  ;;  %6322 = vmatprep.mubr.f32.mxu1 %v13485_v13  ;;  %v6366_v30 = vsel %vm1379_vm7, %v13585_v25, %v11151_v28  ;;  %v13592_v3 = vld [vmem:[#allocation30_spill] sm:$0xff] }
 0x52c   :  { %v6379_v15 = vmul.f32 %v6359_v5, %v13583_v40  ;;  %v6537_v23 = vpop.permute.xlu0 %6536  ;;  %9386 = vmatmul.mubr.msk.f32.vlgmr.msra.gmra.mxu1 %vm4985_vm10, %v9384_v63  ;;  %6412 = vmatprep.subr.mxu0 %v6378_v34  ;;  %v6380_v18 = vmul.f32 %v6368_v52, %v13584_v11  ;;  %v6375_v28 = vmul.f32 %v6358_v1, %v13583_v40 }
 0x52d   :  { %6413 = vmatpush1.msra.mxu0 %v6377_v56  ;;  %6450 = vmatprep.mubr.f32.mxu0 %v13485_v13  ;;  %v6372_v41 = vmul.f32 %v6366_v30, %v13584_v11  ;;  %v6563_v38 = vsel %vm1568_vm8, %v13588_v53, %v13587_v62  ;;  %v6562_v31 = vsel %vm1568_vm8, %v13590_v55, %v13589_v43  ;;  %v13593_v56 = vld [vmem:[#allocation32_spill] sm:$0xff] }
 0x52e   :  { %6483 = vmatprep.subr.mxu1 %v6380_v18  ;;  %v6543_v8 = vpop.permute.xlu1 %6542  ;;  %6414 = vmatprep.subr.mxu0 %v6374_v32  ;;  %v6566_v6 = vsel %vm1568_vm8, %v13591_v39, %v13588_v53  ;;  %v6573_v32 = vmul.f32 %v6560_v48, %v13592_v3  ;;  %v13594_v18 = vld [vmem:[#allocation29_spill] sm:$0xff] }
 0x52f   :  { %6415 = vmatpush1.msra.mxu0 %v6373_v49  ;;  %6484 = vmatpush1.msra.mxu1 %v6379_v15  ;;  %v6564_v63 = vsel %vm1568_vm8, %v6537_v23, %v6543_v8  ;;  %v6557_v15 = vsel %vm1568_vm8, %v13586_v0, %v13591_v39  ;;  %v13597_v39 = vld [vmem:[#allocation54_spill] sm:$0xff] }
 0x530   :  { %v6549_v50 = vpop.permute.xlu0 %6548  ;;  %6416 = vmatprep.subr.mxu0 %v6370_v4  ;;  %6485 = vmatprep.subr.mxu1 %v6376_v35  ;;  %v6576_v5 = vmul.f32 %v6564_v63, %v13593_v56  ;;  %v6568_v4 = vmul.f32 %v6562_v31, %v13593_v56  ;;  %v6574_v0 = vmul.f32 %v6557_v15, %v13594_v18 }
 0x531   :  { %v6561_v61 = vsel %vm1568_vm8, %v6543_v8, %v6549_v50  ;;  %6417 = vmatpush1.msra.mxu0 %v6369_v12  ;;  %6486 = vmatpush1.msra.mxu1 %v6375_v28  ;;  %v6572_v8 = vmul.f32 %v6563_v38, %v13593_v56  ;;  %v6575_v28 = vmul.f32 %v6566_v6, %v13595_v47 }
 0x532   :  { %6487 = vmatprep.subr.mxu1 %v6372_v41  ;;  %v6555_v29 = vpop.permute.xlu1 %6554  ;;  %9388 = vmatmul.mubr.msk.f32.vlgmr.msra.gmra.mxu0 %vm4985_vm10, %v9387_v27  ;;  %v6577_v34 = vmul.f32 %v6561_v61, %v13592_v3 }
 0x533   :  { %v6558_v52 = vsel %vm1568_vm8, %v6549_v50, %v6555_v29  ;;  %v6567_v1 = vsel %vm1568_vm8, %v6555_v29, %v6537_v23  ;;  %6488 = vmatpush1.msra.mxu1 %v6371_v36  ;;  %6521 = vmatprep.mubr.f32.mxu1 %v13485_v13 }
 0x534   :  { %v6578_v25 = vmul.f32 %v6558_v52, %v13594_v18  ;;  %v6545_v30 = vpop.permute.xlu0 %6544  ;;  %9389 = vmatmul.mubr.msk.f32.vlgmr.msra.gmra.mxu1 %vm4985_vm10, %v9387_v27  ;;  %6611 = vmatprep.subr.mxu0 %v6577_v34  ;;  %v6579_v49 = vmul.f32 %v6567_v1, %v13595_v47  ;;  %v9390_v27 = vld [vmem:[%s13269_s12 + $0x40] sm:$0xff] }
 0x535   :  { %v6559_v23 = vsel %vm1568_vm8, %v13589_v43, %v6545_v30  ;;  %6612 = vmatpush1.msra.mxu0 %v6576_v5  ;;  %6649 = vmatprep.mubr.f32.mxu0 %v13485_v13 }
 0x536   :  { %6682 = vmatprep.subr.mxu1 %v6579_v49  ;;  %v6551_v35 = vpop.permute.xlu1 %6550  ;;  %6613 = vmatprep.subr.mxu0 %v6573_v32  ;;  %v6569_v12 = vmul.f32 %v6559_v23, %v13592_v3  ;;  %v13598_v32 = vld [vmem:[#allocation38_spill] sm:$0xff]  ;;  %v13600_v49 = vld [vmem:[#allocation40_spill] sm:$0xff] }
 0x537   :  { %v6556_v62 = vsel %vm1568_vm8, %v6545_v30, %v6551_v35  ;;  %v6565_v48 = vsel %vm1568_vm8, %v6551_v35, %v13590_v55  ;;  %6614 = vmatpush1.msra.mxu0 %v6572_v8  ;;  %6683 = vmatpush1.msra.mxu1 %v6578_v25  ;;  %v13596_v55 = vld [vmem:[#allocation52_spill] sm:$0xff]  ;;  %v13599_v25 = vld [vmem:[#allocation37_spill] sm:$0xff] }
 0x538   :  { %v6570_v36 = vmul.f32 %v6556_v62, %v13594_v18  ;;  %6615 = vmatprep.subr.mxu0 %v6569_v12  ;;  %6684 = vmatprep.subr.mxu1 %v6575_v28  ;;  %v6571_v63 = vmul.f32 %v6565_v48, %v13595_v47  ;;  %v13601_v62 = vld [vmem:[#allocation39_spill] sm:$0xff] }
 0x539   :  { %6616 = vmatpush1.msra.mxu0 %v6568_v4  ;;  %6685 = vmatpush1.msra.mxu1 %v6574_v0 }
 0x53a   :  { %9391 = vmatmul.mubr.msk.f32.vlgmr.msra.gmra.mxu0 %vm4985_vm10, %v9390_v27  ;;  %6686 = vmatprep.subr.mxu1 %v6571_v63 }
 0x53b   :  { %6687 = vmatpush1.msra.mxu1 %v6570_v36  ;;  %6720 = vmatprep.mubr.f32.mxu1 %v13485_v13 }
 0x53c   :  { %9392 = vmatmul.mubr.msk.f32.vlgmr.msra.gmra.mxu1 %vm4985_vm10, %v9390_v27  ;;  %6913 = vmatprep.mubr.f32.mxu0 %v13485_v13  ;;  %v13602_v27 = vld [vmem:[#allocation35_spill] sm:$0xff] }
 0x53d   :  { %7002 = vmatprep.mubr.f32.mxu1 %v13485_v13 }
 0x541   :  { %v11639_v50 = vpop.permute.xlu0 %5133 }
 0x543   :  { %v11641_v41 = vpop.permute.xlu1 %6752 }
 0x545   :  { %v11643_v53 = vpop.permute.xlu0 %6747 }
 0x546   :  { %v6763_v31 = vmul.f32 %v11643_v53, %v13596_v55  ;;  %v6765_v6 = vmul.f32 %v11643_v53, %v13597_v39 }
 0x547   :  { %v11645_v38 = vpop.permute.xlu1 %6792 }
 0x549   :  { %v6743_v43 = vpop.permute.xlu0 %6742 }
 0x54a   :  { %v6760_v5 = vmul.f32 %v6743_v43, %v13598_v32  ;;  %v6759_v30 = vmul.f32 %v6743_v43, %v13599_v25  ;;  %v6762_v8 = vmul.f32 %v6743_v43, %v13600_v49  ;;  %v6761_v48 = vmul.f32 %v6743_v43, %v13601_v62  ;;  %v13604_v32 = vld [vmem:[#allocation36_spill] sm:$0xff] }
 0x54b   :  { %v11649_v61 = vpop.permute.xlu1 %6787 }
 0x54c   :  { %v6803_v29 = vadd.f32 %v11649_v61, %v6763_v31  ;;  %v6805_v52 = vadd.f32 %v11649_v61, %v6765_v6  ;;  %v13603_v6 = vld [vmem:[#allocation33_spill] sm:$0xff] }
 0x54d   :  { %v6738_v34 = vpop.permute.xlu0 %6737 }
 0x54e   :  { %v11656_v1 = vmax.f32 %v6803_v29, 0.0  ;;  %v11662_v4 = vmax.f32 %v6805_v52, 0.0  ;;  %v6756_v36 = vmul.f32 %v6738_v34, %v13602_v27  ;;  %v6755_v29 = vmul.f32 %v6738_v34, %v13603_v6 }
 0x54f   :  { %v6783_v15 = vpop.permute.xlu1 %6782 }
 0x550   :  { %v6800_v23 = vadd.f32 %v6783_v15, %v6760_v5  ;;  %7067 = vrot.lane.b32.xlu1 %v11656_v1, %s9510_s19  ;;  %v6799_v35 = vadd.f32 %v6783_v15, %v6759_v30  ;;  %v6802_v12 = vadd.f32 %v6783_v15, %v6762_v8  ;;  %v6801_v63 = vadd.f32 %v6783_v15, %v6761_v48  ;;  %v13605_v30 = vld [vmem:[#allocation34_spill] sm:$0xff]  ;;  %v13607_v48 = vld [vmem:[#allocation55_spill] sm:$0xff] }
 0x551   :  { %v6778_v0 = vpop.permute.xlu0 %6777  ;;  %v6758_v5 = vmul.f32 %v6738_v34, %v13604_v32  ;;  %v6757_v49 = vmul.f32 %v6738_v34, %v13605_v30  ;;  %v13606_v34 = vld [vmem:[#allocation53_spill] sm:$0xff]  ;;  %v6766_v27 = vmul.f32 %v11643_v53, %v13607_v48 }
 0x552   :  { %v11664_v28 = vmax.f32 %v6800_v23, 0.0  ;;  %v11672_v55 = vmax.f32 %v6799_v35, 0.0  ;;  %v11674_v31 = vmax.f32 %v6802_v12, 0.0  ;;  %v6796_v39 = vadd.f32 %v6778_v0, %v6756_v36 }
 0x553   :  { %v11682_v43 = vmax.f32 %v6801_v63, 0.0  ;;  %v6795_v52 = vadd.f32 %v6778_v0, %v6755_v29  ;;  %v6798_v25 = vadd.f32 %v6778_v0, %v6758_v5  ;;  %v6797_v8 = vadd.f32 %v6778_v0, %v6757_v49  ;;  %v5055_v29 = vpop.f32.mrf.mxu0  ;;  %v5126_v5 = vpop.f32.mrf.mxu1 }
 0x554   :  { %7083 = vrot.lane.b32.xlu1 %v11662_v4, %s9510_s19  ;;  %7073 = vrot.lane.b32.xlu0 %v11664_v28, %s9510_s19  ;;  %v11684_v15 = vmax.f32 %v6796_v39, 0.0  ;;  %v6764_v0 = vmul.f32 %v11643_v53, %v13606_v34  ;;  %v6806_v36 = vadd.f32 %v11649_v61, %v6766_v27 }
 0x555   :  { %v11691_v23 = vmax.f32 %v6795_v52, 0.0  ;;  %v11693_v35 = vmax.f32 %v6798_v25, 0.0  ;;  %v11699_v12 = vmax.f32 %v6797_v8, 0.0  ;;  %v5057_v25 = vpop.f32.mrf.mxu0  ;;  %v5128_v49 = vpop.f32.mrf.mxu1 }
 0x556   :  { %v6804_v62 = vadd.f32 %v11649_v61, %v6764_v0  ;;  %v11777_v39 = vmax.f32 %v6806_v36, 0.0 }
 0x558   :  { %7089 = vrot.lane.b32.xlu0 %v11674_v31, %s9510_s19  ;;  %7065 = vrot.lane.b32.xlu1 %v11672_v55, %s9510_s19  ;;  %v11771_v63 = vmax.f32 %v6804_v62, 0.0 }
 0x55c   :  { %7071 = vrot.lane.b32.xlu0 %v11684_v15, %s9510_s19  ;;  %7081 = vrot.lane.b32.xlu1 %v11682_v43, %s9510_s19 }
 0x560   :  { %7087 = vrot.lane.b32.xlu0 %v11693_v35, %s9510_s19  ;;  %7063 = vrot.lane.b32.xlu1 %v11691_v23, %s9510_s19 }
 0x564   :  { %7347 = vrot.lane.b32.xlu0 %v11664_v28, %s9511_s25  ;;  %7079 = vrot.lane.b32.xlu1 %v11699_v12, %s9510_s19 }
 0x568   :  { %7363 = vrot.lane.b32.xlu0 %v11674_v31, %s9511_s25  ;;  %7341 = vrot.lane.b32.xlu1 %v11656_v1, %s9511_s25 }
 0x56c   :  { %7345 = vrot.lane.b32.xlu0 %v11684_v15, %s9511_s25  ;;  %7357 = vrot.lane.b32.xlu1 %v11662_v4, %s9511_s25 }
 0x570   :  { %7361 = vrot.lane.b32.xlu0 %v11693_v35, %s9511_s25  ;;  %7339 = vrot.lane.b32.xlu1 %v11672_v55, %s9511_s25 }
 0x574   :  { %7622 = vrot.lane.b32.xlu0 %v11664_v28, %s9512_s26  ;;  %7355 = vrot.lane.b32.xlu1 %v11682_v43, %s9511_s25 }
 0x578   :  { %7638 = vrot.lane.b32.xlu0 %v11674_v31, %s9512_s26  ;;  %7337 = vrot.lane.b32.xlu1 %v11691_v23, %s9511_s25 }
 0x57c   :  { %7620 = vrot.lane.b32.xlu0 %v11684_v15, %s9512_s26  ;;  %7353 = vrot.lane.b32.xlu1 %v11699_v12, %s9511_s25 }
 0x580   :  { %7636 = vrot.lane.b32.xlu0 %v11693_v35, %s9512_s26  ;;  %7616 = vrot.lane.b32.xlu1 %v11656_v1, %s9512_s26 }
 0x584   :  { %7897 = vrot.lane.b32.xlu0 %v11664_v28, %s9513_s27  ;;  %7632 = vrot.lane.b32.xlu1 %v11662_v4, %s9512_s26 }
 0x588   :  { %7913 = vrot.lane.b32.xlu0 %v11674_v31, %s9513_s27  ;;  %7614 = vrot.lane.b32.xlu1 %v11672_v55, %s9512_s26 }
 0x58c   :  { %7895 = vrot.lane.b32.xlu0 %v11684_v15, %s9513_s27  ;;  %7630 = vrot.lane.b32.xlu1 %v11682_v43, %s9512_s26 }
 0x590   :  { %7911 = vrot.lane.b32.xlu0 %v11693_v35, %s9513_s27  ;;  %7612 = vrot.lane.b32.xlu1 %v11691_v23, %s9512_s26 }
 0x594   :  { %8172 = vrot.lane.b32.xlu0 %v11664_v28, %s9514_s28  ;;  %7628 = vrot.lane.b32.xlu1 %v11699_v12, %s9512_s26 }
 0x598   :  { %8188 = vrot.lane.b32.xlu0 %v11674_v31, %s9514_s28  ;;  %7891 = vrot.lane.b32.xlu1 %v11656_v1, %s9513_s27 }
 0x59c   :  { %8170 = vrot.lane.b32.xlu0 %v11684_v15, %s9514_s28  ;;  %7907 = vrot.lane.b32.xlu1 %v11662_v4, %s9513_s27 }
 0x5a0   :  { %8186 = vrot.lane.b32.xlu0 %v11693_v35, %s9514_s28  ;;  %7889 = vrot.lane.b32.xlu1 %v11672_v55, %s9513_s27 }
 0x5a4   :  { %7075 = vrot.lane.b32.xlu0 %v11771_v63, %s9510_s19  ;;  %7905 = vrot.lane.b32.xlu1 %v11682_v43, %s9513_s27 }
 0x5a8   :  { %7091 = vrot.lane.b32.xlu0 %v11777_v39, %s9510_s19  ;;  %7887 = vrot.lane.b32.xlu1 %v11691_v23, %s9513_s27 }
 0x5ac   :  { %7349 = vrot.lane.b32.xlu0 %v11771_v63, %s9511_s25  ;;  %7903 = vrot.lane.b32.xlu1 %v11699_v12, %s9513_s27 }
 0x5b0   :  { %7365 = vrot.lane.b32.xlu0 %v11777_v39, %s9511_s25  ;;  %8166 = vrot.lane.b32.xlu1 %v11656_v1, %s9514_s28 }
 0x5b4   :  { %7624 = vrot.lane.b32.xlu0 %v11771_v63, %s9512_s26  ;;  %8182 = vrot.lane.b32.xlu1 %v11662_v4, %s9514_s28 }
 0x5b8   :  { %7640 = vrot.lane.b32.xlu0 %v11777_v39, %s9512_s26  ;;  %8164 = vrot.lane.b32.xlu1 %v11672_v55, %s9514_s28 }
 0x5bc   :  { %7899 = vrot.lane.b32.xlu0 %v11771_v63, %s9513_s27  ;;  %8180 = vrot.lane.b32.xlu1 %v11682_v43, %s9514_s28 }
 0x5c0   :  { %7915 = vrot.lane.b32.xlu0 %v11777_v39, %s9513_s27  ;;  %8162 = vrot.lane.b32.xlu1 %v11691_v23, %s9514_s28 }
 0x5c2   :  { %v11807_v53 = vpop.permute.xlu1 %7067  ;;  %v5258_v34 = vpop.f32.mrf.mxu0 }
 0x5c3   :  { %v5329_v0 = vpop.f32.mrf.mxu1 }
 0x5c4   :  { %8174 = vrot.lane.b32.xlu0 %v11771_v63, %s9514_s28  ;;  %8178 = vrot.lane.b32.xlu1 %v11699_v12, %s9514_s28  ;;  %v5260_v27 = vpop.f32.mrf.mxu0 }
 0x5c5   :  { %v5331_v36 = vpop.f32.mrf.mxu1 }
 0x5c6   :  { %v11813_v61 = vpop.permute.xlu0 %7073  ;;  %v11815_v6 = vpop.permute.xlu1 %7083 }
 0x5c8   :  { %8190 = vrot.lane.b32.xlu0 %v11777_v39, %s9514_s28  ;;  %8441 = vrot.lane.b32.xlu1 %v11656_v1, %s9515_s29 }
 0x5ca   :  { %v11821_v32 = vpop.permute.xlu0 %7089  ;;  %v11823_v52 = vpop.permute.xlu1 %7065 }
 0x5cb   :  { %13608 = vst [vmem:[#allocation47_spill] sm:$0xff] %v11821_v32  ;;  %v5457_v18 = vpop.f32.mrf.mxu0 }
 0x5cc   :  { %8449 = vrot.lane.b32.xlu0 %v11771_v63, %s9515_s29  ;;  %8457 = vrot.lane.b32.xlu1 %v11662_v4, %s9515_s29  ;;  %v5528_v56 = vpop.f32.mrf.mxu1 }
 0x5cd   :  { %v5459_v40 = vpop.f32.mrf.mxu0 }
 0x5ce   :  { %v11829_v30 = vpop.permute.xlu0 %7071  ;;  %v11831_v8 = vpop.permute.xlu1 %7081 }
 0x5cf   :  { %13609 = vst [vmem:[#allocation42_spill] sm:$0xff] %v11829_v30  ;;  %13610 = vst [vmem:[#allocation41_spill] sm:$0xff] %v11831_v8  ;;  %v5530_v7 = vpop.f32.mrf.mxu1 }
 0x5d0   :  { %8465 = vrot.lane.b32.xlu0 %v11777_v39, %s9515_s29 }
 0x5d2   :  { %v11835_v62 = vpop.permute.xlu0 %7087  ;;  %v11837_v48 = vpop.permute.xlu1 %7063 }
 0x5d3   :  { %13611 = vst [vmem:[#allocation49_spill] sm:$0xff] %v11835_v62  ;;  %13612 = vst [vmem:[#allocation43_spill] sm:$0xff] %v11837_v48  ;;  %v5656_v60 = vpop.f32.mrf.mxu0 }
 0x5d4   :  { %v5727_v57 = vpop.f32.mrf.mxu1 }
 0x5d5   :  { %v5658_v16 = vpop.f32.mrf.mxu0 }
 0x5d6   :  { %v11839_v47 = vpop.permute.xlu0 %7347  ;;  %v11841_v3 = vpop.permute.xlu1 %7079 }
 0x5d7   :  { %13613 = vst [vmem:[#allocation45_spill] sm:$0xff] %v11839_v47  ;;  %13614 = vst [vmem:[#allocation46_spill] sm:$0xff] %v11841_v3  ;;  %v5729_v54 = vpop.f32.mrf.mxu1 }
 0x5da   :  { %v11843_v11 = vpop.permute.xlu0 %7363  ;;  %v11845_v26 = vpop.permute.xlu1 %7341 }
 0x5db   :  { %13615 = vst [vmem:[#allocation44_spill] sm:$0xff] %v11843_v11  ;;  %13616 = vst [vmem:[#allocation51_spill] sm:$0xff] %v11845_v26  ;;  %v5855_v46 = vpop.f32.mrf.mxu0 }
 0x5dc   :  { %v5926_v37 = vpop.f32.mrf.mxu1 }
 0x5dd   :  { %v5857_v59 = vpop.f32.mrf.mxu0 }
 0x5de   :  { %v11847_v22 = vpop.permute.xlu0 %7345  ;;  %v11849_v20 = vpop.permute.xlu1 %7357 }
 0x5df   :  { %13617 = vst [vmem:[#allocation50_spill] sm:$0xff] %v11847_v22  ;;  %13618 = vst [vmem:[#allocation48_spill] sm:$0xff] %v11849_v20  ;;  %v5928_v14 = vpop.f32.mrf.mxu1  ;;  %v5136_v22 = vadd.f32 %v11639_v50, %v5055_v29  ;;  %v5138_v20 = vadd.f32 %v11639_v50, %v5126_v5 }
 0x5e1   :  { %v5336_v26 = vadd.f32 %v5329_v0, %v5138_v20 }
 0x5e2   :  { %v11851_v33 = vpop.permute.xlu0 %7361  ;;  %v11853_v51 = vpop.permute.xlu1 %7339 }
 0x5e3   :  { %13619 = vst [vmem:[#allocation59_spill] sm:$0xff] %v11851_v33  ;;  %13620 = vst [vmem:[#allocation58_spill] sm:$0xff] %v11853_v51  ;;  %v6054_v9 = vpop.f32.mrf.mxu0  ;;  %v5137_v33 = vadd.f32 %v11639_v50, %v5057_v25  ;;  %v5334_v51 = vadd.f32 %v5258_v34, %v5136_v22 }
 0x5e4   :  { %v6125_v2 = vpop.f32.mrf.mxu1 }
 0x5e5   :  { %v6056_v47 = vpop.f32.mrf.mxu0  ;;  %v5335_v3 = vadd.f32 %v5260_v27, %v5137_v33  ;;  %v5533_v62 = vadd.f32 %v5457_v18, %v5334_v51 }
 0x5e6   :  { %v11855_v45 = vpop.permute.xlu0 %7622  ;;  %v11857_v58 = vpop.permute.xlu1 %7355 }
 0x5e7   :  { %13621 = vst [vmem:[#allocation61_spill] sm:$0xff] %v11855_v45  ;;  %13622 = vst [vmem:[#allocation56_spill] sm:$0xff] %v11857_v58  ;;  %v6127_v42 = vpop.f32.mrf.mxu1  ;;  %v5139_v58 = vadd.f32 %v11639_v50, %v5128_v49  ;;  %v5534_v30 = vadd.f32 %v5459_v40, %v5335_v3  ;;  %v5732_v8 = vadd.f32 %v5656_v60, %v5533_v62 }
 0x5e9   :  { %v5337_v29 = vadd.f32 %v5331_v36, %v5139_v58  ;;  %v5733_v34 = vadd.f32 %v5658_v16, %v5534_v30  ;;  %v5931_v32 = vadd.f32 %v5855_v46, %v5732_v8 }
 0x5ea   :  { %v11859_v11 = vpop.permute.xlu0 %7638  ;;  %v11862_v24 = vpop.permute.xlu1 %7337 }
 0x5eb   :  { %13623 = vst [vmem:[#allocation62_spill] sm:$0xff] %v11859_v11  ;;  %13624 = vst [vmem:[#allocation63_spill] sm:$0xff] %v11862_v24  ;;  %v6253_v17 = vpop.f32.mrf.mxu0  ;;  %v5535_v24 = vadd.f32 %v5528_v56, %v5336_v26  ;;  %v5536_v22 = vadd.f32 %v5530_v7, %v5337_v29  ;;  %v5932_v18 = vadd.f32 %v5857_v59, %v5733_v34 }
 0x5ec   :  { %v6324_v11 = vpop.f32.mrf.mxu1  ;;  %v6130_v50 = vadd.f32 %v6054_v9, %v5931_v32 }
 0x5ed   :  { %v6255_v25 = vpop.f32.mrf.mxu0  ;;  %v5734_v5 = vadd.f32 %v5727_v57, %v5535_v24  ;;  %v5735_v33 = vadd.f32 %v5729_v54, %v5536_v22  ;;  %v6131_v60 = vadd.f32 %v6056_v47, %v5932_v18 }
 0x5ee   :  { %v11866_v45 = vpop.permute.xlu0 %7620  ;;  %v11869_v48 = vpop.permute.xlu1 %7353  ;;  %v6329_v3 = vadd.f32 %v6253_v17, %v6130_v50 }
 0x5ef   :  { %13625 = vst [vmem:[#allocation60_spill] sm:$0xff] %v11866_v45  ;;  %v6326_v45 = vpop.f32.mrf.mxu1  ;;  %v5933_v51 = vadd.f32 %v5926_v37, %v5734_v5  ;;  %v5934_v26 = vadd.f32 %v5928_v14, %v5735_v33  ;;  %v6330_v46 = vadd.f32 %v6255_v25, %v6131_v60 }
 0x5f1   :  { %v6132_v40 = vadd.f32 %v6125_v2, %v5933_v51  ;;  %v6133_v16 = vadd.f32 %v6127_v42, %v5934_v26 }
 0x5f2   :  { %v11871_v44 = vpop.permute.xlu0 %7636  ;;  %v11873_v21 = vpop.permute.xlu1 %7616 }
 0x5f3   :  { %v6452_v20 = vpop.f32.mrf.mxu0  ;;  %v6331_v57 = vadd.f32 %v6324_v11, %v6132_v40  ;;  %v6332_v59 = vadd.f32 %v6326_v45, %v6133_v16 }
 0x5f4   :  { %v6523_v49 = vpop.f32.mrf.mxu1  ;;  %v6528_v7 = vadd.f32 %v6452_v20, %v6329_v3 }
 0x5f5   :  { %v6454_v24 = vpop.f32.mrf.mxu0  ;;  %v6530_v54 = vadd.f32 %v6523_v49, %v6331_v57  ;;  %v9394_v57 = vld [vmem:[%s13273_s16 + $0x88] sm:$0xff] }
 0x5f6   :  { %v11875_v58 = vpop.permute.xlu0 %7897  ;;  %v11877_v56 = vpop.permute.xlu1 %7632  ;;  %v6529_v9 = vadd.f32 %v6454_v24, %v6330_v46  ;;  %v9393_v24 = vld [vmem:[%s13273_s16 + $0x80] sm:$0xff] }
 0x5f7   :  { %v6525_v30 = vpop.f32.mrf.mxu1 }
 0x5f8   :  { %v6531_v17 = vadd.f32 %v6525_v30, %v6332_v59  ;;  %v9395_v59 = vld [vmem:[%s13273_s16 + $0x90] sm:$0xff] }
 0x5fa   :  { %v11879_v8 = vpop.permute.xlu0 %7913  ;;  %v6651_v37 = vpop.f32.mrf.mxu0 }
 0x5fb   :  { %v11881_v32 = vpop.permute.xlu1 %7614  ;;  %v6727_v14 = vadd.f32 %v6651_v37, %v6528_v7 }
 0x5fc   :  { %v6653_v47 = vpop.f32.mrf.mxu0  ;;  %v6722_v2 = vpop.f32.mrf.mxu1 }
 0x5fd   :  { %v6767_v0 = vmul.f32 %v11641_v41, %v6727_v14  ;;  %v6728_v62 = vadd.f32 %v6653_v47, %v6529_v9  ;;  %v6729_v42 = vadd.f32 %v6722_v2, %v6530_v54  ;;  %v9396_v14 = vld [vmem:[%s13273_s16 + $0x98] sm:$0xff] }
 0x5fe   :  { %v6724_v27 = vpop.f32.mrf.mxu1  ;;  %v11884_v11 = vpop.permute.xlu0 %7895 }
 0x5ff   :  { %v6807_v36 = vadd.f32 %v11645_v38, %v6767_v0  ;;  %v6768_v29 = vmul.f32 %v11641_v41, %v6728_v62  ;;  %v6769_v45 = vmul.f32 %v11641_v41, %v6729_v42  ;;  %v6730_v25 = vadd.f32 %v6724_v27, %v6531_v17  ;;  %v11889_v22 = vpop.permute.xlu1 %7630 }
 0x601   :  { %v11891_v5 = vmax.f32 %v6807_v36, 0.0  ;;  %v6808_v34 = vadd.f32 %v11645_v38, %v6768_v29  ;;  %v6809_v20 = vadd.f32 %v11645_v38, %v6769_v45  ;;  %v6770_v33 = vmul.f32 %v11641_v41, %v6730_v25 }
 0x602   :  { %v11896_v51 = vpop.permute.xlu0 %7911 }
 0x603   :  { %v11898_v18 = vmax.f32 %v6808_v34, 0.0  ;;  %v6810_v50 = vadd.f32 %v11645_v38, %v6770_v33  ;;  %v11901_v49 = vpop.permute.xlu1 %7612  ;;  %7069 = vrot.lane.b32.xlu1 %v11891_v5, %s9510_s19  ;;  %v11905_v26 = vmax.f32 %v6809_v20, 0.0 }
 0x605   :  { %v11907_v60 = vmax.f32 %v6810_v50, 0.0  ;;  %7077 = vrot.lane.b32.xlu0 %v11898_v18, %s9510_s19  ;;  %6873 = vmatprep.subr.mxu0 %v11898_v18 }
 0x606   :  { %v11912_v41 = vpop.permute.xlu0 %8172  ;;  %6874 = vmatpush1.msra.mxu0 %v11891_v5 }
 0x607   :  { %v11915_v40 = vpop.permute.xlu1 %7628  ;;  %6962 = vmatprep.subr.mxu1 %v11907_v60  ;;  %7085 = vrot.lane.b32.xlu1 %v11905_v26, %s9510_s19 }
 0x608   :  { %6875 = vmatprep.subr.mxu0 %v11771_v63  ;;  %6963 = vmatpush1.msra.mxu1 %v11905_v26 }
 0x609   :  { %6876 = vmatpush1.msra.mxu0 %v11656_v1  ;;  %6964 = vmatprep.subr.mxu1 %v11777_v39 }
 0x60a   :  { %7093 = vrot.lane.b32.xlu0 %v11907_v60, %s9510_s19  ;;  %6877 = vmatprep.subr.mxu0 %v11664_v28  ;;  %v11927_v38 = vpop.permute.xlu0 %8188 }
 0x60b   :  { %6965 = vmatpush1.msra.mxu1 %v11662_v4  ;;  %v11930_v3 = vpop.permute.xlu1 %7891  ;;  %6878 = vmatpush1.msra.mxu0 %v11672_v55 }
 0x60c   :  { %6966 = vmatprep.subr.mxu1 %v11674_v31  ;;  %8439 = vrot.lane.b32.xlu1 %v11672_v55, %s9515_s29 }
 0x60d   :  { %6879 = vmatprep.subr.mxu0 %v11684_v15  ;;  %6967 = vmatpush1.msra.mxu1 %v11682_v43 }
 0x60e   :  { %6880 = vmatpush1.msra.mxu0 %v11691_v23  ;;  %6968 = vmatprep.subr.mxu1 %v11693_v35  ;;  %v11943_v16 = vpop.permute.xlu0 %8170 }
 0x60f   :  { %8447 = vrot.lane.b32.xlu0 %v11664_v28, %s9515_s29  ;;  %6969 = vmatpush1.msra.mxu1 %v11699_v12  ;;  %v7908_v46 = vpop.permute.xlu1 %7907 }
 0x610   :  { %7343 = vrot.lane.b32.xlu1 %v11891_v5, %s9511_s25  ;;  %9401 = vmatmul.mubr.msk.f32.vlgmr.msra.gmra.mxu1 %vm6836_vm11, %v9393_v24 }
 0x611   :  { %9397 = vmatmul.mubr.msk.f32.vlgmr.msra.gmra.mxu0 %vm6836_vm11, %v9393_v24  ;;  %7008 = vmatprep.mubr.f32.mxu1 %v13485_v13 }
 0x612   :  { %v11956_v7 = vpop.permute.xlu0 %8186  ;;  %6919 = vmatprep.mubr.f32.mxu0 %v13485_v13 }
 0x613   :  { %8463 = vrot.lane.b32.xlu0 %v11674_v31, %s9515_s29  ;;  %v11961_v30 = vpop.permute.xlu1 %7889 }
 0x614   :  { %7359 = vrot.lane.b32.xlu1 %v11905_v26, %s9511_s25  ;;  %9402 = vmatmul.mubr.msk.f32.gmra.mxu1 %vm6836_vm11, %v9394_v57 }
 0x615   :  { %9398 = vmatmul.mubr.msk.f32.gmra.mxu0 %vm6836_vm11, %v9394_v57  ;;  %7014 = vmatprep.mubr.f32.mxu1 %v13485_v13 }
 0x616   :  { %v11968_v37 = vpop.permute.xlu0 %7075  ;;  %6925 = vmatprep.mubr.f32.mxu0 %v13485_v13 }
 0x617   :  { %7351 = vrot.lane.b32.xlu0 %v11898_v18, %s9511_s25  ;;  %v11976_v9 = vpop.permute.xlu1 %7905 }
 0x618   :  { %7618 = vrot.lane.b32.xlu1 %v11891_v5, %s9512_s26  ;;  %9403 = vmatmul.mubr.msk.f32.gmra.mxu1 %vm6836_vm11, %v9395_v59 }
 0x619   :  { %9399 = vmatmul.mubr.msk.f32.gmra.mxu0 %vm6836_vm11, %v9395_v59  ;;  %7020 = vmatprep.mubr.f32.mxu1 %v13485_v13 }
 0x61a   :  { %v11982_v54 = vpop.permute.xlu0 %7091  ;;  %6931 = vmatprep.mubr.f32.mxu0 %v13485_v13 }
 0x61b   :  { %7367 = vrot.lane.b32.xlu0 %v11907_v60, %s9511_s25  ;;  %v11991_v47 = vpop.permute.xlu1 %7887 }
 0x61c   :  { %7634 = vrot.lane.b32.xlu1 %v11905_v26, %s9512_s26  ;;  %9404 = vmatmul.mubr.msk.f32.gmra.mxu1 %vm6836_vm11, %v9396_v14 }
 0x61d   :  { %9400 = vmatmul.mubr.msk.f32.gmra.mxu0 %vm6836_vm11, %v9396_v14  ;;  %7296 = vmatprep.mubr.f32.mxu1 %v13485_v13 }
 0x61e   :  { %v11997_v2 = vpop.permute.xlu0 %7349  ;;  %7207 = vmatprep.mubr.f32.mxu0 %v13485_v13 }
 0x61f   :  { %8445 = vrot.lane.b32.xlu0 %v11684_v15, %s9515_s29  ;;  %v12003_v17 = vpop.permute.xlu1 %7903 }
 0x620   :  { %7893 = vrot.lane.b32.xlu1 %v11891_v5, %s9513_s27 }
 0x622   :  { %v12007_v0 = vpop.permute.xlu0 %7365 }
 0x623   :  { %8461 = vrot.lane.b32.xlu0 %v11693_v35, %s9515_s29  ;;  %v8167_v62 = vpop.permute.xlu1 %8166 }
 0x624   :  { %7909 = vrot.lane.b32.xlu1 %v11905_v26, %s9513_s27 }
 0x626   :  { %v12013_v42 = vpop.permute.xlu0 %7624 }
 0x627   :  { %7626 = vrot.lane.b32.xlu0 %v11898_v18, %s9512_s26  ;;  %v8183_v27 = vpop.permute.xlu1 %8182 }
 0x628   :  { %8168 = vrot.lane.b32.xlu1 %v11891_v5, %s9514_s28 }
 0x62a   :  { %v12019_v36 = vpop.permute.xlu0 %7640 }
 0x62b   :  { %7642 = vrot.lane.b32.xlu0 %v11907_v60, %s9512_s26  ;;  %v12023_v29 = vpop.permute.xlu1 %8164 }
 0x62c   :  { %v12029_v45 = vsel %vm1001_vm5, %v11927_v38, %v12023_v29  ;;  %8184 = vrot.lane.b32.xlu1 %v11905_v26, %s9514_s28 }
 0x62d   :  { %13626 = vst [vmem:[#allocation57_spill] sm:$0xff] %v12029_v45 }
 0x62e   :  { %v7900_v25 = vpop.permute.xlu0 %7899 }
 0x62f   :  { %8724 = vrot.lane.b32.xlu0 %v11771_v63, %s9516_s30  ;;  %v12037_v34 = vsel %vm812_vm4, %v7900_v25, %v7908_v46  ;;  %v12042_v20 = vsel %vm812_vm4, %v11930_v3, %v7900_v25  ;;  %v12044_v33 = vpop.permute.xlu1 %8180 }
 0x630   :  { %v12050_v50 = vsel %vm1001_vm5, %v12044_v33, %v11927_v38  ;;  %8443 = vrot.lane.b32.xlu1 %v11891_v5, %s9515_s29 }
 0x631   :  { %13627 = vst [vmem:[#allocation64_spill] sm:$0xff] %v12050_v50 }
 0x632   :  { %v7916_v24 = vpop.permute.xlu0 %7915 }
 0x633   :  { %8740 = vrot.lane.b32.xlu0 %v11777_v39, %s9516_s30  ;;  %v12058_v57 = vsel %vm812_vm4, %v7908_v46, %v7916_v24  ;;  %v12063_v59 = vsel %vm812_vm4, %v7916_v24, %v11930_v3  ;;  %v8163_v14 = vpop.permute.xlu1 %8162 }
 0x634   :  { %v12068_v38 = vsel %vm1001_vm5, %v8163_v14, %v11943_v16  ;;  %v12073_v25 = vsel %vm1001_vm5, %v11956_v7, %v8163_v14  ;;  %8459 = vrot.lane.b32.xlu1 %v11905_v26, %s9515_s29 }
 0x635   :  { %13628 = vst [vmem:[#allocation65_spill] sm:$0xff] %v12068_v38  ;;  %13629 = vst [vmem:[#allocation52_spill] sm:$0xff] %v12073_v25 }
 0x636   :  { %v8175_v46 = vpop.permute.xlu0 %8174 }
 0x637   :  { %7901 = vrot.lane.b32.xlu0 %v11898_v18, %s9513_s27  ;;  %v12081_v3 = vsel %vm1001_vm5, %v8175_v46, %v8183_v27  ;;  %v12085_v24 = vsel %vm1001_vm5, %v8167_v62, %v8175_v46  ;;  %v8179_v50 = vpop.permute.xlu1 %8178 }
 0x638   :  { %v12090_v14 = vsel %vm1001_vm5, %v8179_v50, %v11956_v7  ;;  %v12095_v25 = vsel %vm1001_vm5, %v11943_v16, %v8179_v50  ;;  %8455 = vrot.lane.b32.xlu1 %v11682_v43, %s9515_s29 }
 0x639   :  { %13630 = vst [vmem:[#allocation54_spill] sm:$0xff] %v12090_v14 }
 0x63a   :  { %v8191_v38 = vpop.permute.xlu0 %8190 }
 0x63b   :  { %7917 = vrot.lane.b32.xlu0 %v11907_v60, %s9513_s27  ;;  %v12103_v46 = vsel %vm1001_vm5, %v8183_v27, %v8191_v38  ;;  %v12107_v7 = vsel %vm1001_vm5, %v8191_v38, %v8167_v62  ;;  %v8442_v14 = vpop.permute.xlu1 %8441 }
 0x63c   :  { %13631 = vst [vmem:[#allocation38_spill] sm:$0xff] %v12103_v46  ;;  %8437 = vrot.lane.b32.xlu1 %v11691_v23, %s9515_s29 }
 0x63e   :  { %v8450_v16 = vpop.permute.xlu0 %8449 }
 0x63f   :  { %8722 = vrot.lane.b32.xlu0 %v11664_v28, %s9516_s30  ;;  %v12115_v50 = vsel %vm1190_vm6, %v8442_v14, %v8450_v16  ;;  %v8458_v45 = vpop.permute.xlu1 %8457 }
 0x640   :  { %v12119_v27 = vsel %vm1190_vm6, %v8450_v16, %v8458_v45  ;;  %8453 = vrot.lane.b32.xlu1 %v11699_v12, %s9515_s29  ;;  %v13633_v16 = vld [vmem:[#allocation3_spill] sm:$0xff] }
 0x642   :  { %v8466_v62 = vpop.permute.xlu0 %8465 }
 0x643   :  { %8738 = vrot.lane.b32.xlu0 %v11674_v31, %s9516_s30  ;;  %v12127_v38 = vsel %vm1190_vm6, %v8458_v45, %v8466_v62  ;;  %v12131_v46 = vsel %vm1190_vm6, %v8466_v62, %v8442_v14  ;;  %v7109_v45 = vsel %vm246_vm1, %v11982_v54, %v11807_v53 }
 0x644   :  { %8718 = vrot.lane.b32.xlu1 %v11891_v5, %s9516_s30 }
 0x647   :  { %8176 = vrot.lane.b32.xlu0 %v11898_v18, %s9514_s28 }
 0x648   :  { %8734 = vrot.lane.b32.xlu1 %v11905_v26, %s9516_s30 }
 0x64b   :  { %8192 = vrot.lane.b32.xlu0 %v11907_v60, %s9514_s28 }
 0x64c   :  { %8716 = vrot.lane.b32.xlu1 %v11656_v1, %s9516_s30 }
 0x64f   :  { %8720 = vrot.lane.b32.xlu0 %v11684_v15, %s9516_s30 }
 0x650   :  { %8732 = vrot.lane.b32.xlu1 %v11662_v4, %s9516_s30 }
 0x653   :  { %8736 = vrot.lane.b32.xlu0 %v11693_v35, %s9516_s30 }
 0x654   :  { %8714 = vrot.lane.b32.xlu1 %v11672_v55, %s9516_s30 }
 0x657   :  { %8451 = vrot.lane.b32.xlu0 %v11898_v18, %s9515_s29 }
 0x658   :  { %8730 = vrot.lane.b32.xlu1 %v11682_v43, %s9516_s30 }
 0x65b   :  { %8467 = vrot.lane.b32.xlu0 %v11907_v60, %s9515_s29 }
 0x65c   :  { %8712 = vrot.lane.b32.xlu1 %v11691_v23, %s9516_s30 }
 0x65f   :  { %8999 = vrot.lane.b32.xlu0 %v11771_v63, %s9518_s0 }
 0x660   :  { %8728 = vrot.lane.b32.xlu1 %v11699_v12, %s9516_s30 }
 0x663   :  { %9015 = vrot.lane.b32.xlu0 %v11777_v39, %s9518_s0 }
 0x664   :  { %8993 = vrot.lane.b32.xlu1 %v11891_v5, %s9518_s0 }
 0x667   :  { %8726 = vrot.lane.b32.xlu0 %v11898_v18, %s9516_s30 }
 0x668   :  { %9009 = vrot.lane.b32.xlu1 %v11905_v26, %s9518_s0 }
 0x66b   :  { %8742 = vrot.lane.b32.xlu0 %v11907_v60, %s9516_s30 }
 0x66c   :  { %8991 = vrot.lane.b32.xlu1 %v11656_v1, %s9518_s0 }
 0x66f   :  { %8997 = vrot.lane.b32.xlu0 %v11664_v28, %s9518_s0  ;;  %v13632_v28 = vld [vmem:[#allocation4_spill] sm:$0xff] }
 0x670   :  { %9007 = vrot.lane.b32.xlu1 %v11662_v4, %s9518_s0 }
 0x673   :  { %9013 = vrot.lane.b32.xlu0 %v11674_v31, %s9518_s0 }
 0x674   :  { %8989 = vrot.lane.b32.xlu1 %v11672_v55, %s9518_s0 }
 0x675   :  { %v7070_v63 = vpop.permute.xlu1 %7069 }
 0x677   :  { %9001 = vrot.lane.b32.xlu0 %v11898_v18, %s9518_s0  ;;  %v7078_v39 = vpop.permute.xlu0 %7077  ;;  %v7097_v18 = vsel %vm246_vm1, %v11815_v6, %v11982_v54 }
 0x678   :  { %9005 = vrot.lane.b32.xlu1 %v11682_v43, %s9518_s0  ;;  %v7106_v1 = vsel %vm246_vm1, %v7070_v63, %v7078_v39  ;;  %v7105_v43 = vsel %vm246_vm1, %v11807_v53, %v11968_v37  ;;  %v13636_v53 = vld [vmem:[#allocation41_spill] sm:$0xff] }
 0x679   :  { %v7124_v5 = vmul.f32 %v7106_v1, %v13632_v28  ;;  %v7086_v4 = vpop.permute.xlu1 %7085  ;;  %v13634_v1 = vld [vmem:[#allocation47_spill] sm:$0xff] }
 0x67a   :  { %v7102_v55 = vsel %vm246_vm1, %v7078_v39, %v7086_v4  ;;  %v7096_v54 = vsel %vm246_vm1, %v13636_v53, %v13634_v1 }
 0x67b   :  { %9017 = vrot.lane.b32.xlu0 %v11907_v60, %s9518_s0  ;;  %7167 = vmatprep.subr.mxu0 %v7124_v5  ;;  %v7101_v5 = vsel %vm246_vm1, %v11968_v37, %v11815_v6  ;;  %v7100_v6 = vsel %vm246_vm1, %v11813_v61, %v13636_v53 }
 0x67c   :  { %8987 = vrot.lane.b32.xlu1 %v11691_v23, %s9518_s0  ;;  %v7094_v31 = vpop.permute.xlu0 %7093  ;;  %v7104_v23 = vsel %vm246_vm1, %v11823_v52, %v11813_v61 }
 0x67d   :  { %v7098_v26 = vsel %vm246_vm1, %v7086_v4, %v7094_v31  ;;  %v7110_v60 = vsel %vm246_vm1, %v7094_v31, %v7070_v63  ;;  %v7108_v63 = vsel %vm246_vm1, %v13634_v1, %v11823_v52  ;;  %v13635_v4 = vld [vmem:[#allocation2_spill] sm:$0xff]  ;;  %v7116_v37 = vmul.f32 %v7104_v23, %v13632_v28  ;;  %v13639_v23 = vld [vmem:[#allocation49_spill] sm:$0xff] }
 0x67e   :  { %v7123_v14 = vmul.f32 %v7110_v60, %v9688_v19  ;;  %v7126_v62 = vmul.f32 %v7098_v26, %v13633_v16  ;;  %v8440_v39 = vpop.permute.xlu1 %8439  ;;  %v7125_v31 = vmul.f32 %v7102_v55, %v13635_v4  ;;  %v7120_v26 = vmul.f32 %v7105_v43, %v13632_v28  ;;  %v13637_v55 = vld [vmem:[#allocation42_spill] sm:$0xff]  ;;  %v13638_v43 = vld [vmem:[#allocation43_spill] sm:$0xff] }
 0x67f   :  { %8995 = vrot.lane.b32.xlu0 %v11684_v15, %s9518_s0  ;;  %v7122_v60 = vmul.f32 %v7097_v18, %v13633_v16  ;;  %v7119_v15 = vmul.f32 %v7109_v45, %v9688_v19  ;;  %v7103_v18 = vsel %vm246_vm1, %v13638_v43, %v13637_v55  ;;  %v6827_v45 = vld [vmem:[%s13274_s17] sm:$0xff]  ;;  %v7115_v53 = vmul.f32 %v7108_v63, %v9688_v19 }
 0x680   :  { %9003 = vrot.lane.b32.xlu1 %v11699_v12, %s9518_s0  ;;  %7256 = vmatprep.subr.mxu1 %v7126_v62  ;;  %v7121_v12 = vmul.f32 %v7101_v5, %v13635_v4  ;;  %v13640_v1 = vld [vmem:[#allocation46_spill] sm:$0xff] }
 0x681   :  { %v12242_v52 = vpop.permute.xlu0 %8447  ;;  %7168 = vmatpush1.msra.mxu0 %v7123_v14  ;;  %7257 = vmatpush1.msra.mxu1 %v7125_v31  ;;  %v7107_v14 = vsel %vm246_vm1, %v13639_v23, %v13638_v43  ;;  %v7095_v5 = vsel %vm246_vm1, %v13640_v1, %v13639_v23  ;;  %v7118_v31 = vmul.f32 %v7096_v54, %v13633_v16  ;;  %v6828_v43 = vld [vmem:[%s13274_s17 + $0x8] sm:$0xff] }
 0x682   :  { %v12253_v62 = vsel %vm1190_vm6, %v8440_v39, %v12242_v52  ;;  %7169 = vmatprep.subr.mxu0 %v7120_v26  ;;  %v7344_v61 = vpop.permute.xlu1 %7343  ;;  %7258 = vmatprep.subr.mxu1 %v7122_v60  ;;  %v7117_v26 = vmul.f32 %v7100_v6, %v13635_v4  ;;  %v7099_v60 = vsel %vm246_vm1, %v13637_v55, %v13640_v1  ;;  %v7127_v55 = vld [vmem:[%s13273_s16] sm:$0xff] }
 0x683   :  { %9011 = vrot.lane.b32.xlu0 %v11693_v35, %s9518_s0  ;;  %7170 = vmatpush1.msra.mxu0 %v7119_v15  ;;  %v7112_v54 = vmul.f32 %v7103_v18, %v13632_v28  ;;  %v7111_v63 = vmul.f32 %v7107_v14, %v9688_v19  ;;  %v6829_v19 = vld [vmem:[%s13274_s17 + $0x10] sm:$0xff]  ;;  %v6830_v28 = vld [vmem:[%s13274_s17 + $0x18] sm:$0xff]  ;;  %v7128_v18 = vld [vmem:[%s13273_s16 + $0x8] sm:$0xff] }
 0x684   :  { %7171 = vmatprep.subr.mxu0 %v7116_v37  ;;  %7259 = vmatpush1.msra.mxu1 %v7121_v12  ;;  %v7114_v37 = vmul.f32 %v7095_v5, %v13633_v16  ;;  %v7113_v12 = vmul.f32 %v7099_v60, %v13635_v4  ;;  %v13643_v14 = vld [vmem:[#allocation51_spill] sm:$0xff] }
 0x685   :  { %7029 = vperm.xlu1 %9508, %v6827_v45   ;;  %7260 = vmatprep.subr.mxu1 %v7118_v31  ;;  %v12278_v35 = vpop.permute.xlu0 %8463  ;;  %v13642_v45 = vld [vmem:[#allocation5_spill] sm:$0xff]  ;;  %v7379_v1 = vsel %vm434_vm2, %v13643_v14, %v11997_v2 }
 0x686   :  { %v12285_v6 = vsel %vm1190_vm6, %v12278_v35, %v8440_v39  ;;  %7172 = vmatpush1.msra.mxu0 %v7115_v53  ;;  %7261 = vmatpush1.msra.mxu1 %v7117_v26  ;;  %v7360_v15 = vpop.permute.xlu1 %7359 }
 0x687   :  { %13641 = vst [vmem:[#allocation37_spill] sm:$0xff] %v12285_v6  ;;  %7173 = vmatprep.subr.mxu0 %v7112_v54  ;;  %7034 = vperm.xlu0 %9507, %v6828_v43   ;;  %v7129_v43 = vld [vmem:[%s13273_s16 + $0x10] sm:$0xff]  ;;  %v7383_v54 = vsel %vm434_vm2, %v12007_v0, %v13643_v14 }
 0x688   :  { %7174 = vmatpush1.msra.mxu0 %v7111_v63  ;;  %7262 = vmatprep.subr.mxu1 %v7114_v37  ;;  %v13644_v63 = vld [vmem:[#allocation6_spill] sm:$0xff] }
 0x689   :  { %9405 = vmatmul.mubr.msk.f32.vlgmr.msra.gmra.mxu0 %vm6836_vm11, %v7127_v55  ;;  %7263 = vmatpush1.msra.mxu1 %v7113_v12  ;;  %v7352_v16 = vpop.permute.xlu0 %7351 }
 0x68a   :  { %7039 = vperm.xlu1 %9508, %v6829_v19   ;;  %9409 = vmatmul.mubr.msk.f32.vlgmr.msra.gmra.mxu1 %vm6836_vm11, %v7127_v55  ;;  %v7380_v39 = vsel %vm434_vm2, %v7344_v61, %v7352_v16  ;;  %v12302_v4 = vpop.permute.xlu1 %7618  ;;  %v7376_v31 = vsel %vm434_vm2, %v7352_v16, %v7360_v15  ;;  %v13645_v55 = vld [vmem:[#allocation8_spill] sm:$0xff]  ;;  %v13647_v19 = vld [vmem:[#allocation45_spill] sm:$0xff] }
 0x68b   :  { %v7398_v23 = vmul.f32 %v7380_v39, %v13642_v45  ;;  %7044 = vperm.xlu0 %9507, %v6830_v28   ;;  %7213 = vmatprep.mubr.f32.mxu0 %v13485_v13  ;;  %v13648_v28 = vld [vmem:[#allocation58_spill] sm:$0xff]  ;;  %v7394_v39 = vmul.f32 %v7379_v1, %v13642_v45 }
 0x68c   :  { %7302 = vmatprep.mubr.f32.mxu1 %v13485_v13  ;;  %v7378_v16 = vsel %vm434_vm2, %v13648_v28, %v13647_v19 }
 0x68d   :  { %9406 = vmatmul.mubr.msk.f32.gmra.mxu0 %vm6836_vm11, %v7128_v18  ;;  %v7368_v5 = vpop.permute.xlu0 %7367  ;;  %7442 = vmatprep.subr.mxu0 %v7398_v23 }
 0x68e   :  { %9410 = vmatmul.mubr.msk.f32.gmra.mxu1 %vm6836_vm11, %v7128_v18  ;;  %v7372_v53 = vsel %vm434_vm2, %v7360_v15, %v7368_v5  ;;  %v7384_v26 = vsel %vm434_vm2, %v7368_v5, %v7344_v61  ;;  %v12322_v60 = vpop.permute.xlu1 %7634  ;;  %7219 = vmatprep.mubr.f32.mxu0 %v13485_v13  ;;  %v13646_v61 = vld [vmem:[#allocation48_spill] sm:$0xff]  ;;  %v13649_v18 = vld [vmem:[#allocation7_spill] sm:$0xff] }
 0x68f   :  { %v7397_v37 = vmul.f32 %v7384_v26, %v13644_v63  ;;  %v7400_v15 = vmul.f32 %v7372_v53, %v13645_v55  ;;  %7308 = vmatprep.mubr.f32.mxu1 %v13485_v13  ;;  %v7371_v12 = vsel %vm434_vm2, %v13646_v61, %v12007_v0  ;;  %v7399_v23 = vmul.f32 %v7376_v31, %v13649_v18  ;;  %v13650_v5 = vld [vmem:[#allocation44_spill] sm:$0xff]  ;;  %v7130_v31 = vld [vmem:[%s13273_s16 + $0x18] sm:$0xff] }
 0x690   :  { %v7382_v53 = vsel %vm434_vm2, %v13650_v5, %v13648_v28  ;;  %v7375_v0 = vsel %vm434_vm2, %v11997_v2, %v13646_v61  ;;  %v7393_v26 = vmul.f32 %v7383_v54, %v13644_v63  ;;  %v7396_v6 = vmul.f32 %v7371_v12, %v13645_v55  ;;  %v13653_v54 = vld [vmem:[#allocation63_spill] sm:$0xff] }
 0x691   :  { %9407 = vmatmul.mubr.msk.f32.gmra.mxu0 %vm6836_vm11, %v7129_v43  ;;  %7531 = vmatprep.subr.mxu1 %v7400_v15  ;;  %v12346_v14 = vpop.permute.xlu0 %8445  ;;  %v13651_v15 = vld [vmem:[#allocation56_spill] sm:$0xff]  ;;  %v7390_v61 = vmul.f32 %v7378_v16, %v13642_v45  ;;  %v13654_v12 = vld [vmem:[#allocation59_spill] sm:$0xff] }
 0x692   :  { %9411 = vmatmul.mubr.msk.f32.gmra.mxu1 %vm6836_vm11, %v7129_v43  ;;  %7443 = vmatpush1.msra.mxu0 %v7397_v37  ;;  %v12358_v1 = vpop.permute.xlu1 %7893  ;;  %v7370_v28 = vsel %vm434_vm2, %v13651_v15, %v13650_v5  ;;  %v7374_v2 = vsel %vm434_vm2, %v13647_v19, %v13651_v15  ;;  %v13652_v43 = vld [vmem:[#allocation50_spill] sm:$0xff]  ;;  %v7389_v5 = vmul.f32 %v7382_v53, %v13644_v63 }
 0x693   :  { %7444 = vmatprep.subr.mxu0 %v7394_v39  ;;  %7532 = vmatpush1.msra.mxu1 %v7399_v23  ;;  %v7377_v37 = vsel %vm434_vm2, %v13653_v54, %v13652_v43  ;;  %v7381_v39 = vsel %vm434_vm2, %v13654_v12, %v13653_v54  ;;  %v7395_v23 = vmul.f32 %v7375_v0, %v13649_v18 }
 0x694   :  { %7225 = vmatprep.mubr.f32.mxu0 %v13485_v13  ;;  %7445 = vmatpush1.msra.mxu0 %v7393_v26  ;;  %v7369_v26 = vsel %vm434_vm2, %v11869_v48, %v13654_v12  ;;  %v7392_v16 = vmul.f32 %v7370_v28, %v13645_v55  ;;  %v7391_v15 = vmul.f32 %v7374_v2, %v13649_v18  ;;  %v9413_v28 = vld [vmem:[%s13273_s16 + $0x20] sm:$0xff] }
 0x695   :  { %7533 = vmatprep.subr.mxu1 %v7396_v6  ;;  %9408 = vmatmul.mubr.msk.f32.gmra.mxu0 %vm6836_vm11, %v7130_v31  ;;  %v12385_v19 = vpop.permute.xlu0 %8461  ;;  %v7373_v6 = vsel %vm434_vm2, %v13652_v43, %v11869_v48  ;;  %v7386_v0 = vmul.f32 %v7377_v37, %v13642_v45  ;;  %v7385_v54 = vmul.f32 %v7381_v39, %v13644_v63 }
 0x696   :  { %7314 = vmatprep.mubr.f32.mxu1 %v13485_v13  ;;  %7446 = vmatprep.subr.mxu0 %v7390_v61  ;;  %v12393_v53 = vpop.permute.xlu1 %7909  ;;  %v7388_v2 = vmul.f32 %v7369_v26, %v13645_v55  ;;  %v7387_v48 = vmul.f32 %v7373_v6, %v13649_v18  ;;  %v9414_v55 = vld [vmem:[%s13273_s16 + $0x28] sm:$0xff]  ;;  %v7654_v37 = vsel %vm623_vm3, %v11873_v21, %v12013_v42  ;;  %v13656_v26 = vld [vmem:[#allocation10_spill] sm:$0xff] }
 0x697   :  { %7534 = vmatpush1.msra.mxu1 %v7395_v23  ;;  %7447 = vmatpush1.msra.mxu0 %v7389_v5 }
 0x698   :  { %9412 = vmatmul.mubr.msk.f32.gmra.mxu1 %vm6836_vm11, %v7130_v31  ;;  %7535 = vmatprep.subr.mxu1 %v7392_v16  ;;  %v13655_v31 = vld [vmem:[#allocation9_spill] sm:$0xff] }
 0x699   :  { %7448 = vmatprep.subr.mxu0 %v7386_v0  ;;  %7536 = vmatpush1.msra.mxu1 %v7391_v15  ;;  %v7627_v61 = vpop.permute.xlu0 %7626  ;;  %v13657_v15 = vld [vmem:[#allocation12_spill] sm:$0xff]  ;;  %v7658_v0 = vsel %vm623_vm3, %v12019_v36, %v11873_v21 }
 0x69a   :  { %7449 = vmatpush1.msra.mxu0 %v7385_v54  ;;  %7482 = vmatprep.mubr.f32.mxu0 %v13485_v13  ;;  %v7655_v45 = vsel %vm623_vm3, %v12302_v4, %v7627_v61  ;;  %v12412_v63 = vpop.permute.xlu1 %8168  ;;  %v7651_v23 = vsel %vm623_vm3, %v7627_v61, %v12322_v60  ;;  %v7669_v54 = vmul.f32 %v7654_v37, %v13655_v31  ;;  %v13659_v61 = vld [vmem:[#allocation11_spill] sm:$0xff] }
 0x69b   :  { %7537 = vmatprep.subr.mxu1 %v7388_v2  ;;  %9417 = vmatmul.mubr.msk.f32.vlgmr.msra.gmra.mxu0 %vm6836_vm11, %v9413_v28  ;;  %v7673_v43 = vmul.f32 %v7655_v45, %v13655_v31  ;;  %v13658_v2 = vld [vmem:[#allocation61_spill] sm:$0xff] }
 0x69c   :  { %7538 = vmatpush1.msra.mxu1 %v7387_v48  ;;  %7571 = vmatprep.mubr.f32.mxu1 %v13485_v13  ;;  %v7653_v21 = vsel %vm623_vm3, %v11881_v32, %v13658_v2  ;;  %v7674_v48 = vmul.f32 %v7651_v23, %v13659_v61 }
 0x69d   :  { %9421 = vmatmul.mubr.msk.f32.vlgmr.msra.gmra.mxu1 %vm6836_vm11, %v9413_v28  ;;  %7488 = vmatprep.mubr.f32.mxu0 %v13485_v13  ;;  %v7643_v18 = vpop.permute.xlu0 %7642  ;;  %v7665_v23 = vmul.f32 %v7653_v21, %v13655_v31 }
 0x69e   :  { %7577 = vmatprep.mubr.f32.mxu1 %v13485_v13  ;;  %v7647_v5 = vsel %vm623_vm3, %v12322_v60, %v7643_v18  ;;  %v7659_v12 = vsel %vm623_vm3, %v7643_v18, %v12302_v4  ;;  %7717 = vmatprep.subr.mxu0 %v7673_v43  ;;  %v12433_v39 = vpop.permute.xlu1 %8184  ;;  %v9415_v4 = vld [vmem:[%s13273_s16 + $0x30] sm:$0xff]  ;;  %v7646_v60 = vsel %vm623_vm3, %v11877_v56, %v12019_v36  ;;  %v13660_v43 = vld [vmem:[#allocation62_spill] sm:$0xff] }
 0x69f   :  { %9418 = vmatmul.mubr.msk.f32.gmra.mxu0 %vm6836_vm11, %v9414_v55  ;;  %v7672_v16 = vmul.f32 %v7659_v12, %v13656_v26  ;;  %v7675_v6 = vmul.f32 %v7647_v5, %v13657_v15  ;;  %v7657_v36 = vsel %vm623_vm3, %v13660_v43, %v11881_v32  ;;  %v7668_v18 = vmul.f32 %v7658_v0, %v13656_v26  ;;  %v9416_v32 = vld [vmem:[%s13273_s16 + $0x38] sm:$0xff] }
 0x6a0   :  { %7494 = vmatprep.mubr.f32.mxu0 %v13485_v13  ;;  %v7645_v37 = vsel %vm623_vm3, %v11889_v22, %v13660_v43  ;;  %v7671_v5 = vmul.f32 %v7646_v60, %v13657_v15  ;;  %v7656_v0 = vsel %vm623_vm3, %v11871_v44, %v11901_v49 }
 0x6a1   :  { %9422 = vmatmul.mubr.msk.f32.gmra.mxu1 %vm6836_vm11, %v9414_v55  ;;  %7806 = vmatprep.subr.mxu1 %v7675_v6  ;;  %v12455_v28 = vpop.permute.xlu0 %8724  ;;  %v7650_v55 = vsel %vm623_vm3, %v12013_v42, %v11877_v56  ;;  %v7649_v56 = vsel %vm623_vm3, %v13658_v2, %v11889_v22  ;;  %v13661_v42 = vld [vmem:[#allocation60_spill] sm:$0xff]  ;;  %v7664_v6 = vmul.f32 %v7657_v36, %v13656_v26 }
 0x6a2   :  { %7583 = vmatprep.mubr.f32.mxu1 %v13485_v13  ;;  %7718 = vmatpush1.msra.mxu0 %v7672_v16  ;;  %v12463_v45 = vpop.permute.xlu1 %8443  ;;  %v7652_v12 = vsel %vm623_vm3, %v11901_v49, %v13661_v42  ;;  %v7670_v22 = vmul.f32 %v7650_v55, %v13659_v61  ;;  %v7667_v60 = vmul.f32 %v7645_v37, %v13657_v15 }
 0x6a3   :  { %9419 = vmatmul.mubr.msk.f32.gmra.mxu0 %vm6836_vm11, %v9415_v4  ;;  %7719 = vmatprep.subr.mxu0 %v7669_v54  ;;  %v7666_v2 = vmul.f32 %v7649_v56, %v13659_v61  ;;  %v7648_v49 = vsel %vm623_vm3, %v13661_v42, %v11915_v40  ;;  %v7661_v21 = vmul.f32 %v7652_v12, %v13655_v31  ;;  %v13663_v42 = vld [vmem:[#allocation14_spill] sm:$0xff] }
 0x6a4   :  { %7807 = vmatpush1.msra.mxu1 %v7674_v48  ;;  %7500 = vmatprep.mubr.f32.mxu0 %v13485_v13  ;;  %v7660_v48 = vmul.f32 %v7656_v0, %v13656_v26  ;;  %v7662_v31 = vmul.f32 %v7648_v49, %v13659_v61  ;;  %v13662_v26 = vld [vmem:[#allocation13_spill] sm:$0xff]  ;;  %v7932_v49 = vsel %vm812_vm4, %v11879_v8, %v11961_v30 }
 0x6a5   :  { %9423 = vmatmul.mubr.msk.f32.gmra.mxu1 %vm6836_vm11, %v9415_v4  ;;  %7720 = vmatpush1.msra.mxu0 %v7668_v18  ;;  %v12494_v16 = vpop.permute.xlu0 %8740  ;;  %v7644_v4 = vsel %vm623_vm3, %v11915_v40, %v11871_v44  ;;  %v9425_v44 = vld [vmem:[%s13273_s16 + $0x40] sm:$0xff]  ;;  %v7944_v0 = vmul.f32 %v12042_v20, %v13662_v26 }
 0x6a6   :  { %7808 = vmatprep.subr.mxu1 %v7671_v5  ;;  %7589 = vmatprep.mubr.f32.mxu1 %v13485_v13  ;;  %v12503_v54 = vpop.permute.xlu1 %8459  ;;  %v7663_v36 = vmul.f32 %v7644_v4, %v13657_v15  ;;  %v9426_v15 = vld [vmem:[%s13273_s16 + $0x48] sm:$0xff] }
 0x6a7   :  { %9420 = vmatmul.mubr.msk.f32.gmra.mxu0 %vm6836_vm11, %v9416_v32  ;;  %7721 = vmatprep.subr.mxu0 %v7665_v23  ;;  %v13664_v23 = vld [vmem:[#allocation16_spill] sm:$0xff]  ;;  %v13665_v4 = vld [vmem:[#allocation15_spill] sm:$0xff] }
 0x6a8   :  { %7809 = vmatpush1.msra.mxu1 %v7670_v22  ;;  %7722 = vmatpush1.msra.mxu0 %v7664_v6  ;;  %v7928_v22 = vsel %vm812_vm4, %v11961_v30, %v11875_v58 }
 0x6a9   :  { %9424 = vmatmul.mubr.msk.f32.gmra.mxu1 %vm6836_vm11, %v9416_v32  ;;  %7810 = vmatprep.subr.mxu1 %v7667_v60  ;;  %v7902_v43 = vpop.permute.xlu0 %7901 }
 0x6aa   :  { %7723 = vmatprep.subr.mxu0 %v7661_v21  ;;  %7811 = vmatpush1.msra.mxu1 %v7666_v2  ;;  %v7930_v40 = vsel %vm812_vm4, %v12358_v1, %v7902_v43  ;;  %v12526_v55 = vpop.permute.xlu1 %8455  ;;  %v7926_v56 = vsel %vm812_vm4, %v7902_v43, %v12393_v53  ;;  %v7943_v2 = vmul.f32 %v12063_v59, %v13663_v42 }
 0x6ab   :  { %7724 = vmatpush1.msra.mxu0 %v7660_v48  ;;  %7757 = vmatprep.mubr.f32.mxu0 %v13485_v13  ;;  %v7948_v18 = vmul.f32 %v7930_v40, %v13662_v26  ;;  %v7949_v60 = vmul.f32 %v7926_v56, %v13665_v4  ;;  %v7920_v21 = vsel %vm812_vm4, %v11976_v9, %v11879_v8  ;;  %v9428_v8 = vld [vmem:[%s13273_s16 + $0x58] sm:$0xff]  ;;  %v13666_v56 = vld [vmem:[#allocation19_spill] sm:$0xff] }
 0x6ac   :  { %7812 = vmatprep.subr.mxu1 %v7663_v36  ;;  %9429 = vmatmul.mubr.msk.f32.vlgmr.msra.gmra.mxu0 %vm6836_vm11, %v9425_v44  ;;  %v7946_v48 = vmul.f32 %v12058_v57, %v13664_v23  ;;  %v7940_v59 = vmul.f32 %v7928_v22, %v13662_v26  ;;  %v7924_v57 = vsel %vm812_vm4, %v11875_v58, %v11976_v9 }
 0x6ad   :  { %7813 = vmatpush1.msra.mxu1 %v7662_v31  ;;  %7846 = vmatprep.mubr.f32.mxu1 %v13485_v13  ;;  %v7918_v37 = vpop.permute.xlu0 %7917  ;;  %v7931_v43 = vsel %vm812_vm4, %v11896_v51, %v11991_v47  ;;  %v7945_v36 = vmul.f32 %v12037_v34, %v13665_v4  ;;  %v7939_v31 = vmul.f32 %v7932_v49, %v13663_v42  ;;  %v13668_v49 = vld [vmem:[#allocation18_spill] sm:$0xff] }
 0x6ae   :  { %9433 = vmatmul.mubr.msk.f32.vlgmr.msra.gmra.mxu1 %vm6836_vm11, %v9425_v44  ;;  %7763 = vmatprep.mubr.f32.mxu0 %v13485_v13  ;;  %v7922_v61 = vsel %vm812_vm4, %v12393_v53, %v7918_v37  ;;  %v7934_v5 = vsel %vm812_vm4, %v7918_v37, %v12358_v1  ;;  %v12544_v32 = vpop.permute.xlu1 %8437  ;;  %v9427_v1 = vld [vmem:[%s13273_s16 + $0x50] sm:$0xff]  ;;  %v7927_v44 = vsel %vm812_vm4, %v11991_v47, %v11884_v11 }
 0x6af   :  { %7852 = vmatprep.mubr.f32.mxu1 %v13485_v13  ;;  %v7947_v12 = vmul.f32 %v7934_v5, %v13663_v42  ;;  %v7950_v6 = vmul.f32 %v7922_v61, %v13664_v23  ;;  %7992 = vmatprep.subr.mxu0 %v7948_v18  ;;  %v7942_v18 = vmul.f32 %v7920_v21, %v13664_v23 }
 0x6b0   :  { %9430 = vmatmul.mubr.msk.f32.gmra.mxu0 %vm6836_vm11, %v9426_v15  ;;  %v7919_v58 = vsel %vm812_vm4, %v12003_v17, %v11896_v51  ;;  %v7936_v9 = vmul.f32 %v7927_v44, %v13662_v26  ;;  %v7923_v47 = vsel %vm812_vm4, %v11884_v11, %v12003_v17  ;;  %v7941_v34 = vmul.f32 %v7924_v57, %v13665_v4  ;;  %v9437_v26 = vld [vmem:[%s13273_s16 + $0x60] sm:$0xff] }
 0x6b1   :  { %7769 = vmatprep.mubr.f32.mxu0 %v13485_v13  ;;  %8081 = vmatprep.subr.mxu1 %v7950_v6  ;;  %v12559_v53 = vpop.permute.xlu0 %8722  ;;  %v7938_v37 = vmul.f32 %v7919_v58, %v13664_v23  ;;  %v7937_v5 = vmul.f32 %v7923_v47, %v13665_v4  ;;  %v8221_v57 = vmul.f32 %v12107_v7, %v13668_v49  ;;  %v13672_v7 = vld [vmem:[#allocation65_spill] sm:$0xff] }
 0x6b2   :  { %9434 = vmatmul.mubr.msk.f32.gmra.mxu1 %vm6836_vm11, %v9426_v15  ;;  %7993 = vmatpush1.msra.mxu0 %v7947_v12  ;;  %v12567_v20 = vpop.permute.xlu1 %8453  ;;  %v7935_v15 = vmul.f32 %v7931_v43, %v13663_v42  ;;  %v13667_v12 = vld [vmem:[#allocation20_spill] sm:$0xff]  ;;  %v9440_v43 = vld [vmem:[%s13273_s16 + $0x78] sm:$0xff] }
 0x6b3   :  { %7858 = vmatprep.mubr.f32.mxu1 %v13485_v13  ;;  %7994 = vmatprep.subr.mxu0 %v7944_v0  ;;  %v9438_v0 = vld [vmem:[%s13273_s16 + $0x68] sm:$0xff] }
 0x6b4   :  { %9431 = vmatmul.mubr.msk.f32.gmra.mxu0 %vm6836_vm11, %v9427_v1  ;;  %8082 = vmatpush1.msra.mxu1 %v7949_v60  ;;  %v8199_v60 = vsel %vm1001_vm5, %v11912_v41, %v12044_v33  ;;  %v13669_v33 = vld [vmem:[#allocation17_spill] sm:$0xff] }
 0x6b5   :  { %7775 = vmatprep.mubr.f32.mxu0 %v13485_v13  ;;  %7995 = vmatpush1.msra.mxu0 %v7943_v2  ;;  %v12592_v30 = vpop.permute.xlu0 %8738  ;;  %v8219_v2 = vmul.f32 %v12081_v3, %v13666_v56 }
 0x6b6   :  { %9435 = vmatmul.mubr.msk.f32.gmra.mxu1 %vm6836_vm11, %v9427_v1  ;;  %8083 = vmatprep.subr.mxu1 %v7946_v48  ;;  %v12605_v40 = vpop.permute.xlu1 %8718 }
 0x6b7   :  { %7864 = vmatprep.mubr.f32.mxu1 %v13485_v13  ;;  %7996 = vmatprep.subr.mxu0 %v7940_v59  ;;  %v8215_v59 = vmul.f32 %v8199_v60, %v13666_v56 }
 0x6b8   :  { %9432 = vmatmul.mubr.msk.f32.gmra.mxu0 %vm6836_vm11, %v9428_v8  ;;  %8084 = vmatpush1.msra.mxu1 %v7945_v36 }
 0x6b9   :  { %8085 = vmatprep.subr.mxu1 %v7942_v18  ;;  %7997 = vmatpush1.msra.mxu0 %v7939_v31  ;;  %v8177_v51 = vpop.permute.xlu0 %8176  ;;  %v13670_v31 = vld [vmem:[#allocation38_spill] sm:$0xff]  ;;  %v13671_v18 = vld [vmem:[#allocation57_spill] sm:$0xff] }
 0x6ba   :  { %9436 = vmatmul.mubr.msk.f32.gmra.mxu1 %vm6836_vm11, %v9428_v8  ;;  %7998 = vmatprep.subr.mxu0 %v7936_v9  ;;  %v8201_v11 = vsel %vm1001_vm5, %v8177_v51, %v12433_v39  ;;  %v8205_v17 = vsel %vm1001_vm5, %v12412_v63, %v8177_v51  ;;  %v12633_v61 = vpop.permute.xlu1 %8734  ;;  %v8217_v58 = vmul.f32 %v13671_v18, %v13668_v49  ;;  %v9449_v51 = vld [vmem:[%s13273_s16 + $0xa0] sm:$0xff] }
 0x6bb   :  { %8086 = vmatpush1.msra.mxu1 %v7941_v34  ;;  %7999 = vmatpush1.msra.mxu0 %v7935_v15  ;;  %v8223_v42 = vmul.f32 %v8201_v11, %v13666_v56  ;;  %v8222_v23 = vmul.f32 %v8205_v17, %v13667_v12  ;;  %v8210_v9 = vmul.f32 %v13672_v7, %v13667_v12  ;;  %v13673_v34 = vld [vmem:[#allocation64_spill] sm:$0xff] }
 0x6bc   :  { %8032 = vmatprep.mubr.f32.mxu0 %v13485_v13  ;;  %8087 = vmatprep.subr.mxu1 %v7938_v37  ;;  %v8216_v15 = vmul.f32 %v13673_v34, %v13669_v33  ;;  %v13674_v17 = vld [vmem:[#allocation52_spill] sm:$0xff]  ;;  %v8470_v18 = vsel %vm1190_vm6, %v12526_v55, %v12278_v35  ;;  %v8481_v7 = vsel %vm1190_vm6, %v12385_v19, %v12544_v32 }
 0x6bd   :  { %9441 = vmatmul.mubr.msk.f32.vlgmr.msra.gmra.mxu0 %vm6836_vm11, %v9437_v26  ;;  %8088 = vmatpush1.msra.mxu1 %v7937_v5  ;;  %v8193_v6 = vpop.permute.xlu0 %8192  ;;  %v8213_v5 = vmul.f32 %v13674_v17, %v13668_v49  ;;  %v13682_v17 = vld [vmem:[#allocation28_spill] sm:$0xff] }
 0x6be   :  { %8121 = vmatprep.mubr.f32.mxu1 %v13485_v13  ;;  %8038 = vmatprep.mubr.f32.mxu0 %v13485_v13  ;;  %v8197_v1 = vsel %vm1001_vm5, %v12433_v39, %v8193_v6  ;;  %v8209_v22 = vsel %vm1001_vm5, %v8193_v6, %v12412_v63  ;;  %v12651_v4 = vpop.permute.xlu1 %8716  ;;  %v8218_v39 = vmul.f32 %v12085_v24, %v13667_v12  ;;  %v9439_v24 = vld [vmem:[%s13273_s16 + $0x70] sm:$0xff] }
 0x6bf   :  { %9445 = vmatmul.mubr.msk.f32.vlgmr.msra.gmra.mxu1 %vm6836_vm11, %v9437_v26  ;;  %v8225_v21 = vmul.f32 %v8209_v22, %v13668_v49  ;;  %8267 = vmatprep.subr.mxu0 %v8223_v42  ;;  %v8203_v63 = vsel %vm1001_vm5, %v12023_v29, %v11912_v41  ;;  %v8224_v3 = vmul.f32 %v8197_v1, %v13669_v33  ;;  %v13677_v6 = vld [vmem:[#allocation24_spill] sm:$0xff]  ;;  %v9450_v22 = vld [vmem:[%s13273_s16 + $0xa8] sm:$0xff] }
 0x6c0   :  { %8127 = vmatprep.mubr.f32.mxu1 %v13485_v13  ;;  %8268 = vmatpush1.msra.mxu0 %v8222_v23  ;;  %v8214_v41 = vmul.f32 %v8203_v63, %v13667_v12  ;;  %v8211_v29 = vmul.f32 %v12095_v25, %v13666_v56  ;;  %v8220_v25 = vmul.f32 %v13670_v31, %v13669_v33  ;;  %v13675_v56 = vld [vmem:[#allocation23_spill] sm:$0xff]  ;;  %v13676_v12 = vld [vmem:[#allocation54_spill] sm:$0xff] }
 0x6c1   :  { %9442 = vmatmul.mubr.msk.f32.gmra.mxu0 %vm6836_vm11, %v9438_v0  ;;  %8269 = vmatprep.subr.mxu0 %v8219_v2  ;;  %v12670_v48 = vpop.permute.xlu0 %8720  ;;  %v8212_v23 = vmul.f32 %v13676_v12, %v13669_v33  ;;  %v13678_v63 = vld [vmem:[#allocation22_spill] sm:$0xff]  ;;  %v9462_v12 = vld [vmem:[%s13273_s16 + $0xc8] sm:$0xff] }
 0x6c2   :  { %8044 = vmatprep.mubr.f32.mxu0 %v13485_v13  ;;  %8270 = vmatpush1.msra.mxu0 %v8218_v39  ;;  %v12677_v44 = vpop.permute.xlu1 %8732  ;;  %v8474_v39 = vsel %vm1190_vm6, %v12242_v52, %v12526_v55  ;;  %v8496_v31 = vmul.f32 %v12131_v46, %v13678_v63  ;;  %v13680_v46 = vld [vmem:[#allocation37_spill] sm:$0xff]  ;;  %v8488_v34 = vmul.f32 %v8481_v7, %v13678_v63 }
 0x6c3   :  { %9446 = vmatmul.mubr.msk.f32.gmra.mxu1 %vm6836_vm11, %v9438_v0  ;;  %8356 = vmatprep.subr.mxu1 %v8225_v21  ;;  %v8494_v21 = vmul.f32 %v12119_v27, %v13675_v56  ;;  %v8490_v52 = vmul.f32 %v8474_v39, %v13675_v56 }
 0x6c4   :  { %8133 = vmatprep.mubr.f32.mxu1 %v13485_v13  ;;  %8271 = vmatprep.subr.mxu0 %v8215_v59  ;;  %v8473_v59 = vsel %vm1190_vm6, %v12346_v14, %v12567_v20 }
 0x6c5   :  { %9443 = vmatmul.mubr.msk.f32.gmra.mxu0 %vm6836_vm11, %v9439_v24  ;;  %8357 = vmatpush1.msra.mxu1 %v8224_v3  ;;  %v12685_v8 = vpop.permute.xlu0 %8736 }
 0x6c6   :  { %8272 = vmatpush1.msra.mxu0 %v8214_v41  ;;  %8050 = vmatprep.mubr.f32.mxu0 %v13485_v13  ;;  %v12693_v36 = vpop.permute.xlu1 %8714  ;;  %v8489_v41 = vmul.f32 %v12253_v62, %v13677_v6  ;;  %v9452_v62 = vld [vmem:[%s13273_s16 + $0xb8] sm:$0xff] }
 0x6c7   :  { %9447 = vmatmul.mubr.msk.f32.gmra.mxu1 %vm6836_vm11, %v9439_v24  ;;  %8273 = vmatprep.subr.mxu0 %v8211_v29  ;;  %v8477_v29 = vsel %vm1190_vm6, %v12544_v32, %v12346_v14  ;;  %v9461_v32 = vld [vmem:[%s13273_s16 + $0xc0] sm:$0xff] }
 0x6c8   :  { %8358 = vmatprep.subr.mxu1 %v8221_v57  ;;  %8139 = vmatprep.mubr.f32.mxu1 %v13485_v13  ;;  %v8486_v57 = vmul.f32 %v8473_v59, %v13675_v56  ;;  %v8757_v59 = vsel %vm1379_vm7, %v12592_v30, %v12693_v36 }
 0x6c9   :  { %9444 = vmatmul.mubr.msk.f32.gmra.mxu0 %vm6836_vm11, %v9440_v43  ;;  %8359 = vmatpush1.msra.mxu1 %v8220_v25  ;;  %v8452_v47 = vpop.permute.xlu0 %8451 }
 0x6ca   :  { %8274 = vmatpush1.msra.mxu0 %v8210_v9  ;;  %8360 = vmatprep.subr.mxu1 %v8217_v58  ;;  %v8476_v37 = vsel %vm1190_vm6, %v8452_v47, %v12503_v54  ;;  %v8480_v26 = vsel %vm1190_vm6, %v12463_v45, %v8452_v47  ;;  %v12715_v11 = vpop.permute.xlu1 %8730  ;;  %v8492_v58 = vmul.f32 %v13680_v46, %v13678_v63 }
 0x6cb   :  { %9448 = vmatmul.mubr.msk.f32.gmra.mxu1 %vm6836_vm11, %v9440_v43  ;;  %8307 = vmatprep.mubr.f32.mxu0 %v13485_v13  ;;  %v8498_v42 = vmul.f32 %v8476_v37, %v13675_v56  ;;  %v8497_v0 = vmul.f32 %v8480_v26, %v13677_v6  ;;  %v8485_v9 = vmul.f32 %v8477_v29, %v13677_v6 }
 0x6cc   :  { %8361 = vmatpush1.msra.mxu1 %v8216_v15  ;;  %8396 = vmatprep.mubr.f32.mxu1 %v13485_v13  ;;  %v13681_v15 = vld [vmem:[#allocation27_spill] sm:$0xff]  ;;  %v8750_v26 = vsel %vm1379_vm7, %v12455_v28, %v12677_v44  ;;  %v8754_v56 = vsel %vm1379_vm7, %v12651_v4, %v12455_v28  ;;  %v8745_v29 = vsel %vm1379_vm7, %v12715_v11, %v12592_v30 }
 0x6cd   :  { %8362 = vmatprep.subr.mxu1 %v8213_v5  ;;  %9453 = vmatmul.mubr.msk.f32.vlgmr.msra.gmra.mxu0 %vm6836_vm11, %v9449_v51  ;;  %v8468_v1 = vpop.permute.xlu0 %8467 }
 0x6ce   :  { %8363 = vmatpush1.msra.mxu1 %v8212_v23  ;;  %8313 = vmatprep.mubr.f32.mxu0 %v13485_v13  ;;  %v8472_v60 = vsel %vm1190_vm6, %v12503_v54, %v8468_v1  ;;  %v8484_v2 = vsel %vm1190_vm6, %v8468_v1, %v12463_v45  ;;  %v12737_v49 = vpop.permute.xlu1 %8712  ;;  %v8493_v54 = vmul.f32 %v12115_v50, %v13677_v6  ;;  %v13679_v45 = vld [vmem:[#allocation21_spill] sm:$0xff]  ;;  %v9451_v50 = vld [vmem:[%s13273_s16 + $0xb0] sm:$0xff] }
 0x6cf   :  { %9457 = vmatmul.mubr.msk.f32.vlgmr.msra.gmra.mxu1 %vm6836_vm11, %v9449_v51  ;;  %v8500_v33 = vmul.f32 %v8484_v2, %v13678_v63  ;;  %8542 = vmatprep.subr.mxu0 %v8498_v42  ;;  %v8499_v27 = vmul.f32 %v8472_v60, %v13679_v45  ;;  %v8495_v14 = vmul.f32 %v12127_v38, %v13679_v45  ;;  %v13684_v2 = vld [vmem:[#allocation25_spill] sm:$0xff] }
 0x6d0   :  { %8402 = vmatprep.mubr.f32.mxu1 %v13485_v13  ;;  %8543 = vmatpush1.msra.mxu0 %v8497_v0  ;;  %v8469_v38 = vsel %vm1190_vm6, %v12567_v20, %v12385_v19  ;;  %v8491_v55 = vmul.f32 %v8470_v18, %v13679_v45  ;;  %v8769_v0 = vmul.f32 %v8750_v26, %v13681_v15  ;;  %v13687_v26 = vld [vmem:[#allocation31_spill] sm:$0xff] }
 0x6d1   :  { %9454 = vmatmul.mubr.msk.f32.gmra.mxu0 %vm6836_vm11, %v9450_v22  ;;  %8544 = vmatprep.subr.mxu0 %v8494_v21  ;;  %v12752_v3 = vpop.permute.xlu0 %8999  ;;  %v8487_v37 = vmul.f32 %v8469_v38, %v13679_v45  ;;  %v8749_v1 = vsel %vm1379_vm7, %v12559_v53, %v12715_v11  ;;  %v8758_v45 = vsel %vm1379_vm7, %v12494_v16, %v12651_v4 }
 0x6d2   :  { %8319 = vmatprep.mubr.f32.mxu0 %v13485_v13  ;;  %8545 = vmatpush1.msra.mxu0 %v8493_v54  ;;  %v12763_v24 = vpop.permute.xlu1 %8728  ;;  %v8765_v63 = vmul.f32 %v8749_v1, %v13681_v15  ;;  %v8752_v4 = vsel %vm1379_vm7, %v12737_v49, %v12670_v48 }
 0x6d3   :  { %9458 = vmatmul.mubr.msk.f32.gmra.mxu1 %vm6836_vm11, %v9450_v22  ;;  %8631 = vmatprep.subr.mxu1 %v8500_v33  ;;  %v13683_v22 = vld [vmem:[#allocation26_spill] sm:$0xff]  ;;  %v8748_v33 = vsel %vm1379_vm7, %v12670_v48, %v12763_v24  ;;  %v8744_v30 = vsel %vm1379_vm7, %v12763_v24, %v12685_v8 }
 0x6d4   :  { %8408 = vmatprep.mubr.f32.mxu1 %v13485_v13  ;;  %8546 = vmatprep.subr.mxu0 %v8490_v52 }
 0x6d5   :  { %9455 = vmatmul.mubr.msk.f32.gmra.mxu0 %vm6836_vm11, %v9451_v50  ;;  %8632 = vmatpush1.msra.mxu1 %v8499_v27  ;;  %v12775_v43 = vpop.permute.xlu0 %9015  ;;  %v8746_v27 = vsel %vm1379_vm7, %v12677_v44, %v12494_v16  ;;  %v8771_v44 = vmul.f32 %v8758_v45, %v13683_v22 }
 0x6d6   :  { %8547 = vmatpush1.msra.mxu0 %v8489_v41  ;;  %8325 = vmatprep.mubr.f32.mxu0 %v13485_v13  ;;  %v12783_v25 = vpop.permute.xlu1 %8993  ;;  %v8770_v48 = vmul.f32 %v8746_v27, %v13684_v2 }
 0x6d7   :  { %9459 = vmatmul.mubr.msk.f32.gmra.mxu1 %vm6836_vm11, %v9451_v50  ;;  %8548 = vmatprep.subr.mxu0 %v8486_v57  ;;  %v8761_v50 = vmul.f32 %v8748_v33, %v13681_v15  ;;  %v8767_v57 = vmul.f32 %v8757_v59, %v13683_v22  ;;  %v9485_v59 = vld [vmem:[%s13273_s16 + $0x100] sm:$0xff] }
 0x6d8   :  { %8633 = vmatprep.subr.mxu1 %v8496_v31  ;;  %8414 = vmatprep.mubr.f32.mxu1 %v13485_v13  ;;  %v8756_v31 = vsel %vm1379_vm7, %v12685_v8, %v12737_v49  ;;  %v9473_v49 = vld [vmem:[%s13273_s16 + $0xe0] sm:$0xff] }
 0x6d9   :  { %9456 = vmatmul.mubr.msk.f32.gmra.mxu0 %vm6836_vm11, %v9452_v62  ;;  %8634 = vmatpush1.msra.mxu1 %v8495_v14  ;;  %v8727_v35 = vpop.permute.xlu0 %8726  ;;  %v8766_v14 = vmul.f32 %v8745_v29, %v13684_v2  ;;  %v8763_v46 = vmul.f32 %v8756_v31, %v13683_v22 }
 0x6da   :  { %8549 = vmatpush1.msra.mxu0 %v8485_v9  ;;  %8635 = vmatprep.subr.mxu1 %v8492_v58  ;;  %v8751_v47 = vsel %vm1379_vm7, %v8727_v35, %v12633_v61  ;;  %v8755_v19 = vsel %vm1379_vm7, %v12605_v40, %v8727_v35  ;;  %v12815_v20 = vpop.permute.xlu1 %9009  ;;  %v13685_v58 = vld [vmem:[#allocation30_spill] sm:$0xff]  ;;  %v8762_v9 = vmul.f32 %v8744_v30, %v13684_v2  ;;  %v13686_v35 = vld [vmem:[#allocation32_spill] sm:$0xff] }
 0x6db   :  { %9460 = vmatmul.mubr.msk.f32.gmra.mxu1 %vm6836_vm11, %v9452_v62  ;;  %8582 = vmatprep.mubr.f32.mxu0 %v13485_v13  ;;  %v8773_v51 = vmul.f32 %v8751_v47, %v13681_v15  ;;  %v8772_v5 = vmul.f32 %v8755_v19, %v13682_v17  ;;  %v8760_v62 = vmul.f32 %v8752_v4, %v13682_v17  ;;  %v9474_v19 = vld [vmem:[%s13273_s16 + $0xe8] sm:$0xff] }
 0x6dc   :  { %8636 = vmatpush1.msra.mxu1 %v8491_v55  ;;  %8671 = vmatprep.mubr.f32.mxu1 %v13485_v13  ;;  %v9486_v4 = vld [vmem:[%s13273_s16 + $0x108] sm:$0xff] }
 0x6dd   :  { %8637 = vmatprep.subr.mxu1 %v8488_v34  ;;  %9465 = vmatmul.mubr.msk.f32.vlgmr.msra.gmra.mxu0 %vm6836_vm11, %v9461_v32  ;;  %v8743_v42 = vpop.permute.xlu0 %8742 }
 0x6de   :  { %8638 = vmatpush1.msra.mxu1 %v8487_v37  ;;  %8588 = vmatprep.mubr.f32.mxu0 %v13485_v13  ;;  %v8747_v23 = vsel %vm1379_vm7, %v12633_v61, %v8743_v42  ;;  %v8759_v6 = vsel %vm1379_vm7, %v8743_v42, %v12605_v40  ;;  %v12843_v28 = vpop.permute.xlu1 %8991  ;;  %v8768_v61 = vmul.f32 %v8754_v56, %v13682_v17  ;;  %v13688_v56 = vld [vmem:[#allocation29_spill] sm:$0xff] }
 0x6df   :  { %9469 = vmatmul.mubr.msk.f32.vlgmr.msra.gmra.mxu1 %vm6836_vm11, %v9461_v32  ;;  %v8775_v60 = vmul.f32 %v8759_v6, %v13683_v22  ;;  %8817 = vmatprep.subr.mxu0 %v8773_v51  ;;  %v8753_v40 = vsel %vm1379_vm7, %v12693_v36, %v12559_v53  ;;  %v8774_v21 = vmul.f32 %v8747_v23, %v13684_v2  ;;  %v9463_v53 = vld [vmem:[%s13273_s16 + $0xd0] sm:$0xff]  ;;  %v9464_v36 = vld [vmem:[%s13273_s16 + $0xd8] sm:$0xff] }
 0x6e0   :  { %8677 = vmatprep.mubr.f32.mxu1 %v13485_v13  ;;  %8818 = vmatpush1.msra.mxu0 %v8772_v5  ;;  %v8764_v52 = vmul.f32 %v8753_v40, %v13682_v17  ;;  %v9029_v32 = vsel %vm1568_vm8, %v12843_v28, %v12752_v3 }
 0x6e1   :  { %9466 = vmatmul.mubr.msk.f32.gmra.mxu0 %vm6836_vm11, %v9462_v12  ;;  %8819 = vmatprep.subr.mxu0 %v8769_v0  ;;  %v12860_v39 = vpop.permute.xlu0 %8997  ;;  %v9043_v5 = vmul.f32 %v9029_v32, %v13686_v35 }
 0x6e2   :  { %8594 = vmatprep.mubr.f32.mxu0 %v13485_v13  ;;  %8820 = vmatpush1.msra.mxu0 %v8768_v61  ;;  %v12871_v54 = vpop.permute.xlu1 %9007 }
 0x6e3   :  { %9470 = vmatmul.mubr.msk.f32.gmra.mxu1 %vm6836_vm11, %v9462_v12  ;;  %8906 = vmatprep.subr.mxu1 %v8775_v60  ;;  %v9025_v38 = vsel %vm1568_vm8, %v12752_v3, %v12871_v54  ;;  %v9021_v23 = vsel %vm1568_vm8, %v12871_v54, %v12775_v43 }
 0x6e4   :  { %8683 = vmatprep.mubr.f32.mxu1 %v13485_v13  ;;  %8821 = vmatprep.subr.mxu0 %v8765_v63  ;;  %v9044_v51 = vmul.f32 %v9025_v38, %v13685_v58  ;;  %v9045_v61 = vmul.f32 %v9021_v23, %v13688_v56  ;;  %v9476_v63 = vld [vmem:[%s13273_s16 + $0xf8] sm:$0xff] }
 0x6e5   :  { %9467 = vmatmul.mubr.msk.f32.gmra.mxu0 %vm6836_vm11, %v9463_v53  ;;  %8907 = vmatpush1.msra.mxu1 %v8774_v21  ;;  %v12894_v16 = vpop.permute.xlu0 %9013 }
 0x6e6   :  { %8822 = vmatpush1.msra.mxu0 %v8764_v52  ;;  %8600 = vmatprep.mubr.f32.mxu0 %v13485_v13  ;;  %v12901_v41 = vpop.permute.xlu1 %8989 }
 0x6e7   :  { %9471 = vmatmul.mubr.msk.f32.gmra.mxu1 %vm6836_vm11, %v9463_v53  ;;  %8823 = vmatprep.subr.mxu0 %v8761_v50  ;;  %v9487_v50 = vld [vmem:[%s13273_s16 + $0x110] sm:$0xff] }
 0x6e8   :  { %8908 = vmatprep.subr.mxu1 %v8771_v44  ;;  %8689 = vmatprep.mubr.f32.mxu1 %v13485_v13  ;;  %v6915_v44 = vpop.f32.mrf.mxu0 }
 0x6e9   :  { %9468 = vmatmul.mubr.msk.f32.gmra.mxu0 %vm6836_vm11, %v9464_v36  ;;  %8909 = vmatpush1.msra.mxu1 %v8770_v48  ;;  %v9002_v11 = vpop.permute.xlu0 %9001 }
 0x6ea   :  { %8824 = vmatpush1.msra.mxu0 %v8760_v62  ;;  %8910 = vmatprep.subr.mxu1 %v8767_v57  ;;  %v9026_v18 = vsel %vm1568_vm8, %v9002_v11, %v12815_v20  ;;  %v9030_v8 = vsel %vm1568_vm8, %v12783_v25, %v9002_v11  ;;  %v9006_v24 = vpop.permute.xlu1 %9005 }
 0x6eb   :  { %9472 = vmatmul.mubr.msk.f32.gmra.mxu1 %vm6836_vm11, %v9464_v36  ;;  %8857 = vmatprep.mubr.f32.mxu0 %v13485_v13  ;;  %v9048_v7 = vmul.f32 %v9026_v18, %v13685_v58  ;;  %v9047_v55 = vmul.f32 %v9030_v8, %v13686_v35  ;;  %v9024_v37 = vsel %vm1568_vm8, %v12860_v39, %v9006_v24  ;;  %v7004_v36 = vpop.f32.mrf.mxu1 }
 0x6ec   :  { %8911 = vmatpush1.msra.mxu1 %v8766_v14  ;;  %8946 = vmatprep.mubr.f32.mxu1 %v13485_v13  ;;  %v9040_v6 = vmul.f32 %v9024_v37, %v13685_v58  ;;  %v9020_v40 = vsel %vm1568_vm8, %v9006_v24, %v12894_v16 }
 0x6ed   :  { %8912 = vmatprep.subr.mxu1 %v8763_v46  ;;  %9477 = vmatmul.mubr.msk.f32.vlgmr.msra.gmra.mxu0 %vm6836_vm11, %v9473_v49  ;;  %v9018_v47 = vpop.permute.xlu0 %9017  ;;  %v9041_v45 = vmul.f32 %v9020_v40, %v13688_v56  ;;  %v7006_v48 = vpop.f32.mrf.mxu1 }
 0x6ee   :  { %8913 = vmatpush1.msra.mxu1 %v8762_v9  ;;  %8863 = vmatprep.mubr.f32.mxu0 %v13485_v13  ;;  %v9022_v34 = vsel %vm1568_vm8, %v12815_v20, %v9018_v47  ;;  %v9034_v15 = vsel %vm1568_vm8, %v9018_v47, %v12783_v25  ;;  %v8988_v3 = vpop.permute.xlu1 %8987  ;;  %v9033_v25 = vsel %vm1568_vm8, %v12775_v43, %v12843_v28  ;;  %v9475_v28 = vld [vmem:[%s13273_s16 + $0xf0] sm:$0xff] }
 0x6ef   :  { %9481 = vmatmul.mubr.msk.f32.vlgmr.msra.gmra.mxu1 %vm6836_vm11, %v9473_v49  ;;  %v9050_v17 = vmul.f32 %v9034_v15, %v13687_v26  ;;  %9092 = vmatprep.subr.mxu0 %v9048_v7  ;;  %v9028_v20 = vsel %vm1568_vm8, %v12901_v41, %v12860_v39  ;;  %v9049_v42 = vmul.f32 %v9022_v34, %v13688_v56  ;;  %v7010_v57 = vpop.f32.mrf.mxu1 }
 0x6f0   :  { %8952 = vmatprep.mubr.f32.mxu1 %v13485_v13  ;;  %9093 = vmatpush1.msra.mxu0 %v9047_v55  ;;  %v9046_v22 = vmul.f32 %v9033_v25, %v13687_v26  ;;  %v9032_v43 = vsel %vm1568_vm8, %v12894_v16, %v12901_v41  ;;  %v9039_v60 = vmul.f32 %v9028_v20, %v13686_v35  ;;  %v9488_v16 = vld [vmem:[%s13273_s16 + $0x118] sm:$0xff]  ;;  %v6917_v41 = vpop.f32.mrf.mxu0 }
 0x6f1   :  { %9478 = vmatmul.mubr.msk.f32.gmra.mxu0 %vm6836_vm11, %v9474_v19  ;;  %9094 = vmatprep.subr.mxu0 %v9044_v51  ;;  %v8996_v12 = vpop.permute.xlu0 %8995  ;;  %v9042_v54 = vmul.f32 %v9032_v43, %v13687_v26  ;;  %v7012_v62 = vpop.f32.mrf.mxu1 }
 0x6f2   :  { %8869 = vmatprep.mubr.f32.mxu0 %v13485_v13  ;;  %9095 = vmatpush1.msra.mxu0 %v9043_v5  ;;  %v9004_v0 = vpop.permute.xlu1 %9003  ;;  %v9027_v2 = vsel %vm1568_vm8, %v8988_v3, %v8996_v12  ;;  %v6921_v29 = vpop.f32.mrf.mxu0 }
 0x6f3   :  { %9482 = vmatmul.mubr.msk.f32.gmra.mxu1 %vm6836_vm11, %v9474_v19  ;;  %9181 = vmatprep.subr.mxu1 %v9050_v17  ;;  %v9023_v1 = vsel %vm1568_vm8, %v8996_v12, %v9004_v0  ;;  %v9035_v52 = vmul.f32 %v9027_v2, %v13686_v35  ;;  %v7016_v11 = vpop.f32.mrf.mxu1 }
 0x6f4   :  { %8958 = vmatprep.mubr.f32.mxu1 %v13485_v13  ;;  %9096 = vmatprep.subr.mxu0 %v9040_v6  ;;  %v9036_v39 = vmul.f32 %v9023_v1, %v13685_v58  ;;  %v6923_v31 = vpop.f32.mrf.mxu0 }
 0x6f5   :  { %9479 = vmatmul.mubr.msk.f32.gmra.mxu0 %vm6836_vm11, %v9475_v28  ;;  %9182 = vmatpush1.msra.mxu1 %v9049_v42  ;;  %v9012_v21 = vpop.permute.xlu0 %9011  ;;  %v7018_v49 = vpop.f32.mrf.mxu1 }
 0x6f6   :  { %9097 = vmatpush1.msra.mxu0 %v9039_v60  ;;  %8875 = vmatprep.mubr.f32.mxu0 %v13485_v13  ;;  %v9019_v33 = vsel %vm1568_vm8, %v9004_v0, %v9012_v21  ;;  %v9031_v53 = vsel %vm1568_vm8, %v9012_v21, %v8988_v3  ;;  %v6927_v30 = vpop.f32.mrf.mxu0 }
 0x6f7   :  { %9483 = vmatmul.mubr.msk.f32.gmra.mxu1 %vm6836_vm11, %v9475_v28  ;;  %9183 = vmatprep.subr.mxu1 %v9046_v22  ;;  %v9038_v27 = vmul.f32 %v9031_v53, %v13687_v26  ;;  %v9037_v10 = vmul.f32 %v9019_v33, %v13688_v56  ;;  %v7022_v8 = vpop.f32.mrf.mxu1 }
 0x6f8   :  { %8964 = vmatprep.mubr.f32.mxu1 %v13485_v13  ;;  %9184 = vmatpush1.msra.mxu1 %v9045_v61  ;;  %v6929_v14 = vpop.f32.mrf.mxu0 }
 0x6f9   :  { %9480 = vmatmul.mubr.msk.f32.gmra.mxu0 %vm6836_vm11, %v9476_v63  ;;  %9185 = vmatprep.subr.mxu1 %v9042_v54  ;;  %v13049_v46 = vpop.f32.mrf.mxu1 }
 0x6fa   :  { %9186 = vmatpush1.msra.mxu1 %v9041_v45  ;;  %9098 = vmatprep.subr.mxu0 %v9036_v39  ;;  %v6933_v18 = vpop.f32.mrf.mxu0 }
 0x6fb   :  { %9484 = vmatmul.mubr.msk.f32.gmra.mxu1 %vm6836_vm11, %v9476_v63  ;;  %9099 = vmatpush1.msra.mxu0 %v9035_v52 }
 0x6fc   :  { %9132 = vmatprep.mubr.f32.mxu0 %v13485_v13  ;;  %9187 = vmatprep.subr.mxu1 %v9038_v27 }
 0x6fd   :  { %9489 = vmatmul.mubr.msk.f32.vlgmr.msra.gmra.mxu0 %vm6836_vm11, %v9485_v59  ;;  %9188 = vmatpush1.msra.mxu1 %v9037_v10 }
 0x6fe   :  { %9221 = vmatprep.mubr.f32.mxu1 %v13485_v13  ;;  %9138 = vmatprep.mubr.f32.mxu0 %v13485_v13 }
 0x6ff   :  { %9493 = vmatmul.mubr.msk.f32.vlgmr.msra.gmra.mxu1 %vm6836_vm11, %v9485_v59 }
 0x700   :  { %9227 = vmatprep.mubr.f32.mxu1 %v13485_v13  ;;  %v7030_v24 = vpop.permute.xlu1 %7029 }
 0x701   :  { %9490 = vmatmul.mubr.msk.f32.gmra.mxu0 %vm6836_vm11, %v9486_v4  ;;  %v7047_v58 = vadd.f32 %v7030_v24, %v6915_v44  ;;  %v7049_v38 = vadd.f32 %v7030_v24, %v7004_v36  ;;  %v7048_v32 = vadd.f32 %v7030_v24, %v6917_v41  ;;  %v7050_v34 = vadd.f32 %v7030_v24, %v7006_v48 }
 0x702   :  { %9144 = vmatprep.mubr.f32.mxu0 %v13485_v13  ;;  %v7035_v7 = vpop.permute.xlu0 %7034 }
 0x703   :  { %9494 = vmatmul.mubr.msk.f32.gmra.mxu1 %vm6836_vm11, %v9486_v4  ;;  %v7051_v51 = vadd.f32 %v7035_v7, %v6921_v29  ;;  %v7053_v5 = vadd.f32 %v7035_v7, %v7010_v57  ;;  %v7052_v56 = vadd.f32 %v7035_v7, %v6923_v31  ;;  %v7054_v23 = vadd.f32 %v7035_v7, %v7012_v62 }
 0x704   :  { %9233 = vmatprep.mubr.f32.mxu1 %v13485_v13 }
 0x705   :  { %9491 = vmatmul.mubr.msk.f32.gmra.mxu0 %vm6836_vm11, %v9487_v50  ;;  %v7040_v37 = vpop.permute.xlu1 %7039 }
 0x706   :  { %9150 = vmatprep.mubr.f32.mxu0 %v13485_v13  ;;  %v7055_v0 = vadd.f32 %v7040_v37, %v6927_v30  ;;  %v7045_v1 = vpop.permute.xlu0 %7044  ;;  %v7057_v60 = vadd.f32 %v7040_v37, %v7016_v11  ;;  %v7056_v2 = vadd.f32 %v7040_v37, %v6929_v14  ;;  %v7058_v63 = vadd.f32 %v7040_v37, %v7018_v49 }
 0x707   :  { %9495 = vmatmul.mubr.msk.f32.gmra.mxu1 %vm6836_vm11, %v9487_v50  ;;  %v7059_v54 = vadd.f32 %v7045_v1, %v6933_v18  ;;  %v7061_v10 = vadd.f32 %v7045_v1, %v7022_v8 }
 0x708   :  { %9239 = vmatprep.mubr.f32.mxu1 %v13485_v13  ;;  %v13047_v13 = vpop.f32.mrf.mxu0 }
 0x709   :  { %9492 = vmatmul.mubr.msk.f32.gmra.mxu0 %vm6836_vm11, %v9488_v16 }
 0x70b   :  { %9496 = vmatmul.mubr.msk.f32.gmra.mxu1 %vm6836_vm11, %v9488_v16 }
 0x749   :  { %v7209_v9 = vpop.f32.mrf.mxu0 }
 0x74a   :  { %v7321_v35 = vadd.f32 %v7209_v9, %v7047_v58  ;;  %v7298_v55 = vpop.f32.mrf.mxu1 }
 0x74b   :  { %v7323_v47 = vadd.f32 %v7298_v55, %v7049_v38  ;;  %v7211_v19 = vpop.f32.mrf.mxu0 }
 0x74c   :  { %v7322_v15 = vadd.f32 %v7211_v19, %v7048_v32  ;;  %v7300_v3 = vpop.f32.mrf.mxu1 }
 0x74d   :  { %v7324_v26 = vadd.f32 %v7300_v3, %v7050_v34  ;;  %v7215_v17 = vpop.f32.mrf.mxu0  ;;  %v7062_v3 = vadd.f32 %v7045_v1, %v13049_v46 }
 0x74e   :  { %v7325_v25 = vadd.f32 %v7215_v17, %v7051_v51  ;;  %v7304_v20 = vpop.f32.mrf.mxu1 }
 0x74f   :  { %v7327_v42 = vadd.f32 %v7304_v20, %v7053_v5  ;;  %v7217_v12 = vpop.f32.mrf.mxu0 }
 0x750   :  { %v7326_v6 = vadd.f32 %v7217_v12, %v7052_v56  ;;  %v7306_v28 = vpop.f32.mrf.mxu1 }
 0x751   :  { %v7328_v22 = vadd.f32 %v7306_v28, %v7054_v23  ;;  %v7221_v43 = vpop.f32.mrf.mxu0 }
 0x752   :  { %v7329_v61 = vadd.f32 %v7221_v43, %v7055_v0  ;;  %v7310_v40 = vpop.f32.mrf.mxu1 }
 0x753   :  { %v7331_v21 = vadd.f32 %v7310_v40, %v7057_v60  ;;  %v7223_v39 = vpop.f32.mrf.mxu0 }
 0x754   :  { %v7330_v33 = vadd.f32 %v7223_v39, %v7056_v2  ;;  %v7312_v53 = vpop.f32.mrf.mxu1 }
 0x755   :  { %v7332_v45 = vadd.f32 %v7312_v53, %v7058_v63  ;;  %v7227_v27 = vpop.f32.mrf.mxu0 }
 0x756   :  { %v7333_v52 = vadd.f32 %v7227_v27, %v7059_v54 }
 0x757   :  { %v7229_v59 = vpop.f32.mrf.mxu0 }
 0x758   :  { %v7316_v4 = vpop.f32.mrf.mxu1 }
 0x759   :  { %v7335_v50 = vadd.f32 %v7316_v4, %v7061_v10 }
 0x75a   :  { %v7318_v16 = vpop.f32.mrf.mxu1 }
 0x75b   :  { %v7484_v44 = vpop.f32.mrf.mxu0  ;;  %v7336_v5 = vadd.f32 %v7318_v16, %v7062_v3 }
 0x75c   :  { %v7596_v36 = vadd.f32 %v7484_v44, %v7321_v35  ;;  %v7060_v35 = vadd.f32 %v7045_v1, %v13047_v13 }
 0x75d   :  { %v7573_v41 = vpop.f32.mrf.mxu1  ;;  %v7486_v48 = vpop.f32.mrf.mxu0 }
 0x75e   :  { %v7598_v29 = vadd.f32 %v7573_v41, %v7323_v47  ;;  %v7597_v57 = vadd.f32 %v7486_v48, %v7322_v15  ;;  %v7334_v15 = vadd.f32 %v7229_v59, %v7060_v35 }
 0x75f   :  { %v7575_v31 = vpop.f32.mrf.mxu1  ;;  %v7490_v62 = vpop.f32.mrf.mxu0 }
 0x760   :  { %v7599_v30 = vadd.f32 %v7575_v31, %v7324_v26  ;;  %v7600_v11 = vadd.f32 %v7490_v62, %v7325_v25 }
 0x761   :  { %v7579_v14 = vpop.f32.mrf.mxu1  ;;  %v7492_v49 = vpop.f32.mrf.mxu0 }
 0x762   :  { %v7602_v18 = vadd.f32 %v7579_v14, %v7327_v42  ;;  %v7601_v24 = vadd.f32 %v7492_v49, %v7326_v6 }
 0x763   :  { %v7581_v58 = vpop.f32.mrf.mxu1  ;;  %v7496_v8 = vpop.f32.mrf.mxu0 }
 0x764   :  { %v7603_v7 = vadd.f32 %v7581_v58, %v7328_v22  ;;  %v7604_v9 = vadd.f32 %v7496_v8, %v7329_v61 }
 0x765   :  { %v7585_v38 = vpop.f32.mrf.mxu1  ;;  %v7498_v55 = vpop.f32.mrf.mxu0 }
 0x766   :  { %v7606_v32 = vadd.f32 %v7585_v38, %v7331_v21  ;;  %v7605_v19 = vadd.f32 %v7498_v55, %v7330_v33 }
 0x767   :  { %v7587_v47 = vpop.f32.mrf.mxu1  ;;  %v7502_v34 = vpop.f32.mrf.mxu0 }
 0x768   :  { %v7607_v51 = vadd.f32 %v7587_v47, %v7332_v45  ;;  %v7608_v37 = vadd.f32 %v7502_v34, %v7333_v52 }
 0x769   :  { %v7591_v26 = vpop.f32.mrf.mxu1  ;;  %v7504_v17 = vpop.f32.mrf.mxu0 }
 0x76a   :  { %v7610_v25 = vadd.f32 %v7591_v26, %v7335_v50  ;;  %v7609_v20 = vadd.f32 %v7504_v17, %v7334_v15 }
 0x76b   :  { %v7593_v56 = vpop.f32.mrf.mxu1 }
 0x76c   :  { %v7611_v42 = vadd.f32 %v7593_v56, %v7336_v5  ;;  %v7759_v12 = vpop.f32.mrf.mxu0 }
 0x76d   :  { %v13053_v23 = vadd.f32 %v7759_v12, %v7596_v36 }
 0x76e   :  { %v7848_v13 = vpop.f32.mrf.mxu1  ;;  %v7761_v6 = vpop.f32.mrf.mxu0 }
 0x76f   :  { %v13055_v28 = vadd.f32 %v7848_v13, %v7598_v29  ;;  %v13057_v0 = vadd.f32 %v7761_v6, %v7597_v57 }
 0x770   :  { %v7850_v22 = vpop.f32.mrf.mxu1  ;;  %v7765_v46 = vpop.f32.mrf.mxu0 }
 0x771   :  { %v13059_v1 = vadd.f32 %v7850_v22, %v7599_v30  ;;  %v13061_v43 = vadd.f32 %v7765_v46, %v7600_v11 }
 0x772   :  { %v7854_v60 = vpop.f32.mrf.mxu1  ;;  %v7767_v61 = vpop.f32.mrf.mxu0 }
 0x773   :  { %v13063_v40 = vadd.f32 %v7854_v60, %v7602_v18  ;;  %v13065_v2 = vadd.f32 %v7767_v61, %v7601_v24 }
 0x774   :  { %v7856_v21 = vpop.f32.mrf.mxu1  ;;  %v7771_v39 = vpop.f32.mrf.mxu0 }
 0x775   :  { %v13067_v63 = vadd.f32 %v7856_v21, %v7603_v7  ;;  %v13069_v33 = vadd.f32 %v7771_v39, %v7604_v9 }
 0x776   :  { %v7860_v53 = vpop.f32.mrf.mxu1  ;;  %v7773_v54 = vpop.f32.mrf.mxu0 }
 0x777   :  { %v13071_v45 = vadd.f32 %v7860_v53, %v7606_v32  ;;  %v13073_v27 = vadd.f32 %v7773_v54, %v7605_v19 }
 0x778   :  { %v7862_v52 = vpop.f32.mrf.mxu1  ;;  %v7777_v10 = vpop.f32.mrf.mxu0 }
 0x779   :  { %v13075_v59 = vadd.f32 %v7862_v52, %v7607_v51  ;;  %v13077_v4 = vadd.f32 %v7777_v10, %v7608_v37 }
 0x77a   :  { %v7866_v50 = vpop.f32.mrf.mxu1  ;;  %v7779_v16 = vpop.f32.mrf.mxu0 }
 0x77b   :  { %v13079_v44 = vadd.f32 %v7866_v50, %v7610_v25  ;;  %v13081_v36 = vadd.f32 %v7779_v16, %v7609_v20 }
 0x77c   :  { %v7868_v41 = vpop.f32.mrf.mxu1 }
 0x77d   :  { %v13083_v48 = vadd.f32 %v7868_v41, %v7611_v42  ;;  %v8034_v29 = vpop.f32.mrf.mxu0 }
 0x77f   :  { %v8123_v57 = vpop.f32.mrf.mxu1  ;;  %v8036_v31 = vpop.f32.mrf.mxu0 }
 0x781   :  { %v8125_v62 = vpop.f32.mrf.mxu1  ;;  %v8040_v30 = vpop.f32.mrf.mxu0 }
 0x783   :  { %v8129_v11 = vpop.f32.mrf.mxu1  ;;  %v8042_v14 = vpop.f32.mrf.mxu0 }
 0x785   :  { %v8131_v49 = vpop.f32.mrf.mxu1  ;;  %v8046_v18 = vpop.f32.mrf.mxu0 }
 0x787   :  { %v8135_v24 = vpop.f32.mrf.mxu1  ;;  %v8048_v58 = vpop.f32.mrf.mxu0 }
 0x789   :  { %v8137_v8 = vpop.f32.mrf.mxu1  ;;  %v13085_v7 = vpop.f32.mrf.mxu0 }
 0x78b   :  { %v13087_v9 = vpop.f32.mrf.mxu1  ;;  %v13089_v38 = vpop.f32.mrf.mxu0 }
 0x78d   :  { %v13091_v55 = vpop.f32.mrf.mxu1  ;;  %v8309_v35 = vpop.f32.mrf.mxu0 }
 0x78f   :  { %v8398_v32 = vpop.f32.mrf.mxu1  ;;  %v8311_v19 = vpop.f32.mrf.mxu0 }
 0x791   :  { %v8400_v47 = vpop.f32.mrf.mxu1  ;;  %v13093_v34 = vpop.f32.mrf.mxu0 }
 0x793   :  { %v13095_v15 = vpop.f32.mrf.mxu1  ;;  %v13097_v3 = vpop.f32.mrf.mxu0 }
 0x795   :  { %v13099_v51 = vpop.f32.mrf.mxu1  ;;  %v13101_v37 = vpop.f32.mrf.mxu0 }
 0x797   :  { %v13103_v26 = vpop.f32.mrf.mxu1  ;;  %v13105_v17 = vpop.f32.mrf.mxu0 }
 0x798   :  { %13689 = vst [vmem:[#allocation40_spill] sm:$0xff] %v13103_v26  ;;  %13690 = vst [vmem:[#allocation39_spill] sm:$0xff] %v13105_v17  ;;  %v8150_v26 = vadd.f32 %v8040_v30, %v13061_v43 }
 0x799   :  { %v13107_v5 = vpop.f32.mrf.mxu1  ;;  %v13109_v25 = vpop.f32.mrf.mxu0 }
 0x79a   :  { %13691 = vst [vmem:[#allocation35_spill] sm:$0xff] %v13107_v5  ;;  %13692 = vst [vmem:[#allocation33_spill] sm:$0xff] %v13109_v25  ;;  %v8425_v30 = vadd.f32 %v13093_v34, %v8150_v26 }
 0x79b   :  { %v13111_v20 = vpop.f32.mrf.mxu1  ;;  %v13113_v56 = vpop.f32.mrf.mxu0 }
 0x79c   :  { %13693 = vst [vmem:[#allocation36_spill] sm:$0xff] %v13111_v20  ;;  %13694 = vst [vmem:[#allocation34_spill] sm:$0xff] %v13113_v56 }
 0x79d   :  { %v13115_v42 = vpop.f32.mrf.mxu1  ;;  %v8584_v12 = vpop.f32.mrf.mxu0 }
 0x79e   :  { %13695 = vst [vmem:[#allocation53_spill] sm:$0xff] %v13115_v42 }
 0x79f   :  { %v8673_v13 = vpop.f32.mrf.mxu1  ;;  %v8586_v6 = vpop.f32.mrf.mxu0 }
 0x7a1   :  { %v8675_v22 = vpop.f32.mrf.mxu1  ;;  %v8590_v46 = vpop.f32.mrf.mxu0 }
 0x7a3   :  { %v13117_v60 = vpop.f32.mrf.mxu1  ;;  %v13119_v61 = vpop.f32.mrf.mxu0 }
 0x7a4   :  { %13696 = vst [vmem:[#allocation55_spill] sm:$0xff] %v13117_v60  ;;  %13697 = vst [vmem:[#allocation4_spill] sm:$0xff] %v13119_v61  ;;  %v8152_v61 = vadd.f32 %v8129_v11, %v13063_v40 }
 0x7a5   :  { %v13121_v21 = vpop.f32.mrf.mxu1  ;;  %v13123_v39 = vpop.f32.mrf.mxu0 }
 0x7a6   :  { %13698 = vst [vmem:[#allocation3_spill] sm:$0xff] %v13121_v21  ;;  %13699 = vst [vmem:[#allocation47_spill] sm:$0xff] %v13123_v39 }
 0x7a7   :  { %v13125_v53 = vpop.f32.mrf.mxu1  ;;  %v13127_v54 = vpop.f32.mrf.mxu0 }
 0x7a8   :  { %13700 = vst [vmem:[#allocation2_spill] sm:$0xff] %v13125_v53  ;;  %13701 = vst [vmem:[#allocation41_spill] sm:$0xff] %v13127_v54 }
 0x7a9   :  { %v13129_v52 = vpop.f32.mrf.mxu1  ;;  %v13131_v10 = vpop.f32.mrf.mxu0 }
 0x7aa   :  { %13702 = vst [vmem:[#allocation42_spill] sm:$0xff] %v13129_v52  ;;  %13703 = vst [vmem:[#allocation43_spill] sm:$0xff] %v13131_v10  ;;  %v8146_v52 = vadd.f32 %v8034_v29, %v13053_v23  ;;  %v8148_v10 = vadd.f32 %v8123_v57, %v13055_v28  ;;  %v8154_v23 = vadd.f32 %v8046_v18, %v13069_v33 }
 0x7ab   :  { %v13133_v50 = vpop.f32.mrf.mxu1  ;;  %v13135_v16 = vpop.f32.mrf.mxu0  ;;  %v8156_v28 = vadd.f32 %v8135_v24, %v13071_v45  ;;  %v8157_v57 = vadd.f32 %v8137_v8, %v13075_v59  ;;  %v8159_v33 = vadd.f32 %v13089_v38, %v13081_v36 }
 0x7ac   :  { %13704 = vst [vmem:[#allocation49_spill] sm:$0xff] %v13133_v50  ;;  %13705 = vst [vmem:[#allocation46_spill] sm:$0xff] %v13135_v16  ;;  %v8147_v50 = vadd.f32 %v8036_v31, %v13057_v0  ;;  %v8149_v16 = vadd.f32 %v8125_v62, %v13059_v1  ;;  %v8421_v60 = vadd.f32 %v8309_v35, %v8146_v52 }
 0x7ad   :  { %v13137_v41 = vpop.f32.mrf.mxu1  ;;  %v8859_v42 = vpop.f32.mrf.mxu0  ;;  %v8155_v0 = vadd.f32 %v8048_v58, %v13073_v27  ;;  %v8423_v43 = vadd.f32 %v8398_v32, %v8148_v10  ;;  %v8700_v58 = vadd.f32 %v8590_v46, %v8425_v30  ;;  %v8429_v35 = vadd.f32 %v13101_v37, %v8154_v23  ;;  %v13709_v32 = vld [vmem:[#allocation55_spill] sm:$0xff]  ;;  %v13716_v10 = vld [vmem:[#allocation33_spill] sm:$0xff]  ;;  %v13721_v30 = vld [vmem:[#allocation36_spill] sm:$0xff] }
 0x7ae   :  { %13706 = vst [vmem:[#allocation5_spill] sm:$0xff] %v13137_v41  ;;  %v8422_v31 = vadd.f32 %v8311_v19, %v8147_v50  ;;  %v8696_v40 = vadd.f32 %v8584_v12, %v8421_v60  ;;  %v8424_v45 = vadd.f32 %v8400_v47, %v8149_v16  ;;  %v13710_v47 = vld [vmem:[#allocation4_spill] sm:$0xff]  ;;  %v13712_v12 = vld [vmem:[#allocation39_spill] sm:$0xff] }
 0x7af   :  { %v8948_v56 = vpop.f32.mrf.mxu1  ;;  %v8861_v20 = vpop.f32.mrf.mxu0  ;;  %v8698_v59 = vadd.f32 %v8673_v13, %v8423_v43  ;;  %v13713_v13 = vld [vmem:[#allocation3_spill] sm:$0xff]  ;;  %v13717_v16 = vld [vmem:[#allocation2_spill] sm:$0xff] }
 0x7b0   :  { %v8697_v11 = vadd.f32 %v8586_v6, %v8422_v31  ;;  %v8699_v18 = vadd.f32 %v8675_v22, %v8424_v45  ;;  %v13714_v6 = vld [vmem:[#allocation47_spill] sm:$0xff] }
 0x7b1   :  { %v8950_v25 = vpop.f32.mrf.mxu1  ;;  %v8865_v5 = vpop.f32.mrf.mxu0  ;;  %v8973_v8 = vadd.f32 %v8948_v56, %v8698_v59  ;;  %v8704_v22 = vadd.f32 %v13714_v6, %v8429_v35 }
 0x7b3   :  { %v8954_v39 = vpop.f32.mrf.mxu1  ;;  %v8867_v21 = vpop.f32.mrf.mxu0 }
 0x7b5   :  { %v13139_v53 = vpop.f32.mrf.mxu1  ;;  %v13141_v54 = vpop.f32.mrf.mxu0 }
 0x7b6   :  { %13707 = vst [vmem:[#allocation51_spill] sm:$0xff] %v13139_v53  ;;  %13708 = vst [vmem:[#allocation6_spill] sm:$0xff] %v13141_v54  ;;  %v8151_v53 = vadd.f32 %v8042_v14, %v13065_v2  ;;  %v8153_v54 = vadd.f32 %v8131_v49, %v13067_v63  ;;  %v8158_v2 = vadd.f32 %v13085_v7, %v13077_v4 }
 0x7b7   :  { %v13147_v41 = vpop.f32.mrf.mxu1  ;;  %v13149_v17 = vpop.f32.mrf.mxu0  ;;  %v8160_v63 = vadd.f32 %v13087_v9, %v13079_v44  ;;  %v8971_v14 = vadd.f32 %v8859_v42, %v8696_v40  ;;  %v8161_v49 = vadd.f32 %v13091_v55, %v13083_v48  ;;  %v8427_v4 = vadd.f32 %v13095_v15, %v8152_v61 }
 0x7b8   :  { %v8426_v44 = vadd.f32 %v13097_v3, %v8151_v53  ;;  %v8972_v7 = vadd.f32 %v8861_v20, %v8697_v11  ;;  %v8428_v38 = vadd.f32 %v13099_v51, %v8153_v54  ;;  %v8974_v15 = vadd.f32 %v8950_v25, %v8699_v18  ;;  %v13711_v20 = vld [vmem:[#allocation40_spill] sm:$0xff]  ;;  %v13715_v54 = vld [vmem:[#allocation35_spill] sm:$0xff]  ;;  %v13722_v11 = vld [vmem:[#allocation34_spill] sm:$0xff] }
 0x7b9   :  { %v13158_v1 = vpop.f32.mrf.mxu1  ;;  %v13160_v29 = vpop.f32.mrf.mxu0  ;;  %v8702_v19 = vadd.f32 %v13709_v32, %v8427_v4  ;;  %v8975_v3 = vadd.f32 %v8865_v5, %v8700_v58  ;;  %v8431_v42 = vadd.f32 %v13711_v20, %v8156_v28  ;;  %v8430_v51 = vadd.f32 %v13712_v12, %v8155_v0  ;;  %v13718_v28 = vld [vmem:[#allocation41_spill] sm:$0xff]  ;;  %v13723_v4 = vld [vmem:[#allocation42_spill] sm:$0xff]  ;;  %v13724_v18 = vld [vmem:[#allocation43_spill] sm:$0xff] }
 0x7ba   :  { %v8701_v48 = vadd.f32 %v13710_v47, %v8426_v44  ;;  %v8703_v37 = vadd.f32 %v13713_v13, %v8428_v38  ;;  %v8432_v52 = vadd.f32 %v13715_v54, %v8157_v57  ;;  %v8433_v50 = vadd.f32 %v13716_v10, %v8158_v2  ;;  %v13725_v38 = vld [vmem:[#allocation53_spill] sm:$0xff]  ;;  %v13727_v47 = vld [vmem:[#allocation46_spill] sm:$0xff] }
 0x7bb   :  { %v13169_v27 = vpop.f32.mrf.mxu1  ;;  %v13171_v62 = vpop.f32.mrf.mxu0  ;;  %v8977_v61 = vadd.f32 %v8954_v39, %v8702_v19  ;;  %v8706_v23 = vadd.f32 %v13717_v16, %v8431_v42  ;;  %v8705_v0 = vadd.f32 %v13718_v28, %v8430_v51  ;;  %v8435_v59 = vadd.f32 %v13721_v30, %v8160_v63  ;;  %v13726_v32 = vld [vmem:[#allocation49_spill] sm:$0xff] }
 0x7bc   :  { %v8976_v53 = vadd.f32 %v8867_v21, %v8701_v48  ;;  %v8707_v44 = vadd.f32 %v13723_v4, %v8432_v52  ;;  %v8436_v35 = vadd.f32 %v13725_v38, %v8161_v49 }
 0x7bd   :  { %v13178_v24 = vpop.f32.mrf.mxu1  ;;  %v9134_v36 = vpop.f32.mrf.mxu0  ;;  %v13719_v43 = vld [vmem:[#allocation51_spill] sm:$0xff]  ;;  %v13720_v40 = vld [vmem:[#allocation6_spill] sm:$0xff]  ;;  %v8710_v19 = vadd.f32 %v13726_v32, %v8435_v59 }
 0x7be   :  { %v9246_v9 = vadd.f32 %v9134_v36, %v8971_v14  ;;  %v8978_v31 = vadd.f32 %v13719_v43, %v8703_v37  ;;  %v8979_v45 = vadd.f32 %v13720_v40, %v8704_v22  ;;  %v8434_v14 = vadd.f32 %v13722_v11, %v8159_v33 }
 0x7bf   :  { %v9136_v55 = vpop.f32.mrf.mxu0  ;;  %v9223_v34 = vpop.f32.mrf.mxu1  ;;  %v8708_v36 = vadd.f32 %v13724_v18, %v8433_v50  ;;  %v8985_v42 = vadd.f32 %v13169_v27, %v8710_v19 }
 0x7c0   :  { %9262 = vst [vmem:[%s13275_s18] sm:$0xff] %v9246_v9  ;;  %v9247_v26 = vadd.f32 %v9136_v55, %v8972_v7  ;;  %v9248_v56 = vadd.f32 %v9223_v34, %v8973_v8  ;;  %v8981_v7 = vadd.f32 %v13147_v41, %v8706_v23  ;;  %v8980_v9 = vadd.f32 %v13149_v17, %v8705_v0 }
 0x7c1   :  { %v9140_v46 = vpop.f32.mrf.mxu0  ;;  %v9225_v60 = vpop.f32.mrf.mxu1  ;;  %v8709_v48 = vadd.f32 %v13727_v47, %v8434_v14  ;;  %v8982_v17 = vadd.f32 %v13158_v1, %v8707_v44  ;;  %v8983_v34 = vadd.f32 %v13160_v29, %v8708_v36 }
 0x7c2   :  { %9263 = vst [vmem:[%s13275_s18 + $0x8] sm:$0xff] %v9247_v26  ;;  %9264 = vst [vmem:[%s13275_s18 + $0x10] sm:$0xff] %v9248_v56  ;;  %v9250_v5 = vadd.f32 %v9140_v46, %v8975_v3  ;;  %v9249_v25 = vadd.f32 %v9225_v60, %v8974_v15  ;;  %v13728_v3 = vld [vmem:[#allocation5_spill] sm:$0xff] }
 0x7c3   :  { %v9142_v39 = vpop.f32.mrf.mxu0  ;;  %v9229_v21 = vpop.f32.mrf.mxu1  ;;  %v8711_v26 = vadd.f32 %v13728_v3, %v8436_v35  ;;  %v8984_v1 = vadd.f32 %v13171_v62, %v8709_v48 }
 0x7c4   :  { %9266 = vst [vmem:[%s13275_s18 + $0x20] sm:$0xff] %v9250_v5  ;;  %9265 = vst [vmem:[%s13275_s18 + $0x18] sm:$0xff] %v9249_v25  ;;  %v9251_v57 = vadd.f32 %v9142_v39, %v8976_v53  ;;  %v9252_v2 = vadd.f32 %v9229_v21, %v8977_v61 }
 0x7c5   :  { %v9146_v58 = vpop.f32.mrf.mxu0  ;;  %v9231_v8 = vpop.f32.mrf.mxu1  ;;  %v8986_v37 = vadd.f32 %v13178_v24, %v8711_v26 }
 0x7c6   :  { %9267 = vst [vmem:[%s13275_s18 + $0x28] sm:$0xff] %v9251_v57  ;;  %9268 = vst [vmem:[%s13275_s18 + $0x30] sm:$0xff] %v9252_v2  ;;  %v9254_v63 = vadd.f32 %v9146_v58, %v8979_v45  ;;  %v9253_v33 = vadd.f32 %v9231_v8, %v8978_v31 }
 0x7c7   :  { %v9148_v55 = vpop.f32.mrf.mxu0  ;;  %v9235_v41 = vpop.f32.mrf.mxu1 }
 0x7c8   :  { %9270 = vst [vmem:[%s13275_s18 + $0x40] sm:$0xff] %v9254_v63  ;;  %9269 = vst [vmem:[%s13275_s18 + $0x38] sm:$0xff] %v9253_v33  ;;  %v9255_v15 = vadd.f32 %v9148_v55, %v8980_v9  ;;  %v9256_v49 = vadd.f32 %v9235_v41, %v8981_v7 }
 0x7c9   :  { %v9152_v56 = vpop.f32.mrf.mxu0  ;;  %v9237_v20 = vpop.f32.mrf.mxu1 }
 0x7ca   :  { %9271 = vst [vmem:[%s13275_s18 + $0x48] sm:$0xff] %v9255_v15  ;;  %9272 = vst [vmem:[%s13275_s18 + $0x50] sm:$0xff] %v9256_v49  ;;  %v9258_v29 = vadd.f32 %v9152_v56, %v8983_v34  ;;  %v9257_v12 = vadd.f32 %v9237_v20, %v8982_v17 }
 0x7cb   :  { %v9154_v51 = vpop.f32.mrf.mxu0  ;;  %v9241_v13 = vpop.f32.mrf.mxu1 }
 0x7cc   :  { %9274 = vst [vmem:[%s13275_s18 + $0x60] sm:$0xff] %v9258_v29  ;;  %9273 = vst [vmem:[%s13275_s18 + $0x58] sm:$0xff] %v9257_v12  ;;  %v9259_v27 = vadd.f32 %v9154_v51, %v8984_v1  ;;  %v9260_v62 = vadd.f32 %v9241_v13, %v8985_v42 }
 0x7cd   :  { %v9243_v6 = vpop.f32.mrf.mxu1 }
 0x7ce   :  { %9275 = vst [vmem:[%s13275_s18 + $0x68] sm:$0xff] %v9259_v27  ;;  %9276 = vst [vmem:[%s13275_s18 + $0x70] sm:$0xff] %v9260_v62  ;;  %v9261_v24 = vadd.f32 %v9243_v6, %v8986_v37 }
 0x7d0   :  { %9277 = vst [vmem:[%s13275_s18 + $0x78] sm:$0xff] %v9261_v24 }

</bundles_post_ra>
